<compile_context>
chip_gen: v5e
topology: v5e:2x2
jax: 0.10.0
libtpu: 0.0.40
codegen_flags: <defaults>
</compile_context>

<pallas_src>
import functools

import jax
import jax.numpy as jnp
from jax.experimental import pallas as pl
from jax.experimental.pallas import tpu as pltpu


def _channel_attention_kernel(x_ref, w1_ref, b1_ref, w2_ref, b2_ref, o_ref,
                              *, t, b, hw):
    # x_ref : (t, bhw_p, f)  input, row j = b_idx*hw + p, zero-padded to bhw_p
    # w1_ref: (f, M)         attention_conv weight (1x1 conv as matmul)
    # b1_ref: (1, M)         attention_conv bias
    # w2_ref: (t, M)         attention_tconv taps (w2[k, m])
    # b2_ref: (1,) in SMEM   attention_tconv bias (scalar)
    # o_ref : (b, f)         output
    bhw_p = x_ref.shape[1]
    f = x_ref.shape[2]
    m = w1_ref.shape[1]
    bhw = b * hw

    w1 = w1_ref[...]
    b1 = b1_ref[...]

    # 1x1 conv (+bias, ReLU) per time step, fused with the [1,5] temporal conv
    # (valid padding, output width 1 for t == 5) and with the temporal mean of x.
    acc = jnp.zeros((bhw_p, m), jnp.float32)
    xm = jnp.zeros((bhw_p, f), jnp.float32)
    for k in range(t):
        xk = x_ref[k].astype(jnp.float32)                          # (bhw_p, f)
        zk = jnp.dot(xk, w1, preferred_element_type=jnp.float32) + b1
        zk = jnp.maximum(zk, 0.0)                                  # (bhw_p, M)
        acc = acc + zk * w2_ref[k:k + 1, :]                        # VPU MAC over t
        xm = xm + xk
    xm = xm * (1.0 / t)                                            # mean over t

    a_col = jnp.sum(acc, axis=1, keepdims=True) + b2_ref[0]        # (bhw_p, 1)
    a_col = jnp.maximum(a_col, 0.0)                                # ReLU

    # Mask the zero-padded rows, then per-sample softmax over the hw positions.
    jrow = jax.lax.broadcasted_iota(jnp.int32, (bhw_p, 1), 0)
    valid = jrow < bhw
    a_col = jnp.where(valid, a_col, -1e30)
    gmax = jnp.max(a_col, axis=0, keepdims=True)                   # (1, 1)
    e = jnp.exp(a_col - gmax)                                      # (bhw_p, 1)

    # Group-membership matrices (row j belongs to sample j // hw), built from
    # 2-D iotas — no gathers, reshapes, or transposes inside the kernel.
    bi = jax.lax.broadcasted_iota(jnp.int32, (b, bhw_p), 0)
    jj = jax.lax.broadcasted_iota(jnp.int32, (b, bhw_p), 1)
    G = jnp.where((jj >= bi * hw) & (jj < (bi + 1) * hw), 1.0, 0.0)    # (b, bhw_p)
    jjT = jax.lax.broadcasted_iota(jnp.int32, (bhw_p, b), 0)
    biT = jax.lax.broadcasted_iota(jnp.int32, (bhw_p, b), 1)
    Gt = jnp.where((jjT >= biT * hw) & (jjT < (biT + 1) * hw), 1.0, 0.0)  # (bhw_p, b)

    denom = jnp.dot(G, e, preferred_element_type=jnp.float32)            # (b, 1)
    denom_col = jnp.dot(Gt, denom, preferred_element_type=jnp.float32)   # (bhw_p, 1)
    denom_col = jnp.where(valid, denom_col, 1.0)
    att_col = jnp.where(valid, e / denom_col, 0.0)                       # (bhw_p, 1)

    # out[b, :] = sum_p att[b, p] * mean_t(x)[b, p, :]
    o_ref[...] = jnp.dot(G, att_col * xm,
                         preferred_element_type=jnp.float32).astype(o_ref.dtype)


def channel_attention(x, b, t, w1_pt, b1, w2_pt, b2):
    """x: (b*t, hw, f) (first dim ordered t-major, as the PyTorch forward assumes).
    w1_pt: (M, f, 1, 1), b1: (M,)  -- attention_conv (Conv2d OIHW)
    w2_pt: (1, M, 1, 5), b2: (1,)  -- attention_tconv
    Returns (b, f)."""
    bt, hw, f = x.shape
    assert bt == b * t
    # The module's `a.expand(b, hw, f)` only works when the [1,5] temporal conv
    # produces width 1, i.e. t == 5.
    assert t == w2_pt.shape[-1] == 5
    m = w1_pt.shape[0]

    bhw = b * hw
    bhw_p = max(8, ((bhw + 7) // 8) * 8)     # sublane-align the row count

    x3 = x.reshape(t, bhw, f).astype(jnp.float32)        # row j = b_idx*hw + p
    if bhw_p != bhw:
        x3 = jnp.pad(x3, ((0, 0), (0, bhw_p - bhw), (0, 0)))

    w1 = jnp.transpose(w1_pt[:, :, 0, 0], (1, 0)).astype(jnp.float32)   # (f, M)
    b1v = b1.reshape(1, m).astype(jnp.float32)
    w2 = jnp.transpose(w2_pt[0, :, 0, :], (1, 0)).astype(jnp.float32)   # (t, M)
    b2v = b2.reshape(1).astype(jnp.float32)

    cost = pl.CostEstimate(
        flops=2 * t * bhw_p * f * m,
        transcendentals=bhw_p,
        bytes_accessed=4 * (t * bhw_p * f + f * m + m + t * m + b * f))

    return pl.pallas_call(
        functools.partial(_channel_attention_kernel, t=t, b=b, hw=hw),
        out_shape=jax.ShapeDtypeStruct((b, f), jnp.float32),
        in_specs=[
            pl.BlockSpec(memory_space=pltpu.MemorySpace.VMEM),   # x3
            pl.BlockSpec(memory_space=pltpu.MemorySpace.VMEM),   # w1
            pl.BlockSpec(memory_space=pltpu.MemorySpace.VMEM),   # b1
            pl.BlockSpec(memory_space=pltpu.MemorySpace.VMEM),   # w2
            pl.BlockSpec(memory_space=pltpu.MemorySpace.SMEM),   # b2 (scalar)
        ],
        out_specs=pl.BlockSpec(memory_space=pltpu.MemorySpace.VMEM),
        compiler_params=pltpu.CompilerParams(vmem_limit_bytes=16 * 1024 * 1024),
        cost_estimate=cost,
    )(x3, w1, b1v, w2, b2v)


# ------------------------ pure-JAX reference (for checking) ------------------------
def channel_attention_ref(x, b, t, w1_pt, b1, w2_pt, b2):
    bt, hw, f = x.shape
    m = w1_pt.shape[0]
    hi = jax.lax.Precision.HIGHEST
    # attention_conv (1x1) + ReLU : a[i, m, p]
    a = jnp.einsum('mf,ipf->imp', w1_pt[:, :, 0, 0], x, precision=hi)
    a = jnp.maximum(a + b1[None, :, None], 0.0)                    # (bt, M, hw)
    a = a.reshape(t, b, m, hw).transpose(1, 2, 3, 0)               # (b, M, hw, t)
    # attention_tconv ([1,5], valid, width 1) + ReLU
    a2 = jnp.einsum('bmpk,mk->bp', a, w2_pt[0, :, 0, :], precision=hi) + b2[0]
    a2 = jnp.maximum(a2, 0.0)                                      # (b, hw)
    att = jax.nn.softmax(a2, axis=1)
    xm = jnp.mean(x.reshape(t, b, hw, f), axis=0)                  # (b, hw, f)
    return jnp.einsum('bp,bpf->bf', att, xm, precision=hi)


if __name__ == "__main__":
    B, T, HW, F = 2, 5, 6, 128     # hw = 3*2 and t = 5 are fixed by the module
    M = 1024                        # middle_dim in the module

    key = jax.random.PRNGKey(0)
    kx, kw1, kb1, kw2, kb2 = jax.random.split(key, 5)

    x = jax.random.normal(kx, (B * T, HW, F), jnp.float32)
    w1_pt = 0.05 * jax.random.normal(kw1, (M, F, 1, 1), jnp.float32)   # Conv2d OIHW
    b1 = 0.05 * jax.random.normal(kb1, (M,), jnp.float32)
    w2_pt = 0.05 * jax.random.normal(kw2, (1, M, 1, 5), jnp.float32)
    b2 = 0.05 * jax.random.normal(kb2, (1,), jnp.float32)

    out = channel_attention(x, B, T, w1_pt, b1, w2_pt, b2)
    out = jax.block_until_ready(out)

    ref = channel_attention_ref(x, B, T, w1_pt, b1, w2_pt, b2)
    ref = jax.block_until_ready(ref)

    assert out.shape == (B, F), out.shape
    err = float(jnp.max(jnp.abs(out - ref)))
    assert jnp.allclose(out, ref, atol=2e-2, rtol=2e-2), err
    print("KERNEL_OK")
</pallas_src>

<mosaic_0001>
module attributes {stable_mosaic.version = 11 : i64} {
  func.func @_channel_attention_kernel(%arg0: memref<5x16x128xf32, #tpu.memory_space<vmem>>, %arg1: memref<128x1024xf32, #tpu.memory_space<vmem>>, %arg2: memref<1x1024xf32, #tpu.memory_space<vmem>>, %arg3: memref<5x1024xf32, #tpu.memory_space<vmem>>, %arg4: memref<1xf32, #tpu.memory_space<smem>>, %arg5: memref<2x128xf32, #tpu.memory_space<vmem>>) attributes {dimension_semantics = [], scalar_prefetch = 0 : i64, scratch_operands = 0 : i64, tpu.core_type = #tpu.core_type<tc>} {
    %c0 = arith.constant 0 : index
    %c0_0 = arith.constant 0 : index
    %0 = vector.load %arg1[%c0, %c0_0] : memref<128x1024xf32, #tpu.memory_space<vmem>>, vector<128x1024xf32>
    %c0_1 = arith.constant 0 : index
    %c0_2 = arith.constant 0 : index
    %1 = vector.load %arg2[%c0_1, %c0_2] : memref<1x1024xf32, #tpu.memory_space<vmem>>, vector<1x1024xf32>
    %cst = arith.constant 0.000000e+00 : f32
    %2 = vector.broadcast %cst : f32 to vector<16x1024xf32>
    %cst_3 = arith.constant 0.000000e+00 : f32
    %3 = vector.broadcast %cst_3 : f32 to vector<16x128xf32>
    %c0_4 = arith.constant 0 : index
    %c0_5 = arith.constant 0 : index
    %c0_6 = arith.constant 0 : index
    %4 = vector.load %arg0[%c0_4, %c0_5, %c0_6] : memref<5x16x128xf32, #tpu.memory_space<vmem>>, vector<1x16x128xf32>
    %5 = vector.shape_cast %4 : vector<1x16x128xf32> to vector<16x128xf32>
    %cst_7 = arith.constant dense<0.000000e+00> : vector<16x1024xf32>
    %6 = tpu.matmul %5, %0, %cst_7 {dimension_numbers = #tpu.dot_dimension_numbers<[1], [0], [0], [1], [0, 0, 1, 1], [], []>} : vector<16x128xf32>, vector<128x1024xf32>, vector<16x1024xf32> -> vector<16x1024xf32>
    %7 = vector.broadcast %1 : vector<1x1024xf32> to vector<16x1024xf32>
    %8 = arith.addf %6, %7 : vector<16x1024xf32>
    %cst_8 = arith.constant 0.000000e+00 : f32
    %9 = vector.broadcast %cst_8 : f32 to vector<16x1024xf32>
    %10 = arith.maximumf %8, %9 : vector<16x1024xf32>
    %c0_9 = arith.constant 0 : index
    %c0_10 = arith.constant 0 : index
    %11 = vector.load %arg3[%c0_9, %c0_10] : memref<5x1024xf32, #tpu.memory_space<vmem>>, vector<1x1024xf32>
    %12 = vector.broadcast %11 : vector<1x1024xf32> to vector<16x1024xf32>
    %13 = arith.mulf %10, %12 : vector<16x1024xf32>
    %14 = arith.addf %2, %13 : vector<16x1024xf32>
    %15 = arith.addf %3, %5 : vector<16x128xf32>
    %c1 = arith.constant 1 : index
    %c0_11 = arith.constant 0 : index
    %c0_12 = arith.constant 0 : index
    %16 = vector.load %arg0[%c1, %c0_11, %c0_12] : memref<5x16x128xf32, #tpu.memory_space<vmem>>, vector<1x16x128xf32>
    %17 = vector.shape_cast %16 : vector<1x16x128xf32> to vector<16x128xf32>
    %cst_13 = arith.constant dense<0.000000e+00> : vector<16x1024xf32>
    %18 = tpu.matmul %17, %0, %cst_13 {dimension_numbers = #tpu.dot_dimension_numbers<[1], [0], [0], [1], [0, 0, 1, 1], [], []>} : vector<16x128xf32>, vector<128x1024xf32>, vector<16x1024xf32> -> vector<16x1024xf32>
    %19 = vector.broadcast %1 : vector<1x1024xf32> to vector<16x1024xf32>
    %20 = arith.addf %18, %19 : vector<16x1024xf32>
    %cst_14 = arith.constant 0.000000e+00 : f32
    %21 = vector.broadcast %cst_14 : f32 to vector<16x1024xf32>
    %22 = arith.maximumf %20, %21 : vector<16x1024xf32>
    %c1_15 = arith.constant 1 : index
    %c0_16 = arith.constant 0 : index
    %23 = vector.load %arg3[%c1_15, %c0_16] : memref<5x1024xf32, #tpu.memory_space<vmem>>, vector<1x1024xf32>
    %24 = vector.broadcast %23 : vector<1x1024xf32> to vector<16x1024xf32>
    %25 = arith.mulf %22, %24 : vector<16x1024xf32>
    %26 = arith.addf %14, %25 : vector<16x1024xf32>
    %27 = arith.addf %15, %17 : vector<16x128xf32>
    %c2 = arith.constant 2 : index
    %c0_17 = arith.constant 0 : index
    %c0_18 = arith.constant 0 : index
    %28 = vector.load %arg0[%c2, %c0_17, %c0_18] : memref<5x16x128xf32, #tpu.memory_space<vmem>>, vector<1x16x128xf32>
    %29 = vector.shape_cast %28 : vector<1x16x128xf32> to vector<16x128xf32>
    %cst_19 = arith.constant dense<0.000000e+00> : vector<16x1024xf32>
    %30 = tpu.matmul %29, %0, %cst_19 {dimension_numbers = #tpu.dot_dimension_numbers<[1], [0], [0], [1], [0, 0, 1, 1], [], []>} : vector<16x128xf32>, vector<128x1024xf32>, vector<16x1024xf32> -> vector<16x1024xf32>
    %31 = vector.broadcast %1 : vector<1x1024xf32> to vector<16x1024xf32>
    %32 = arith.addf %30, %31 : vector<16x1024xf32>
    %cst_20 = arith.constant 0.000000e+00 : f32
    %33 = vector.broadcast %cst_20 : f32 to vector<16x1024xf32>
    %34 = arith.maximumf %32, %33 : vector<16x1024xf32>
    %c2_21 = arith.constant 2 : index
    %c0_22 = arith.constant 0 : index
    %35 = vector.load %arg3[%c2_21, %c0_22] : memref<5x1024xf32, #tpu.memory_space<vmem>>, vector<1x1024xf32>
    %36 = vector.broadcast %35 : vector<1x1024xf32> to vector<16x1024xf32>
    %37 = arith.mulf %34, %36 : vector<16x1024xf32>
    %38 = arith.addf %26, %37 : vector<16x1024xf32>
    %39 = arith.addf %27, %29 : vector<16x128xf32>
    %c3 = arith.constant 3 : index
    %c0_23 = arith.constant 0 : index
    %c0_24 = arith.constant 0 : index
    %40 = vector.load %arg0[%c3, %c0_23, %c0_24] : memref<5x16x128xf32, #tpu.memory_space<vmem>>, vector<1x16x128xf32>
    %41 = vector.shape_cast %40 : vector<1x16x128xf32> to vector<16x128xf32>
    %cst_25 = arith.constant dense<0.000000e+00> : vector<16x1024xf32>
    %42 = tpu.matmul %41, %0, %cst_25 {dimension_numbers = #tpu.dot_dimension_numbers<[1], [0], [0], [1], [0, 0, 1, 1], [], []>} : vector<16x128xf32>, vector<128x1024xf32>, vector<16x1024xf32> -> vector<16x1024xf32>
    %43 = vector.broadcast %1 : vector<1x1024xf32> to vector<16x1024xf32>
    %44 = arith.addf %42, %43 : vector<16x1024xf32>
    %cst_26 = arith.constant 0.000000e+00 : f32
    %45 = vector.broadcast %cst_26 : f32 to vector<16x1024xf32>
    %46 = arith.maximumf %44, %45 : vector<16x1024xf32>
    %c3_27 = arith.constant 3 : index
    %c0_28 = arith.constant 0 : index
    %47 = vector.load %arg3[%c3_27, %c0_28] : memref<5x1024xf32, #tpu.memory_space<vmem>>, vector<1x1024xf32>
    %48 = vector.broadcast %47 : vector<1x1024xf32> to vector<16x1024xf32>
    %49 = arith.mulf %46, %48 : vector<16x1024xf32>
    %50 = arith.addf %38, %49 : vector<16x1024xf32>
    %51 = arith.addf %39, %41 : vector<16x128xf32>
    %c4 = arith.constant 4 : index
    %c0_29 = arith.constant 0 : index
    %c0_30 = arith.constant 0 : index
    %52 = vector.load %arg0[%c4, %c0_29, %c0_30] : memref<5x16x128xf32, #tpu.memory_space<vmem>>, vector<1x16x128xf32>
    %53 = vector.shape_cast %52 : vector<1x16x128xf32> to vector<16x128xf32>
    %cst_31 = arith.constant dense<0.000000e+00> : vector<16x1024xf32>
    %54 = tpu.matmul %53, %0, %cst_31 {dimension_numbers = #tpu.dot_dimension_numbers<[1], [0], [0], [1], [0, 0, 1, 1], [], []>} : vector<16x128xf32>, vector<128x1024xf32>, vector<16x1024xf32> -> vector<16x1024xf32>
    %55 = vector.broadcast %1 : vector<1x1024xf32> to vector<16x1024xf32>
    %56 = arith.addf %54, %55 : vector<16x1024xf32>
    %cst_32 = arith.constant 0.000000e+00 : f32
    %57 = vector.broadcast %cst_32 : f32 to vector<16x1024xf32>
    %58 = arith.maximumf %56, %57 : vector<16x1024xf32>
    %c4_33 = arith.constant 4 : index
    %c0_34 = arith.constant 0 : index
    %59 = vector.load %arg3[%c4_33, %c0_34] : memref<5x1024xf32, #tpu.memory_space<vmem>>, vector<1x1024xf32>
    %60 = vector.broadcast %59 : vector<1x1024xf32> to vector<16x1024xf32>
    %61 = arith.mulf %58, %60 : vector<16x1024xf32>
    %62 = arith.addf %50, %61 : vector<16x1024xf32>
    %63 = arith.addf %51, %53 : vector<16x128xf32>
    %cst_35 = arith.constant 2.000000e-01 : f32
    %64 = vector.broadcast %cst_35 : f32 to vector<16x128xf32>
    %65 = arith.mulf %63, %64 : vector<16x128xf32>
    %cst_36 = arith.constant dense<0.000000e+00> : vector<16xf32>
    %66 = vector.multi_reduction <add>, %62, %cst_36 [1] : vector<16x1024xf32> to vector<16xf32>
    %67 = vector.shape_cast %66 : vector<16xf32> to vector<16x1xf32>
    %c0_37 = arith.constant 0 : index
    %68 = memref.load %arg4[%c0_37] : memref<1xf32, #tpu.memory_space<smem>>
    %69 = vector.broadcast %68 : f32 to vector<16x1xf32>
    %70 = arith.addf %67, %69 : vector<16x1xf32>
    %cst_38 = arith.constant 0.000000e+00 : f32
    %71 = vector.broadcast %cst_38 : f32 to vector<16x1xf32>
    %72 = arith.maximumf %70, %71 : vector<16x1xf32>
    %73 = tpu.iota {dimensions = array<i32: 0>} : vector<16x1xi32>
    %c12_i32 = arith.constant 12 : i32
    %74 = vector.broadcast %c12_i32 : i32 to vector<16x1xi32>
    %75 = arith.cmpi slt, %73, %74 : vector<16x1xi32>
    %cst_39 = arith.constant -1.000000e+30 : f32
    %76 = vector.broadcast %cst_39 : f32 to vector<16x1xf32>
    %77 = arith.select %75, %72, %76 : vector<16x1xi1>, vector<16x1xf32>
    %cst_40 = arith.constant dense<0xFF800000> : vector<1xf32>
    %78 = vector.multi_reduction <maximumf>, %77, %cst_40 [0] : vector<16x1xf32> to vector<1xf32>
    %79 = vector.shape_cast %78 : vector<1xf32> to vector<1x1xf32>
    %80 = vector.broadcast %79 : vector<1x1xf32> to vector<16x1xf32>
    %81 = arith.subf %77, %80 : vector<16x1xf32>
    %82 = math.exp %81 : vector<16x1xf32>
    %83 = tpu.iota {dimensions = array<i32: 0>} : vector<2x16xi32>
    %84 = tpu.iota {dimensions = array<i32: 1>} : vector<2x16xi32>
    %c6_i32 = arith.constant 6 : i32
    %85 = vector.broadcast %c6_i32 : i32 to vector<2x16xi32>
    %86 = arith.muli %83, %85 : vector<2x16xi32>
    %87 = arith.cmpi sge, %84, %86 : vector<2x16xi32>
    %c1_i32 = arith.constant 1 : i32
    %88 = vector.broadcast %c1_i32 : i32 to vector<2x16xi32>
    %89 = arith.addi %83, %88 : vector<2x16xi32>
    %c6_i32_41 = arith.constant 6 : i32
    %90 = vector.broadcast %c6_i32_41 : i32 to vector<2x16xi32>
    %91 = arith.muli %89, %90 : vector<2x16xi32>
    %92 = arith.cmpi slt, %84, %91 : vector<2x16xi32>
    %93 = arith.andi %87, %92 : vector<2x16xi1>
    %cst_42 = arith.constant 1.000000e+00 : f32
    %cst_43 = arith.constant 0.000000e+00 : f32
    %94 = vector.broadcast %cst_42 : f32 to vector<2x16xf32>
    %95 = vector.broadcast %cst_43 : f32 to vector<2x16xf32>
    %96 = arith.select %93, %94, %95 : vector<2x16xi1>, vector<2x16xf32>
    %97 = tpu.iota {dimensions = array<i32: 0>} : vector<16x2xi32>
    %98 = tpu.iota {dimensions = array<i32: 1>} : vector<16x2xi32>
    %c6_i32_44 = arith.constant 6 : i32
    %99 = vector.broadcast %c6_i32_44 : i32 to vector<16x2xi32>
    %100 = arith.muli %98, %99 : vector<16x2xi32>
    %101 = arith.cmpi sge, %97, %100 : vector<16x2xi32>
    %c1_i32_45 = arith.constant 1 : i32
    %102 = vector.broadcast %c1_i32_45 : i32 to vector<16x2xi32>
    %103 = arith.addi %98, %102 : vector<16x2xi32>
    %c6_i32_46 = arith.constant 6 : i32
    %104 = vector.broadcast %c6_i32_46 : i32 to vector<16x2xi32>
    %105 = arith.muli %103, %104 : vector<16x2xi32>
    %106 = arith.cmpi slt, %97, %105 : vector<16x2xi32>
    %107 = arith.andi %101, %106 : vector<16x2xi1>
    %cst_47 = arith.constant 1.000000e+00 : f32
    %cst_48 = arith.constant 0.000000e+00 : f32
    %108 = vector.broadcast %cst_47 : f32 to vector<16x2xf32>
    %109 = vector.broadcast %cst_48 : f32 to vector<16x2xf32>
    %110 = arith.select %107, %108, %109 : vector<16x2xi1>, vector<16x2xf32>
    %cst_49 = arith.constant dense<0.000000e+00> : vector<2x1xf32>
    %111 = tpu.matmul %96, %82, %cst_49 {dimension_numbers = #tpu.dot_dimension_numbers<[1], [0], [0], [1], [0, 0, 1, 1], [], []>} : vector<2x16xf32>, vector<16x1xf32>, vector<2x1xf32> -> vector<2x1xf32>
    %cst_50 = arith.constant dense<0.000000e+00> : vector<16x1xf32>
    %112 = tpu.matmul %110, %111, %cst_50 {dimension_numbers = #tpu.dot_dimension_numbers<[1], [0], [0], [1], [0, 0, 1, 1], [], []>} : vector<16x2xf32>, vector<2x1xf32>, vector<16x1xf32> -> vector<16x1xf32>
    %cst_51 = arith.constant 1.000000e+00 : f32
    %113 = vector.broadcast %cst_51 : f32 to vector<16x1xf32>
    %114 = arith.select %75, %112, %113 : vector<16x1xi1>, vector<16x1xf32>
    %115 = arith.divf %82, %114 : vector<16x1xf32>
    %cst_52 = arith.constant 0.000000e+00 : f32
    %116 = vector.broadcast %cst_52 : f32 to vector<16x1xf32>
    %117 = arith.select %75, %115, %116 : vector<16x1xi1>, vector<16x1xf32>
    %118 = vector.broadcast %117 : vector<16x1xf32> to vector<16x128xf32>
    %119 = arith.mulf %118, %65 : vector<16x128xf32>
    %cst_53 = arith.constant dense<0.000000e+00> : vector<2x128xf32>
    %120 = tpu.matmul %96, %119, %cst_53 {dimension_numbers = #tpu.dot_dimension_numbers<[1], [0], [0], [1], [0, 0, 1, 1], [], []>} : vector<2x16xf32>, vector<16x128xf32>, vector<2x128xf32> -> vector<2x128xf32>
    %c0_54 = arith.constant 0 : index
    %c0_55 = arith.constant 0 : index
    %121 = vector.load %arg5[%c0_54, %c0_55] : memref<2x128xf32, #tpu.memory_space<vmem>>, vector<2x128xf32>
    tpu.vector_store %arg5[%c0_54, %c0_55], %120 {strides = array<i32>} : memref<2x128xf32, #tpu.memory_space<vmem>>, vector<2x128xf32>,
    return
  }
}

</mosaic_0001>

<bundles_post_ra>
// kernel: tpu_custom_call.1
= control target key start
LH: loop header
LB: loop body
LE: loop exit
PB: predicated region body
PF: predicated region fallthrough
CT: control target
= control target key end

     0   :  { %11 = vsyncpa [#allocation4], 0  ;;  %s3758_s0 = inlined_call_operand.hbm [shape: f32[5,16,128], index: 0, kind: input, shape index: {}]   ;;  %s3759_s1 = inlined_call_operand.hbm [shape: f32[128,1024], index: 1, kind: input, shape index: {}]   ;;  %s3760_s2 = inlined_call_operand.hbm [shape: f32[1,1024], index: 2, kind: input, shape index: {}]   ;;  %s3761_s3 = inlined_call_operand.hbm [shape: f32[5,1024], index: 3, kind: input, shape index: {}]   ;;  %s3762_s4 = inlined_call_operand.<no memory space> [shape: f32[1], index: 4, kind: input, shape index: {}]   ;;  %s3763_s5 = inlined_call_operand.hbm [shape: f32[2,128], index: 5, kind: output, shape index: {}]  }
   0x1   :  { %12 = vsyncpa [#allocation7], 0 }
   0x2   :  { %13 = vsyncpa [#allocation10], 0  ;;  %s32_s20 = sshll.u32 %s3759_s1, 4  ;;  %s33_s20 = int_to_ptr.hbm [resolvable:$true] %s32_s20 }
   0x3   :  { %14 = vsyncpa [#allocation5], 0  ;;  %s2016_s21 = smov [#allocation6]   ;;  %s19_s25 = sshll.u32 %s3758_s0, 4  ;;  %s20_s25 = int_to_ptr.hbm [resolvable:$true] %s19_s25 }
   0x4   :  { %s34_s22 = sshll.u32 %s2016_s21, 4  ;;  %s2017_s26 = smov 1024   ;;  %s35_s22 = int_to_ptr.vmem [resolvable:$true] %s34_s22 }
   0x5   :  { %s2018_s27 = smov 64   ;;  %s2019_s28 = smov [#allocation3]  }
   0x6   :  { %40 = dma.hbm_to_vmem [thread:$0]  %s33_s20, 16384, %s35_s22, [#allocation7], %s2017_s26, %s2017_s26, %s2018_s27  }
   0x7   :  { %s21_s29 = sshll.u32 %s2019_s28, 4  ;;  %s2020_s30 = smov 128   ;;  %s22_s29 = int_to_ptr.vmem [resolvable:$true] %s21_s29 }
   0x8   :  { %s2021_s6 = smov 8   ;;  %s46_s8 = sshll.u32 %s3760_s2, 4  ;;  %s47_s8 = int_to_ptr.hbm [resolvable:$true] %s46_s8 }
   0x9   :  { %27 = dma.hbm_to_vmem [thread:$0]  %s20_s25, 1280, %s22_s29, [#allocation4], %s2020_s30, %s2020_s30, %s2021_s6  }
   0xa   :  { %s2022_s9 = smov [#allocation8]   ;;  %s57_s12 = sshll.u32 %s3761_s3, 4  ;;  %s58_s12 = int_to_ptr.hbm [resolvable:$true] %s57_s12 }
   0xb   :  { %s48_s10 = sshll.u32 %s2022_s9, 4  ;;  %s2023_s13 = smov [#allocation9]   ;;  %s49_s10 = int_to_ptr.vmem [resolvable:$true] %s48_s10 }
   0xc   :  { %51 = dma.hbm_to_vmem [thread:$0]  %s47_s8, 128, %s49_s10, [#allocation7]  }
   0xd   :  { %s59_s14 = sshll.u32 %s2023_s13, 4  ;;  %s60_s14 = int_to_ptr.vmem [resolvable:$true] %s59_s14 }
   0xe   :  { %62 = dma.hbm_to_vmem [thread:$0]  %s58_s12, 1024, %s60_s14, [#allocation10]  }
   0xf   :  { %2008 = dma.done.wait [#allocation4], 1280  }
  0x10   :  { %2009 = vsyncadd [#allocation4], 4294966016 }
  0x11   :  { %2010 = dma.done.wait [#allocation7], 16512  }
  0x12   :  { %2011 = vsyncadd [#allocation7], 4294950784 }
  0x13   :  { %2012 = dma.done.wait [#allocation10], 1024  }
  0x14   :  { %2013 = vsyncadd [#allocation10], 4294966272  ;;  %v2069_v0 = vld [vmem:[#allocation6 + $0x3c0] sm:$0xff]  ;;  %v2071_v1 = vld [vmem:[#allocation6 + $0x3c8] sm:$0xff]  ;;  %vm1581_vm4 = vcmask 130048   ;;  %vm1612_vm11 = vcmask 1041408  }
  0x15   :  { %4009 = vst [vmem:[#allocation16_spill] sm:$0xff] %v2071_v1  ;;  %v2073_v2 = vld [vmem:[#allocation6 + $0x3d0] sm:$0xff]  ;;  %229 = vmatpush.msra.mxu0 %v2069_v0  ;;  %252 = vmatpush.msra.mxu1 %v2071_v1  ;;  %v2077_v3 = vld [vmem:[#allocation6 + $0x3d8] sm:$0xff]  ;;  %v2079_v4 = vld [vmem:[#allocation6 + $0x380] sm:$0xff]  ;;  %vm1605_vm12 = vcmask 15360   ;;  %s1713_s18 = sshll.u32 %s3763_s5, 4  ;;  %s1714_s18 = int_to_ptr.hbm [resolvable:$true] %s1713_s18 }
  0x16   :  { %v2081_v5 = vld [vmem:[#allocation6 + $0x388] sm:$0xff]  ;;  %275 = vmatpush.msra.mxu2 %v2073_v2  ;;  %298 = vmatpush.msra.mxu3 %v2077_v3  ;;  %v2085_v6 = vld [vmem:[#allocation6 + $0x390] sm:$0xff]  ;;  %v2087_v7 = vld [vmem:[#allocation6 + $0x398] sm:$0xff] }
  0x17   :  { %v2089_v8 = vld [vmem:[#allocation6 + $0x340] sm:$0xff]  ;;  %230 = vmatpush.msra.mxu0 %v2079_v4  ;;  %253 = vmatpush.msra.mxu1 %v2081_v5  ;;  %v2093_v9 = vld [vmem:[#allocation6 + $0x348] sm:$0xff]  ;;  %v2095_v10 = vld [vmem:[#allocation6 + $0x350] sm:$0xff] }
  0x18   :  { %v2097_v11 = vld [vmem:[#allocation6 + $0x358] sm:$0xff]  ;;  %276 = vmatpush.msra.mxu2 %v2085_v6  ;;  %299 = vmatpush.msra.mxu3 %v2087_v7  ;;  %v2101_v12 = vld [vmem:[#allocation6 + $0x300] sm:$0xff]  ;;  %v2103_v13 = vld [vmem:[#allocation6 + $0x308] sm:$0xff] }
  0x19   :  { %231 = vmatpush.msra.mxu0 %v2089_v8  ;;  %254 = vmatpush.msra.mxu1 %v2093_v9  ;;  %v2107_v14 = vld [vmem:[#allocation6 + $0x310] sm:$0xff]  ;;  %v2109_v15 = vld [vmem:[#allocation6 + $0x318] sm:$0xff]  ;;  %v2113_v16 = vld [vmem:[#allocation6 + $0x2c0] sm:$0xff] }
  0x1a   :  { %277 = vmatpush.msra.mxu2 %v2095_v10  ;;  %300 = vmatpush.msra.mxu3 %v2097_v11  ;;  %v2115_v17 = vld [vmem:[#allocation6 + $0x2c8] sm:$0xff]  ;;  %v2119_v18 = vld [vmem:[#allocation6 + $0x2d0] sm:$0xff]  ;;  %v2121_v19 = vld [vmem:[#allocation6 + $0x2d8] sm:$0xff] }
  0x1b   :  { %232 = vmatpush.msra.mxu0 %v2101_v12  ;;  %255 = vmatpush.msra.mxu1 %v2103_v13  ;;  %v2125_v20 = vld [vmem:[#allocation6 + $0x280] sm:$0xff]  ;;  %v2127_v21 = vld [vmem:[#allocation6 + $0x288] sm:$0xff]  ;;  %v2131_v22 = vld [vmem:[#allocation6 + $0x290] sm:$0xff] }
  0x1c   :  { %278 = vmatpush.msra.mxu2 %v2107_v14  ;;  %301 = vmatpush.msra.mxu3 %v2109_v15  ;;  %v2133_v23 = vld [vmem:[#allocation6 + $0x298] sm:$0xff]  ;;  %v2137_v24 = vld [vmem:[#allocation6 + $0x240] sm:$0xff]  ;;  %v2139_v25 = vld [vmem:[#allocation6 + $0x248] sm:$0xff] }
  0x1d   :  { %233 = vmatpush.msra.mxu0 %v2113_v16  ;;  %256 = vmatpush.msra.mxu1 %v2115_v17  ;;  %v2143_v26 = vld [vmem:[#allocation6 + $0x250] sm:$0xff]  ;;  %v2145_v27 = vld [vmem:[#allocation6 + $0x258] sm:$0xff]  ;;  %v2149_v28 = vld [vmem:[#allocation6 + $0x200] sm:$0xff] }
  0x1e   :  { %279 = vmatpush.msra.mxu2 %v2119_v18  ;;  %302 = vmatpush.msra.mxu3 %v2121_v19  ;;  %v2151_v29 = vld [vmem:[#allocation6 + $0x208] sm:$0xff]  ;;  %v2155_v30 = vld [vmem:[#allocation6 + $0x210] sm:$0xff]  ;;  %v2157_v31 = vld [vmem:[#allocation6 + $0x218] sm:$0xff] }
  0x1f   :  { %234 = vmatpush.msra.mxu0 %v2125_v20  ;;  %257 = vmatpush.msra.mxu1 %v2127_v21  ;;  %v2161_v32 = vld [vmem:[#allocation6 + $0x1c0] sm:$0xff]  ;;  %v2163_v33 = vld [vmem:[#allocation6 + $0x1c8] sm:$0xff]  ;;  %v2167_v34 = vld [vmem:[#allocation6 + $0x1d0] sm:$0xff] }
  0x20   :  { %280 = vmatpush.msra.mxu2 %v2131_v22  ;;  %303 = vmatpush.msra.mxu3 %v2133_v23  ;;  %v2169_v35 = vld [vmem:[#allocation6 + $0x1d8] sm:$0xff]  ;;  %v2173_v36 = vld [vmem:[#allocation6 + $0x180] sm:$0xff]  ;;  %v2175_v37 = vld [vmem:[#allocation6 + $0x188] sm:$0xff] }
  0x21   :  { %235 = vmatpush.msra.mxu0 %v2137_v24  ;;  %258 = vmatpush.msra.mxu1 %v2139_v25  ;;  %v2179_v38 = vld [vmem:[#allocation6 + $0x190] sm:$0xff]  ;;  %v2181_v39 = vld [vmem:[#allocation6 + $0x198] sm:$0xff]  ;;  %v2185_v40 = vld [vmem:[#allocation6 + $0x140] sm:$0xff] }
  0x22   :  { %281 = vmatpush.msra.mxu2 %v2143_v26  ;;  %304 = vmatpush.msra.mxu3 %v2145_v27  ;;  %v2187_v41 = vld [vmem:[#allocation6 + $0x148] sm:$0xff]  ;;  %v2191_v42 = vld [vmem:[#allocation6 + $0x150] sm:$0xff]  ;;  %v2193_v43 = vld [vmem:[#allocation6 + $0x158] sm:$0xff] }
  0x23   :  { %236 = vmatpush.msra.mxu0 %v2149_v28  ;;  %259 = vmatpush.msra.mxu1 %v2151_v29  ;;  %4010 = vst [vmem:[#allocation17_spill] sm:$0xff] %v2191_v42  ;;  %v2197_v44 = vld [vmem:[#allocation6 + $0x100] sm:$0xff]  ;;  %v2199_v45 = vld [vmem:[#allocation6 + $0x108] sm:$0xff]  ;;  %v2203_v46 = vld [vmem:[#allocation6 + $0x110] sm:$0xff] }
  0x24   :  { %282 = vmatpush.msra.mxu2 %v2155_v30  ;;  %305 = vmatpush.msra.mxu3 %v2157_v31  ;;  %4011 = vst [vmem:[#allocation18_spill] sm:$0xff] %v2193_v43  ;;  %v2205_v47 = vld [vmem:[#allocation6 + $0x118] sm:$0xff]  ;;  %v2209_v48 = vld [vmem:[#allocation6 + $0xc0] sm:$0xff]  ;;  %v2211_v49 = vld [vmem:[#allocation6 + $0xc8] sm:$0xff] }
  0x25   :  { %237 = vmatpush.msra.mxu0 %v2161_v32  ;;  %260 = vmatpush.msra.mxu1 %v2163_v33  ;;  %4012 = vst [vmem:[#allocation19_spill] sm:$0xff] %v2197_v44  ;;  %v2215_v50 = vld [vmem:[#allocation6 + $0xd0] sm:$0xff]  ;;  %v2217_v51 = vld [vmem:[#allocation6 + $0xd8] sm:$0xff]  ;;  %v2221_v52 = vld [vmem:[#allocation6 + $0x80] sm:$0xff] }
  0x26   :  { %283 = vmatpush.msra.mxu2 %v2167_v34  ;;  %306 = vmatpush.msra.mxu3 %v2169_v35  ;;  %4013 = vst [vmem:[#allocation20_spill] sm:$0xff] %v2199_v45  ;;  %v2223_v53 = vld [vmem:[#allocation6 + $0x88] sm:$0xff]  ;;  %v2227_v54 = vld [vmem:[#allocation6 + $0x90] sm:$0xff]  ;;  %v2229_v55 = vld [vmem:[#allocation6 + $0x98] sm:$0xff] }
  0x27   :  { %238 = vmatpush.msra.mxu0 %v2173_v36  ;;  %261 = vmatpush.msra.mxu1 %v2175_v37  ;;  %4014 = vst [vmem:[#allocation21_spill] sm:$0xff] %v2203_v46  ;;  %v2233_v56 = vld [vmem:[#allocation6 + $0x40] sm:$0xff]  ;;  %v2235_v57 = vld [vmem:[#allocation6 + $0x48] sm:$0xff]  ;;  %v2239_v58 = vld [vmem:[#allocation6 + $0x50] sm:$0xff] }
  0x28   :  { %284 = vmatpush.msra.mxu2 %v2179_v38  ;;  %307 = vmatpush.msra.mxu3 %v2181_v39  ;;  %4015 = vst [vmem:[#allocation22_spill] sm:$0xff] %v2205_v47  ;;  %v2241_v59 = vld [vmem:[#allocation6 + $0x58] sm:$0xff]  ;;  %v2245_v60 = vld [vmem:[#allocation6] sm:$0xff]  ;;  %v2247_v61 = vld [vmem:[#allocation6 + $0x8] sm:$0xff] }
  0x29   :  { %239 = vmatpush.msra.mxu0 %v2185_v40  ;;  %262 = vmatpush.msra.mxu1 %v2187_v41  ;;  %4016 = vst [vmem:[#allocation23_spill] sm:$0xff] %v2209_v48  ;;  %v2251_v62 = vld [vmem:[#allocation6 + $0x10] sm:$0xff]  ;;  %v2253_v63 = vld [vmem:[#allocation6 + $0x18] sm:$0xff] }
  0x2a   :  { %285 = vmatpush.msra.mxu2 %v2191_v42  ;;  %308 = vmatpush.msra.mxu3 %v2193_v43  ;;  %4017 = vst [vmem:[#allocation24_spill] sm:$0xff] %v2211_v49 }
  0x2b   :  { %240 = vmatpush.msra.mxu0 %v2197_v44  ;;  %263 = vmatpush.msra.mxu1 %v2199_v45  ;;  %4018 = vst [vmem:[#allocation25_spill] sm:$0xff] %v2215_v50 }
  0x2c   :  { %4019 = vst [vmem:[#allocation26_spill] sm:$0xff] %v2217_v51  ;;  %286 = vmatpush.msra.mxu2 %v2203_v46  ;;  %309 = vmatpush.msra.mxu3 %v2205_v47 }
  0x2d   :  { %4020 = vst [vmem:[#allocation27_spill] sm:$0xff] %v2221_v52  ;;  %241 = vmatpush.msra.mxu0 %v2209_v48  ;;  %264 = vmatpush.msra.mxu1 %v2211_v49 }
  0x2e   :  { %4021 = vst [vmem:[#allocation28_spill] sm:$0xff] %v2223_v53  ;;  %287 = vmatpush.msra.mxu2 %v2215_v50  ;;  %310 = vmatpush.msra.mxu3 %v2217_v51 }
  0x2f   :  { %4022 = vst [vmem:[#allocation29_spill] sm:$0xff] %v2227_v54  ;;  %242 = vmatpush.msra.mxu0 %v2221_v52  ;;  %265 = vmatpush.msra.mxu1 %v2223_v53  ;;  %v2257_v53 = vld [vmem:[#allocation6 + $0x3e0] sm:$0xff] }
  0x30   :  { %4023 = vst [vmem:[#allocation30_spill] sm:$0xff] %v2229_v55  ;;  %288 = vmatpush.msra.mxu2 %v2227_v54  ;;  %311 = vmatpush.msra.mxu3 %v2229_v55  ;;  %v2259_v54 = vld [vmem:[#allocation6 + $0x3e8] sm:$0xff]  ;;  %v2263_v55 = vld [vmem:[#allocation6 + $0x3f0] sm:$0xff] }
  0x31   :  { %4024 = vst [vmem:[#allocation31_spill] sm:$0xff] %v2233_v56  ;;  %243 = vmatpush.msra.mxu0 %v2233_v56  ;;  %266 = vmatpush.msra.mxu1 %v2235_v57  ;;  %v2265_v56 = vld [vmem:[#allocation6 + $0x3f8] sm:$0xff] }
  0x32   :  { %4025 = vst [vmem:[#allocation32_spill] sm:$0xff] %v2235_v57  ;;  %289 = vmatpush.msra.mxu2 %v2239_v58  ;;  %312 = vmatpush.msra.mxu3 %v2241_v59  ;;  %v2269_v57 = vld [vmem:[#allocation6 + $0x3a0] sm:$0xff] }
  0x33   :  { %4026 = vst [vmem:[#allocation33_spill] sm:$0xff] %v2239_v58  ;;  %244 = vmatpush.msra.mxu0 %v2245_v60  ;;  %267 = vmatpush.msra.mxu1 %v2247_v61  ;;  %v2271_v58 = vld [vmem:[#allocation6 + $0x3a8] sm:$0xff] }
  0x34   :  { %4027 = vst [vmem:[#allocation34_spill] sm:$0xff] %v2241_v59  ;;  %290 = vmatpush.msra.mxu2 %v2251_v62  ;;  %313 = vmatpush.msra.mxu3 %v2253_v63  ;;  %v2275_v59 = vld [vmem:[#allocation6 + $0x3b0] sm:$0xff] }
  0x35   :  { %4028 = vst [vmem:[#allocation35_spill] sm:$0xff] %v2245_v60  ;;  %321 = vmatpush.msrb.mxu0 %v2257_v53  ;;  %344 = vmatpush.msrb.mxu1 %v2259_v54  ;;  %v2277_v60 = vld [vmem:[#allocation6 + $0x3b8] sm:$0xff] }
  0x36   :  { %4029 = vst [vmem:[#allocation36_spill] sm:$0xff] %v2247_v61  ;;  %367 = vmatpush.msrb.mxu2 %v2263_v55  ;;  %390 = vmatpush.msrb.mxu3 %v2265_v56  ;;  %v2281_v61 = vld [vmem:[#allocation6 + $0x360] sm:$0xff] }
  0x37   :  { %4030 = vst [vmem:[#allocation37_spill] sm:$0xff] %v2251_v62  ;;  %v2283_v62 = vld [vmem:[#allocation6 + $0x368] sm:$0xff]  ;;  %322 = vmatpush.msrb.mxu0 %v2269_v57  ;;  %345 = vmatpush.msrb.mxu1 %v2271_v58 }
  0x38   :  { %4031 = vst [vmem:[#allocation38_spill] sm:$0xff] %v2253_v63  ;;  %v2287_v63 = vld [vmem:[#allocation6 + $0x370] sm:$0xff]  ;;  %368 = vmatpush.msrb.mxu2 %v2275_v59  ;;  %391 = vmatpush.msrb.mxu3 %v2277_v60 }
  0x39   :  { %4032 = vst [vmem:[#allocation39_spill] sm:$0xff] %v2257_v53  ;;  %v2289_v53 = vld [vmem:[#allocation6 + $0x378] sm:$0xff]  ;;  %323 = vmatpush.msrb.mxu0 %v2281_v61  ;;  %346 = vmatpush.msrb.mxu1 %v2283_v62 }
  0x3a   :  { %4033 = vst [vmem:[#allocation40_spill] sm:$0xff] %v2259_v54  ;;  %v2293_v54 = vld [vmem:[#allocation6 + $0x320] sm:$0xff]  ;;  %369 = vmatpush.msrb.mxu2 %v2287_v63  ;;  %392 = vmatpush.msrb.mxu3 %v2289_v53 }
  0x3b   :  { %4034 = vst [vmem:[#allocation41_spill] sm:$0xff] %v2263_v55  ;;  %v2295_v55 = vld [vmem:[#allocation6 + $0x328] sm:$0xff]  ;;  %324 = vmatpush.msrb.mxu0 %v2293_v54 }
  0x3c   :  { %4035 = vst [vmem:[#allocation42_spill] sm:$0xff] %v2265_v56  ;;  %v2299_v56 = vld [vmem:[#allocation6 + $0x330] sm:$0xff]  ;;  %347 = vmatpush.msrb.mxu1 %v2295_v55 }
  0x3d   :  { %4036 = vst [vmem:[#allocation43_spill] sm:$0xff] %v2269_v57  ;;  %v2301_v57 = vld [vmem:[#allocation6 + $0x338] sm:$0xff]  ;;  %370 = vmatpush.msrb.mxu2 %v2299_v56 }
  0x3e   :  { %4037 = vst [vmem:[#allocation44_spill] sm:$0xff] %v2271_v58  ;;  %v2305_v58 = vld [vmem:[#allocation6 + $0x2e0] sm:$0xff]  ;;  %393 = vmatpush.msrb.mxu3 %v2301_v57 }
  0x3f   :  { %4038 = vst [vmem:[#allocation45_spill] sm:$0xff] %v2275_v59  ;;  %v2307_v59 = vld [vmem:[#allocation6 + $0x2e8] sm:$0xff]  ;;  %325 = vmatpush.msrb.mxu0 %v2305_v58 }
  0x40   :  { %4039 = vst [vmem:[#allocation46_spill] sm:$0xff] %v2277_v60  ;;  %v2311_v60 = vld [vmem:[#allocation6 + $0x2f0] sm:$0xff]  ;;  %348 = vmatpush.msrb.mxu1 %v2307_v59 }
  0x41   :  { %4040 = vst [vmem:[#allocation47_spill] sm:$0xff] %v2281_v61  ;;  %v2313_v61 = vld [vmem:[#allocation6 + $0x2f8] sm:$0xff]  ;;  %371 = vmatpush.msrb.mxu2 %v2311_v60 }
  0x42   :  { %4041 = vst [vmem:[#allocation48_spill] sm:$0xff] %v2283_v62  ;;  %v2317_v62 = vld [vmem:[#allocation6 + $0x2a0] sm:$0xff]  ;;  %394 = vmatpush.msrb.mxu3 %v2313_v61 }
  0x43   :  { %4042 = vst [vmem:[#allocation49_spill] sm:$0xff] %v2287_v63  ;;  %v2319_v63 = vld [vmem:[#allocation6 + $0x2a8] sm:$0xff]  ;;  %326 = vmatpush.msrb.mxu0 %v2317_v62 }
  0x44   :  { %4043 = vst [vmem:[#allocation50_spill] sm:$0xff] %v2289_v53  ;;  %v2323_v53 = vld [vmem:[#allocation6 + $0x2b0] sm:$0xff]  ;;  %349 = vmatpush.msrb.mxu1 %v2319_v63 }
  0x45   :  { %4044 = vst [vmem:[#allocation51_spill] sm:$0xff] %v2293_v54  ;;  %v2325_v54 = vld [vmem:[#allocation6 + $0x2b8] sm:$0xff]  ;;  %372 = vmatpush.msrb.mxu2 %v2323_v53 }
  0x46   :  { %4045 = vst [vmem:[#allocation52_spill] sm:$0xff] %v2295_v55  ;;  %v2329_v55 = vld [vmem:[#allocation6 + $0x260] sm:$0xff]  ;;  %395 = vmatpush.msrb.mxu3 %v2325_v54 }
  0x47   :  { %4046 = vst [vmem:[#allocation53_spill] sm:$0xff] %v2299_v56  ;;  %v2331_v56 = vld [vmem:[#allocation6 + $0x268] sm:$0xff]  ;;  %327 = vmatpush.msrb.mxu0 %v2329_v55 }
  0x48   :  { %4047 = vst [vmem:[#allocation54_spill] sm:$0xff] %v2301_v57  ;;  %v2335_v57 = vld [vmem:[#allocation6 + $0x270] sm:$0xff]  ;;  %350 = vmatpush.msrb.mxu1 %v2331_v56 }
  0x49   :  { %4048 = vst [vmem:[#allocation55_spill] sm:$0xff] %v2305_v58  ;;  %v2337_v58 = vld [vmem:[#allocation6 + $0x278] sm:$0xff]  ;;  %373 = vmatpush.msrb.mxu2 %v2335_v57 }
  0x4a   :  { %4049 = vst [vmem:[#allocation56_spill] sm:$0xff] %v2307_v59  ;;  %v2341_v59 = vld [vmem:[#allocation6 + $0x220] sm:$0xff]  ;;  %396 = vmatpush.msrb.mxu3 %v2337_v58 }
  0x4b   :  { %4050 = vst [vmem:[#allocation57_spill] sm:$0xff] %v2311_v60  ;;  %v2343_v60 = vld [vmem:[#allocation6 + $0x228] sm:$0xff]  ;;  %328 = vmatpush.msrb.mxu0 %v2341_v59 }
  0x4c   :  { %4051 = vst [vmem:[#allocation58_spill] sm:$0xff] %v2313_v61  ;;  %v2347_v61 = vld [vmem:[#allocation6 + $0x230] sm:$0xff]  ;;  %351 = vmatpush.msrb.mxu1 %v2343_v60 }
  0x4d   :  { %4052 = vst [vmem:[#allocation59_spill] sm:$0xff] %v2317_v62  ;;  %v2349_v62 = vld [vmem:[#allocation6 + $0x238] sm:$0xff]  ;;  %374 = vmatpush.msrb.mxu2 %v2347_v61 }
  0x4e   :  { %4053 = vst [vmem:[#allocation60_spill] sm:$0xff] %v2319_v63  ;;  %v2353_v63 = vld [vmem:[#allocation6 + $0x1e0] sm:$0xff]  ;;  %397 = vmatpush.msrb.mxu3 %v2349_v62 }
  0x4f   :  { %4054 = vst [vmem:[#allocation61_spill] sm:$0xff] %v2323_v53  ;;  %v2355_v53 = vld [vmem:[#allocation6 + $0x1e8] sm:$0xff]  ;;  %329 = vmatpush.msrb.mxu0 %v2353_v63 }
  0x50   :  { %4055 = vst [vmem:[#allocation62_spill] sm:$0xff] %v2325_v54  ;;  %v2359_v54 = vld [vmem:[#allocation6 + $0x1f0] sm:$0xff]  ;;  %352 = vmatpush.msrb.mxu1 %v2355_v53 }
  0x51   :  { %4056 = vst [vmem:[#allocation63_spill] sm:$0xff] %v2329_v55  ;;  %v2361_v55 = vld [vmem:[#allocation6 + $0x1f8] sm:$0xff]  ;;  %375 = vmatpush.msrb.mxu2 %v2359_v54 }
  0x52   :  { %4057 = vst [vmem:[#allocation64_spill] sm:$0xff] %v2331_v56  ;;  %v2365_v56 = vld [vmem:[#allocation6 + $0x1a0] sm:$0xff]  ;;  %398 = vmatpush.msrb.mxu3 %v2361_v55 }
  0x53   :  { %4058 = vst [vmem:[#allocation65_spill] sm:$0xff] %v2335_v57  ;;  %v2367_v57 = vld [vmem:[#allocation6 + $0x1a8] sm:$0xff]  ;;  %330 = vmatpush.msrb.mxu0 %v2365_v56 }
  0x54   :  { %4059 = vst [vmem:[#allocation66_spill] sm:$0xff] %v2337_v58  ;;  %v2371_v58 = vld [vmem:[#allocation6 + $0x1b0] sm:$0xff]  ;;  %353 = vmatpush.msrb.mxu1 %v2367_v57 }
  0x55   :  { %4060 = vst [vmem:[#allocation67_spill] sm:$0xff] %v2341_v59  ;;  %v2373_v59 = vld [vmem:[#allocation6 + $0x1b8] sm:$0xff]  ;;  %376 = vmatpush.msrb.mxu2 %v2371_v58 }
  0x56   :  { %4061 = vst [vmem:[#allocation68_spill] sm:$0xff] %v2343_v60  ;;  %v2377_v60 = vld [vmem:[#allocation6 + $0x160] sm:$0xff]  ;;  %399 = vmatpush.msrb.mxu3 %v2373_v59 }
  0x57   :  { %4062 = vst [vmem:[#allocation69_spill] sm:$0xff] %v2347_v61  ;;  %v2379_v61 = vld [vmem:[#allocation6 + $0x168] sm:$0xff]  ;;  %331 = vmatpush.msrb.mxu0 %v2377_v60 }
  0x58   :  { %4063 = vst [vmem:[#allocation70_spill] sm:$0xff] %v2349_v62  ;;  %v2383_v62 = vld [vmem:[#allocation6 + $0x170] sm:$0xff]  ;;  %354 = vmatpush.msrb.mxu1 %v2379_v61 }
  0x59   :  { %4064 = vst [vmem:[#allocation71_spill] sm:$0xff] %v2353_v63  ;;  %v2385_v63 = vld [vmem:[#allocation6 + $0x178] sm:$0xff]  ;;  %377 = vmatpush.msrb.mxu2 %v2383_v62 }
  0x5a   :  { %4065 = vst [vmem:[#allocation72_spill] sm:$0xff] %v2355_v53  ;;  %v2389_v53 = vld [vmem:[#allocation6 + $0x120] sm:$0xff]  ;;  %400 = vmatpush.msrb.mxu3 %v2385_v63 }
  0x5b   :  { %4066 = vst [vmem:[#allocation73_spill] sm:$0xff] %v2359_v54  ;;  %v2391_v54 = vld [vmem:[#allocation6 + $0x128] sm:$0xff]  ;;  %332 = vmatpush.msrb.mxu0 %v2389_v53 }
  0x5c   :  { %4067 = vst [vmem:[#allocation74_spill] sm:$0xff] %v2361_v55  ;;  %v2395_v55 = vld [vmem:[#allocation6 + $0x130] sm:$0xff]  ;;  %355 = vmatpush.msrb.mxu1 %v2391_v54 }
  0x5d   :  { %4068 = vst [vmem:[#allocation75_spill] sm:$0xff] %v2365_v56  ;;  %v2397_v56 = vld [vmem:[#allocation6 + $0x138] sm:$0xff]  ;;  %378 = vmatpush.msrb.mxu2 %v2395_v55 }
  0x5e   :  { %4069 = vst [vmem:[#allocation76_spill] sm:$0xff] %v2367_v57  ;;  %v2401_v57 = vld [vmem:[#allocation6 + $0xe0] sm:$0xff]  ;;  %401 = vmatpush.msrb.mxu3 %v2397_v56 }
  0x5f   :  { %4070 = vst [vmem:[#allocation77_spill] sm:$0xff] %v2371_v58  ;;  %v2403_v58 = vld [vmem:[#allocation6 + $0xe8] sm:$0xff]  ;;  %333 = vmatpush.msrb.mxu0 %v2401_v57 }
  0x60   :  { %4071 = vst [vmem:[#allocation78_spill] sm:$0xff] %v2373_v59  ;;  %v2407_v59 = vld [vmem:[#allocation6 + $0xf0] sm:$0xff]  ;;  %356 = vmatpush.msrb.mxu1 %v2403_v58 }
  0x61   :  { %4072 = vst [vmem:[#allocation79_spill] sm:$0xff] %v2377_v60  ;;  %v2409_v60 = vld [vmem:[#allocation6 + $0xf8] sm:$0xff]  ;;  %379 = vmatpush.msrb.mxu2 %v2407_v59 }
  0x62   :  { %4073 = vst [vmem:[#allocation80_spill] sm:$0xff] %v2379_v61  ;;  %v2413_v61 = vld [vmem:[#allocation6 + $0xa0] sm:$0xff]  ;;  %402 = vmatpush.msrb.mxu3 %v2409_v60 }
  0x63   :  { %4074 = vst [vmem:[#allocation81_spill] sm:$0xff] %v2383_v62  ;;  %v2415_v62 = vld [vmem:[#allocation6 + $0xa8] sm:$0xff]  ;;  %334 = vmatpush.msrb.mxu0 %v2413_v61 }
  0x64   :  { %4075 = vst [vmem:[#allocation82_spill] sm:$0xff] %v2385_v63  ;;  %v2419_v63 = vld [vmem:[#allocation6 + $0xb0] sm:$0xff]  ;;  %357 = vmatpush.msrb.mxu1 %v2415_v62 }
  0x65   :  { %4076 = vst [vmem:[#allocation83_spill] sm:$0xff] %v2389_v53  ;;  %v2421_v53 = vld [vmem:[#allocation6 + $0xb8] sm:$0xff]  ;;  %380 = vmatpush.msrb.mxu2 %v2419_v63 }
  0x66   :  { %4077 = vst [vmem:[#allocation84_spill] sm:$0xff] %v2391_v54  ;;  %v2425_v54 = vld [vmem:[#allocation6 + $0x60] sm:$0xff]  ;;  %403 = vmatpush.msrb.mxu3 %v2421_v53 }
  0x67   :  { %4078 = vst [vmem:[#allocation85_spill] sm:$0xff] %v2395_v55  ;;  %v2427_v55 = vld [vmem:[#allocation6 + $0x68] sm:$0xff]  ;;  %335 = vmatpush.msrb.mxu0 %v2425_v54 }
  0x68   :  { %4079 = vst [vmem:[#allocation86_spill] sm:$0xff] %v2397_v56  ;;  %v2431_v56 = vld [vmem:[#allocation6 + $0x70] sm:$0xff]  ;;  %358 = vmatpush.msrb.mxu1 %v2427_v55 }
  0x69   :  { %4080 = vst [vmem:[#allocation87_spill] sm:$0xff] %v2401_v57  ;;  %v2433_v57 = vld [vmem:[#allocation6 + $0x78] sm:$0xff]  ;;  %381 = vmatpush.msrb.mxu2 %v2431_v56 }
  0x6a   :  { %4081 = vst [vmem:[#allocation88_spill] sm:$0xff] %v2403_v58  ;;  %v210_v58 = vld [vmem:[#allocation3] sm:$0xff]  ;;  %404 = vmatpush.msrb.mxu3 %v2433_v57 }
  0x6b   :  { %4082 = vst [vmem:[#allocation89_spill] sm:$0xff] %v2409_v60  ;;  %245 = vmatmul.f32.vlgmr.msra.gmra.mxu0 %v210_v58  ;;  %268 = vmatmul.f32.vlgmr.msra.gmra.mxu1 %v210_v58  ;;  %v2445_v60 = vld [vmem:[#allocation6 + $0x30] sm:$0xff] }
  0x6c   :  { %4083 = vst [vmem:[#allocation90_spill] sm:$0xff] %v2413_v61  ;;  %v2441_v61 = vld [vmem:[#allocation6 + $0x20] sm:$0xff]  ;;  %291 = vmatmul.f32.vlgmr.msra.gmra.mxu2 %v210_v58  ;;  %314 = vmatmul.f32.vlgmr.msra.gmra.mxu3 %v210_v58 }
  0x6d   :  { %4084 = vst [vmem:[#allocation91_spill] sm:$0xff] %v2415_v62  ;;  %v2443_v62 = vld [vmem:[#allocation6 + $0x28] sm:$0xff]  ;;  %336 = vmatpush.msrb.mxu0 %v2441_v61  ;;  %382 = vmatpush.msrb.mxu2 %v2445_v60 }
  0x6e   :  { %4085 = vst [vmem:[#allocation92_spill] sm:$0xff] %v2419_v63  ;;  %v2447_v63 = vld [vmem:[#allocation6 + $0x38] sm:$0xff]  ;;  %359 = vmatpush.msrb.mxu1 %v2443_v62 }
  0x6f   :  { %4086 = vst [vmem:[#allocation93_spill] sm:$0xff] %v2431_v56  ;;  %405 = vmatpush.msrb.mxu3 %v2447_v63  ;;  %486 = vmatpush.msra.mxu0 %v2069_v0 }
  0x70   :  { %509 = vmatpush.msra.mxu1 %v2071_v1  ;;  %532 = vmatpush.msra.mxu2 %v2073_v2  ;;  %v211_v1 = vld [vmem:[#allocation3 + $0x8] sm:$0xff] }
  0x71   :  { %555 = vmatpush.msra.mxu3 %v2077_v3  ;;  %487 = vmatpush.msra.mxu0 %v2079_v4 }
  0x72   :  { %510 = vmatpush.msra.mxu1 %v2081_v5  ;;  %533 = vmatpush.msra.mxu2 %v2085_v6 }
  0x73   :  { %556 = vmatpush.msra.mxu3 %v2087_v7  ;;  %488 = vmatpush.msra.mxu0 %v2089_v8 }
  0x74   :  { %511 = vmatpush.msra.mxu1 %v2093_v9  ;;  %534 = vmatpush.msra.mxu2 %v2095_v10 }
  0x75   :  { %557 = vmatpush.msra.mxu3 %v2097_v11  ;;  %489 = vmatpush.msra.mxu0 %v2101_v12 }
  0x76   :  { %512 = vmatpush.msra.mxu1 %v2103_v13  ;;  %535 = vmatpush.msra.mxu2 %v2107_v14 }
  0x77   :  { %558 = vmatpush.msra.mxu3 %v2109_v15  ;;  %248 = vmatmul.f32.gmra.mxu0 %v211_v1 }
  0x78   :  { %271 = vmatmul.f32.gmra.mxu1 %v211_v1  ;;  %294 = vmatmul.f32.gmra.mxu2 %v211_v1 }
  0x79   :  { %317 = vmatmul.f32.gmra.mxu3 %v211_v1  ;;  %490 = vmatpush.msra.mxu0 %v2113_v16 }
  0x7a   :  { %513 = vmatpush.msra.mxu1 %v2115_v17  ;;  %536 = vmatpush.msra.mxu2 %v2119_v18 }
  0x7b   :  { %559 = vmatpush.msra.mxu3 %v2121_v19  ;;  %491 = vmatpush.msra.mxu0 %v2125_v20 }
  0x7c   :  { %514 = vmatpush.msra.mxu1 %v2127_v21  ;;  %537 = vmatpush.msra.mxu2 %v2131_v22 }
  0x7d   :  { %560 = vmatpush.msra.mxu3 %v2133_v23  ;;  %492 = vmatpush.msra.mxu0 %v2137_v24 }
  0x7e   :  { %515 = vmatpush.msra.mxu1 %v2139_v25  ;;  %538 = vmatpush.msra.mxu2 %v2143_v26 }
  0x7f   :  { %561 = vmatpush.msra.mxu3 %v2145_v27  ;;  %493 = vmatpush.msra.mxu0 %v2149_v28 }
  0x80   :  { %516 = vmatpush.msra.mxu1 %v2151_v29  ;;  %539 = vmatpush.msra.mxu2 %v2155_v30 }
  0x81   :  { %562 = vmatpush.msra.mxu3 %v2157_v31  ;;  %337 = vmatmul.f32.vlgmr.msrb.gmra.mxu0 %v210_v58 }
  0x82   :  { %360 = vmatmul.f32.vlgmr.msrb.gmra.mxu1 %v210_v58  ;;  %383 = vmatmul.f32.vlgmr.msrb.gmra.mxu2 %v210_v58 }
  0x83   :  { %406 = vmatmul.f32.vlgmr.msrb.gmra.mxu3 %v210_v58  ;;  %494 = vmatpush.msra.mxu0 %v2161_v32  ;;  %v4087_v58 = vld [vmem:[#allocation28_spill] sm:$0xff] }
  0x84   :  { %517 = vmatpush.msra.mxu1 %v2163_v33  ;;  %540 = vmatpush.msra.mxu2 %v2167_v34 }
  0x85   :  { %563 = vmatpush.msra.mxu3 %v2169_v35  ;;  %495 = vmatpush.msra.mxu0 %v2173_v36 }
  0x86   :  { %518 = vmatpush.msra.mxu1 %v2175_v37  ;;  %541 = vmatpush.msra.mxu2 %v2179_v38 }
  0x87   :  { %564 = vmatpush.msra.mxu3 %v2181_v39  ;;  %496 = vmatpush.msra.mxu0 %v2185_v40 }
  0x88   :  { %519 = vmatpush.msra.mxu1 %v2187_v41  ;;  %542 = vmatpush.msra.mxu2 %v2191_v42  ;;  %v4124_v42 = vld [vmem:[#allocation65_spill] sm:$0xff] }
  0x89   :  { %565 = vmatpush.msra.mxu3 %v2193_v43  ;;  %497 = vmatpush.msra.mxu0 %v2197_v44  ;;  %v4091_v44 = vld [vmem:[#allocation32_spill] sm:$0xff]  ;;  %v4108_v43 = vld [vmem:[#allocation49_spill] sm:$0xff] }
  0x8a   :  { %520 = vmatpush.msra.mxu1 %v2199_v45  ;;  %543 = vmatpush.msra.mxu2 %v2203_v46  ;;  %v4088_v45 = vld [vmem:[#allocation29_spill] sm:$0xff]  ;;  %v4089_v46 = vld [vmem:[#allocation30_spill] sm:$0xff] }
  0x8b   :  { %566 = vmatpush.msra.mxu3 %v2205_v47  ;;  %340 = vmatmul.f32.gmra.mxu0 %v211_v1  ;;  %v4090_v47 = vld [vmem:[#allocation31_spill] sm:$0xff] }
  0x8c   :  { %363 = vmatmul.f32.gmra.mxu1 %v211_v1  ;;  %386 = vmatmul.f32.gmra.mxu2 %v211_v1 }
  0x8d   :  { %409 = vmatmul.f32.gmra.mxu3 %v211_v1  ;;  %498 = vmatpush.msra.mxu0 %v2209_v48  ;;  %v4092_v1 = vld [vmem:[#allocation33_spill] sm:$0xff]  ;;  %v4093_v48 = vld [vmem:[#allocation34_spill] sm:$0xff] }
  0x8e   :  { %521 = vmatpush.msra.mxu1 %v2211_v49  ;;  %544 = vmatpush.msra.mxu2 %v2215_v50  ;;  %v2513_v49 = vld [vmem:[#allocation3 + $0x10] sm:$0xff] }
  0x8f   :  { %567 = vmatpush.msra.mxu3 %v2217_v51  ;;  %499 = vmatpush.msra.mxu0 %v2221_v52  ;;  %v4094_v50 = vld [vmem:[#allocation35_spill] sm:$0xff]  ;;  %v4095_v51 = vld [vmem:[#allocation36_spill] sm:$0xff]  ;;  %v4096_v52 = vld [vmem:[#allocation37_spill] sm:$0xff] }
  0x90   :  { %522 = vmatpush.msra.mxu1 %v4087_v58  ;;  %545 = vmatpush.msra.mxu2 %v4088_v45  ;;  %v4097_v58 = vld [vmem:[#allocation38_spill] sm:$0xff]  ;;  %v4107_v45 = vld [vmem:[#allocation48_spill] sm:$0xff] }
  0x91   :  { %568 = vmatpush.msra.mxu3 %v4089_v46  ;;  %500 = vmatpush.msra.mxu0 %v4090_v47  ;;  %v4105_v47 = vld [vmem:[#allocation46_spill] sm:$0xff]  ;;  %v4106_v46 = vld [vmem:[#allocation47_spill] sm:$0xff] }
  0x92   :  { %523 = vmatpush.msra.mxu1 %v4091_v44  ;;  %546 = vmatpush.msra.mxu2 %v4092_v1  ;;  %v4098_v1 = vld [vmem:[#allocation39_spill] sm:$0xff]  ;;  %v4100_v44 = vld [vmem:[#allocation41_spill] sm:$0xff] }
  0x93   :  { %569 = vmatpush.msra.mxu3 %v4093_v48  ;;  %501 = vmatpush.msra.mxu0 %v4094_v50  ;;  %v4099_v48 = vld [vmem:[#allocation40_spill] sm:$0xff]  ;;  %v4101_v50 = vld [vmem:[#allocation42_spill] sm:$0xff] }
  0x94   :  { %524 = vmatpush.msra.mxu1 %v4095_v51  ;;  %547 = vmatpush.msra.mxu2 %v4096_v52  ;;  %v4102_v51 = vld [vmem:[#allocation43_spill] sm:$0xff]  ;;  %v4103_v52 = vld [vmem:[#allocation44_spill] sm:$0xff] }
  0x95   :  { %570 = vmatpush.msra.mxu3 %v4097_v58  ;;  %502 = vmatmul.f32.vlgmr.msra.gmra.mxu0 %v2513_v49  ;;  %v4104_v58 = vld [vmem:[#allocation45_spill] sm:$0xff] }
  0x96   :  { %525 = vmatmul.f32.vlgmr.msra.gmra.mxu1 %v2513_v49  ;;  %548 = vmatmul.f32.vlgmr.msra.gmra.mxu2 %v2513_v49 }
  0x97   :  { %571 = vmatmul.f32.vlgmr.msra.gmra.mxu3 %v2513_v49  ;;  %578 = vmatpush.msrb.mxu0 %v4098_v1  ;;  %v4109_v1 = vld [vmem:[#allocation50_spill] sm:$0xff] }
  0x98   :  { %601 = vmatpush.msrb.mxu1 %v4099_v48  ;;  %624 = vmatpush.msrb.mxu2 %v4100_v44  ;;  %v2535_v48 = vld [vmem:[#allocation3 + $0x18] sm:$0xff] }
  0x99   :  { %647 = vmatpush.msrb.mxu3 %v4101_v50  ;;  %579 = vmatpush.msrb.mxu0 %v4102_v51  ;;  %v4110_v44 = vld [vmem:[#allocation51_spill] sm:$0xff]  ;;  %v4111_v50 = vld [vmem:[#allocation52_spill] sm:$0xff]  ;;  %v4112_v51 = vld [vmem:[#allocation53_spill] sm:$0xff] }
  0x9a   :  { %602 = vmatpush.msrb.mxu1 %v4103_v52  ;;  %625 = vmatpush.msrb.mxu2 %v4104_v58  ;;  %v4113_v52 = vld [vmem:[#allocation54_spill] sm:$0xff]  ;;  %v4123_v58 = vld [vmem:[#allocation64_spill] sm:$0xff] }
  0x9b   :  { %648 = vmatpush.msrb.mxu3 %v4105_v47  ;;  %580 = vmatpush.msrb.mxu0 %v4106_v46  ;;  %v4121_v46 = vld [vmem:[#allocation62_spill] sm:$0xff]  ;;  %v4122_v47 = vld [vmem:[#allocation63_spill] sm:$0xff] }
  0x9c   :  { %603 = vmatpush.msrb.mxu1 %v4107_v45  ;;  %626 = vmatpush.msrb.mxu2 %v4108_v43  ;;  %v4114_v43 = vld [vmem:[#allocation55_spill] sm:$0xff]  ;;  %v4116_v45 = vld [vmem:[#allocation57_spill] sm:$0xff] }
  0x9d   :  { %649 = vmatpush.msrb.mxu3 %v4109_v1  ;;  %581 = vmatpush.msrb.mxu0 %v4110_v44  ;;  %v4115_v1 = vld [vmem:[#allocation56_spill] sm:$0xff]  ;;  %v4117_v44 = vld [vmem:[#allocation58_spill] sm:$0xff] }
  0x9e   :  { %604 = vmatpush.msrb.mxu1 %v4111_v50  ;;  %627 = vmatpush.msrb.mxu2 %v4112_v51  ;;  %v4118_v50 = vld [vmem:[#allocation59_spill] sm:$0xff]  ;;  %v4119_v51 = vld [vmem:[#allocation60_spill] sm:$0xff] }
  0x9f   :  { %650 = vmatpush.msrb.mxu3 %v4113_v52  ;;  %505 = vmatmul.f32.gmra.mxu0 %v2535_v48  ;;  %v4120_v52 = vld [vmem:[#allocation61_spill] sm:$0xff] }
  0xa0   :  { %528 = vmatmul.f32.gmra.mxu1 %v2535_v48  ;;  %551 = vmatmul.f32.gmra.mxu2 %v2535_v48 }
  0xa1   :  { %574 = vmatmul.f32.gmra.mxu3 %v2535_v48  ;;  %582 = vmatpush.msrb.mxu0 %v4114_v43  ;;  %v4125_v43 = vld [vmem:[#allocation66_spill] sm:$0xff] }
  0xa2   :  { %605 = vmatpush.msrb.mxu1 %v4115_v1  ;;  %628 = vmatpush.msrb.mxu2 %v4116_v45  ;;  %v4126_v1 = vld [vmem:[#allocation67_spill] sm:$0xff]  ;;  %v4127_v45 = vld [vmem:[#allocation68_spill] sm:$0xff] }
  0xa3   :  { %651 = vmatpush.msrb.mxu3 %v4117_v44  ;;  %583 = vmatpush.msrb.mxu0 %v4118_v50  ;;  %v4128_v44 = vld [vmem:[#allocation69_spill] sm:$0xff]  ;;  %v4129_v50 = vld [vmem:[#allocation70_spill] sm:$0xff] }
  0xa4   :  { %606 = vmatpush.msrb.mxu1 %v4119_v51  ;;  %629 = vmatpush.msrb.mxu2 %v4120_v52  ;;  %v4130_v51 = vld [vmem:[#allocation71_spill] sm:$0xff]  ;;  %v4131_v52 = vld [vmem:[#allocation72_spill] sm:$0xff] }
  0xa5   :  { %652 = vmatpush.msrb.mxu3 %v4121_v46  ;;  %584 = vmatpush.msrb.mxu0 %v4122_v47  ;;  %v4132_v46 = vld [vmem:[#allocation73_spill] sm:$0xff]  ;;  %v4133_v47 = vld [vmem:[#allocation74_spill] sm:$0xff] }
  0xa6   :  { %607 = vmatpush.msrb.mxu1 %v4123_v58  ;;  %630 = vmatpush.msrb.mxu2 %v4124_v42  ;;  %v4134_v58 = vld [vmem:[#allocation75_spill] sm:$0xff]  ;;  %v4135_v42 = vld [vmem:[#allocation76_spill] sm:$0xff] }
  0xa7   :  { %653 = vmatpush.msrb.mxu3 %v4125_v43  ;;  %585 = vmatpush.msrb.mxu0 %v4126_v1  ;;  %v4136_v43 = vld [vmem:[#allocation77_spill] sm:$0xff]  ;;  %v4137_v1 = vld [vmem:[#allocation78_spill] sm:$0xff] }
  0xa8   :  { %608 = vmatpush.msrb.mxu1 %v4127_v45  ;;  %631 = vmatpush.msrb.mxu2 %v4128_v44  ;;  %v4138_v45 = vld [vmem:[#allocation79_spill] sm:$0xff]  ;;  %v4139_v44 = vld [vmem:[#allocation80_spill] sm:$0xff] }
  0xa9   :  { %654 = vmatpush.msrb.mxu3 %v4129_v50  ;;  %586 = vmatpush.msrb.mxu0 %v4130_v51  ;;  %v4140_v50 = vld [vmem:[#allocation81_spill] sm:$0xff]  ;;  %v4141_v51 = vld [vmem:[#allocation82_spill] sm:$0xff] }
  0xaa   :  { %609 = vmatpush.msrb.mxu1 %v4131_v52  ;;  %632 = vmatpush.msrb.mxu2 %v4132_v46  ;;  %v4142_v52 = vld [vmem:[#allocation83_spill] sm:$0xff]  ;;  %v4143_v46 = vld [vmem:[#allocation84_spill] sm:$0xff] }
  0xab   :  { %655 = vmatpush.msrb.mxu3 %v4133_v47  ;;  %587 = vmatpush.msrb.mxu0 %v4134_v58  ;;  %v4144_v47 = vld [vmem:[#allocation85_spill] sm:$0xff]  ;;  %v4145_v58 = vld [vmem:[#allocation86_spill] sm:$0xff] }
  0xac   :  { %610 = vmatpush.msrb.mxu1 %v4135_v42  ;;  %633 = vmatpush.msrb.mxu2 %v4136_v43  ;;  %v4146_v42 = vld [vmem:[#allocation87_spill] sm:$0xff]  ;;  %v4147_v43 = vld [vmem:[#allocation88_spill] sm:$0xff] }
  0xad   :  { %656 = vmatpush.msrb.mxu3 %v4137_v1  ;;  %588 = vmatpush.msrb.mxu0 %v4138_v45  ;;  %v4148_v45 = vld [vmem:[#allocation89_spill] sm:$0xff] }
  0xae   :  { %611 = vmatpush.msrb.mxu1 %v4139_v44  ;;  %634 = vmatpush.msrb.mxu2 %v4140_v50  ;;  %v4149_v44 = vld [vmem:[#allocation90_spill] sm:$0xff]  ;;  %v4150_v50 = vld [vmem:[#allocation91_spill] sm:$0xff] }
  0xaf   :  { %657 = vmatpush.msrb.mxu3 %v4141_v51  ;;  %589 = vmatpush.msrb.mxu0 %v4142_v52  ;;  %v4151_v51 = vld [vmem:[#allocation92_spill] sm:$0xff] }
  0xb0   :  { %612 = vmatpush.msrb.mxu1 %v4143_v46  ;;  %635 = vmatpush.msrb.mxu2 %v4144_v47 }
  0xb1   :  { %658 = vmatpush.msrb.mxu3 %v4145_v58  ;;  %590 = vmatpush.msrb.mxu0 %v4146_v42 }
  0xb2   :  { %613 = vmatpush.msrb.mxu1 %v4147_v43  ;;  %636 = vmatpush.msrb.mxu2 %v2407_v59 }
  0xb3   :  { %659 = vmatpush.msrb.mxu3 %v4148_v45  ;;  %591 = vmatpush.msrb.mxu0 %v4149_v44 }
  0xb4   :  { %614 = vmatpush.msrb.mxu1 %v4150_v50  ;;  %637 = vmatpush.msrb.mxu2 %v4151_v51 }
  0xb5   :  { %660 = vmatpush.msrb.mxu3 %v2421_v53  ;;  %592 = vmatpush.msrb.mxu0 %v2425_v54 }
  0xb6   :  { %615 = vmatpush.msrb.mxu1 %v2427_v55  ;;  %638 = vmatpush.msrb.mxu2 %v2431_v56  ;;  %v4152_v56 = vld [vmem:[#allocation16_spill] sm:$0xff] }
  0xb7   :  { %661 = vmatpush.msrb.mxu3 %v2433_v57  ;;  %593 = vmatpush.msrb.mxu0 %v2441_v61 }
  0xb8   :  { %616 = vmatpush.msrb.mxu1 %v2443_v62  ;;  %639 = vmatpush.msrb.mxu2 %v2445_v60 }
  0xb9   :  { %662 = vmatpush.msrb.mxu3 %v2447_v63  ;;  %594 = vmatmul.f32.vlgmr.msrb.gmra.mxu0 %v2513_v49 }
  0xba   :  { %617 = vmatmul.f32.vlgmr.msrb.gmra.mxu1 %v2513_v49  ;;  %640 = vmatmul.f32.vlgmr.msrb.gmra.mxu2 %v2513_v49 }
  0xbb   :  { %663 = vmatmul.f32.vlgmr.msrb.gmra.mxu3 %v2513_v49  ;;  %744 = vmatpush.msra.mxu0 %v2069_v0  ;;  %v4153_v0 = vld [vmem:[#allocation17_spill] sm:$0xff] }
  0xbc   :  { %767 = vmatpush.msra.mxu1 %v4152_v56  ;;  %790 = vmatpush.msra.mxu2 %v2073_v2  ;;  %v4154_v2 = vld [vmem:[#allocation18_spill] sm:$0xff]  ;;  %v4193_v49 = vld [vmem:[#allocation57_spill] sm:$0xff] }
  0xbd   :  { %813 = vmatpush.msra.mxu3 %v2077_v3  ;;  %745 = vmatpush.msra.mxu0 %v2079_v4  ;;  %v4155_v3 = vld [vmem:[#allocation19_spill] sm:$0xff]  ;;  %v4156_v4 = vld [vmem:[#allocation20_spill] sm:$0xff]  ;;  %v4194_v56 = vld [vmem:[#allocation58_spill] sm:$0xff] }
  0xbe   :  { %768 = vmatpush.msra.mxu1 %v2081_v5  ;;  %791 = vmatpush.msra.mxu2 %v2085_v6  ;;  %v4157_v5 = vld [vmem:[#allocation21_spill] sm:$0xff]  ;;  %v4158_v6 = vld [vmem:[#allocation22_spill] sm:$0xff] }
  0xbf   :  { %814 = vmatpush.msra.mxu3 %v2087_v7  ;;  %746 = vmatpush.msra.mxu0 %v2089_v8  ;;  %v4159_v7 = vld [vmem:[#allocation23_spill] sm:$0xff]  ;;  %v4160_v8 = vld [vmem:[#allocation24_spill] sm:$0xff] }
  0xc0   :  { %769 = vmatpush.msra.mxu1 %v2093_v9  ;;  %792 = vmatpush.msra.mxu2 %v2095_v10  ;;  %v4161_v9 = vld [vmem:[#allocation25_spill] sm:$0xff]  ;;  %v4162_v10 = vld [vmem:[#allocation26_spill] sm:$0xff] }
  0xc1   :  { %815 = vmatpush.msra.mxu3 %v2097_v11  ;;  %747 = vmatpush.msra.mxu0 %v2101_v12  ;;  %v4163_v11 = vld [vmem:[#allocation27_spill] sm:$0xff]  ;;  %v4164_v12 = vld [vmem:[#allocation28_spill] sm:$0xff] }
  0xc2   :  { %770 = vmatpush.msra.mxu1 %v2103_v13  ;;  %793 = vmatpush.msra.mxu2 %v2107_v14  ;;  %v4165_v13 = vld [vmem:[#allocation29_spill] sm:$0xff]  ;;  %v4166_v14 = vld [vmem:[#allocation30_spill] sm:$0xff] }
  0xc3   :  { %816 = vmatpush.msra.mxu3 %v2109_v15  ;;  %597 = vmatmul.f32.gmra.mxu0 %v2535_v48  ;;  %v4167_v15 = vld [vmem:[#allocation31_spill] sm:$0xff] }
  0xc4   :  { %620 = vmatmul.f32.gmra.mxu1 %v2535_v48  ;;  %643 = vmatmul.f32.gmra.mxu2 %v2535_v48 }
  0xc5   :  { %666 = vmatmul.f32.gmra.mxu3 %v2535_v48  ;;  %748 = vmatpush.msra.mxu0 %v2113_v16  ;;  %v4168_v16 = vld [vmem:[#allocation32_spill] sm:$0xff] }
  0xc6   :  { %771 = vmatpush.msra.mxu1 %v2115_v17  ;;  %794 = vmatpush.msra.mxu2 %v2119_v18  ;;  %v4169_v17 = vld [vmem:[#allocation33_spill] sm:$0xff]  ;;  %v4170_v18 = vld [vmem:[#allocation34_spill] sm:$0xff]  ;;  %v4192_v48 = vld [vmem:[#allocation56_spill] sm:$0xff] }
  0xc7   :  { %817 = vmatpush.msra.mxu3 %v2121_v19  ;;  %749 = vmatpush.msra.mxu0 %v2125_v20  ;;  %v2661_v19 = vld [vmem:[#allocation3 + $0x20] sm:$0xff]  ;;  %v4171_v20 = vld [vmem:[#allocation35_spill] sm:$0xff] }
  0xc8   :  { %772 = vmatpush.msra.mxu1 %v2127_v21  ;;  %795 = vmatpush.msra.mxu2 %v2131_v22  ;;  %v4172_v21 = vld [vmem:[#allocation36_spill] sm:$0xff]  ;;  %v4173_v22 = vld [vmem:[#allocation37_spill] sm:$0xff] }
  0xc9   :  { %818 = vmatpush.msra.mxu3 %v2133_v23  ;;  %750 = vmatpush.msra.mxu0 %v2137_v24  ;;  %v4174_v23 = vld [vmem:[#allocation38_spill] sm:$0xff]  ;;  %v4175_v24 = vld [vmem:[#allocation39_spill] sm:$0xff] }
  0xca   :  { %773 = vmatpush.msra.mxu1 %v2139_v25  ;;  %796 = vmatpush.msra.mxu2 %v2143_v26  ;;  %v4176_v25 = vld [vmem:[#allocation40_spill] sm:$0xff]  ;;  %v4177_v26 = vld [vmem:[#allocation41_spill] sm:$0xff] }
  0xcb   :  { %819 = vmatpush.msra.mxu3 %v2145_v27  ;;  %751 = vmatpush.msra.mxu0 %v2149_v28  ;;  %v4178_v27 = vld [vmem:[#allocation42_spill] sm:$0xff]  ;;  %v4179_v28 = vld [vmem:[#allocation43_spill] sm:$0xff] }
  0xcc   :  { %774 = vmatpush.msra.mxu1 %v2151_v29  ;;  %797 = vmatpush.msra.mxu2 %v2155_v30  ;;  %v4180_v29 = vld [vmem:[#allocation44_spill] sm:$0xff]  ;;  %v4181_v30 = vld [vmem:[#allocation45_spill] sm:$0xff] }
  0xcd   :  { %820 = vmatpush.msra.mxu3 %v2157_v31  ;;  %752 = vmatpush.msra.mxu0 %v2161_v32  ;;  %v4182_v31 = vld [vmem:[#allocation46_spill] sm:$0xff]  ;;  %v4183_v32 = vld [vmem:[#allocation47_spill] sm:$0xff] }
  0xce   :  { %775 = vmatpush.msra.mxu1 %v2163_v33  ;;  %798 = vmatpush.msra.mxu2 %v2167_v34  ;;  %v4184_v33 = vld [vmem:[#allocation48_spill] sm:$0xff]  ;;  %v4185_v34 = vld [vmem:[#allocation49_spill] sm:$0xff] }
  0xcf   :  { %821 = vmatpush.msra.mxu3 %v2169_v35  ;;  %753 = vmatpush.msra.mxu0 %v2173_v36  ;;  %v4186_v35 = vld [vmem:[#allocation50_spill] sm:$0xff] }
  0xd0   :  { %776 = vmatpush.msra.mxu1 %v2175_v37  ;;  %799 = vmatpush.msra.mxu2 %v2179_v38  ;;  %v2683_v36 = vld [vmem:[#allocation3 + $0x28] sm:$0xff]  ;;  %v4187_v37 = vld [vmem:[#allocation51_spill] sm:$0xff]  ;;  %v4188_v38 = vld [vmem:[#allocation52_spill] sm:$0xff] }
  0xd1   :  { %822 = vmatpush.msra.mxu3 %v2181_v39  ;;  %754 = vmatpush.msra.mxu0 %v2185_v40  ;;  %v4189_v39 = vld [vmem:[#allocation53_spill] sm:$0xff]  ;;  %v4190_v40 = vld [vmem:[#allocation54_spill] sm:$0xff] }
  0xd2   :  { %777 = vmatpush.msra.mxu1 %v2187_v41  ;;  %800 = vmatpush.msra.mxu2 %v4153_v0  ;;  %v4191_v41 = vld [vmem:[#allocation55_spill] sm:$0xff] }
  0xd3   :  { %823 = vmatpush.msra.mxu3 %v4154_v2  ;;  %755 = vmatpush.msra.mxu0 %v4155_v3  ;;  %v4195_v3 = vld [vmem:[#allocation59_spill] sm:$0xff] }
  0xd4   :  { %778 = vmatpush.msra.mxu1 %v4156_v4  ;;  %801 = vmatpush.msra.mxu2 %v4157_v5  ;;  %v4196_v4 = vld [vmem:[#allocation60_spill] sm:$0xff]  ;;  %v4197_v5 = vld [vmem:[#allocation61_spill] sm:$0xff] }
  0xd5   :  { %824 = vmatpush.msra.mxu3 %v4158_v6  ;;  %756 = vmatpush.msra.mxu0 %v4159_v7  ;;  %v4198_v6 = vld [vmem:[#allocation62_spill] sm:$0xff]  ;;  %v4199_v7 = vld [vmem:[#allocation63_spill] sm:$0xff] }
  0xd6   :  { %779 = vmatpush.msra.mxu1 %v4160_v8  ;;  %802 = vmatpush.msra.mxu2 %v4161_v9  ;;  %v4200_v8 = vld [vmem:[#allocation64_spill] sm:$0xff]  ;;  %v4201_v9 = vld [vmem:[#allocation65_spill] sm:$0xff] }
  0xd7   :  { %825 = vmatpush.msra.mxu3 %v4162_v10  ;;  %757 = vmatpush.msra.mxu0 %v4163_v11  ;;  %v4202_v10 = vld [vmem:[#allocation66_spill] sm:$0xff]  ;;  %v4203_v11 = vld [vmem:[#allocation67_spill] sm:$0xff] }
  0xd8   :  { %780 = vmatpush.msra.mxu1 %v4164_v12  ;;  %803 = vmatpush.msra.mxu2 %v4165_v13  ;;  %v4204_v12 = vld [vmem:[#allocation68_spill] sm:$0xff]  ;;  %v4205_v13 = vld [vmem:[#allocation69_spill] sm:$0xff] }
  0xd9   :  { %826 = vmatpush.msra.mxu3 %v4166_v14  ;;  %758 = vmatpush.msra.mxu0 %v4167_v15  ;;  %v4206_v14 = vld [vmem:[#allocation70_spill] sm:$0xff]  ;;  %v4207_v15 = vld [vmem:[#allocation71_spill] sm:$0xff] }
  0xda   :  { %781 = vmatpush.msra.mxu1 %v4168_v16  ;;  %804 = vmatpush.msra.mxu2 %v4169_v17  ;;  %v4208_v16 = vld [vmem:[#allocation72_spill] sm:$0xff] }
  0xdb   :  { %827 = vmatpush.msra.mxu3 %v4170_v18  ;;  %759 = vmatpush.msra.mxu0 %v4171_v20  ;;  %v4209_v20 = vld [vmem:[#allocation73_spill] sm:$0xff] }
  0xdc   :  { %782 = vmatpush.msra.mxu1 %v4172_v21  ;;  %805 = vmatpush.msra.mxu2 %v4173_v22  ;;  %v4210_v21 = vld [vmem:[#allocation74_spill] sm:$0xff]  ;;  %v4211_v22 = vld [vmem:[#allocation75_spill] sm:$0xff] }
  0xdd   :  { %828 = vmatpush.msra.mxu3 %v4174_v23  ;;  %760 = vmatmul.f32.vlgmr.msra.gmra.mxu0 %v2661_v19  ;;  %v4212_v23 = vld [vmem:[#allocation76_spill] sm:$0xff] }
  0xde   :  { %783 = vmatmul.f32.vlgmr.msra.gmra.mxu1 %v2661_v19  ;;  %806 = vmatmul.f32.vlgmr.msra.gmra.mxu2 %v2661_v19 }
  0xdf   :  { %829 = vmatmul.f32.vlgmr.msra.gmra.mxu3 %v2661_v19  ;;  %836 = vmatpush.msrb.mxu0 %v4175_v24  ;;  %v4213_v24 = vld [vmem:[#allocation77_spill] sm:$0xff] }
  0xe0   :  { %859 = vmatpush.msrb.mxu1 %v4176_v25  ;;  %882 = vmatpush.msrb.mxu2 %v4177_v26 }
  0xe1   :  { %905 = vmatpush.msrb.mxu3 %v4178_v27  ;;  %837 = vmatpush.msrb.mxu0 %v4179_v28  ;;  %v4214_v27 = vld [vmem:[#allocation79_spill] sm:$0xff]  ;;  %v4215_v28 = vld [vmem:[#allocation80_spill] sm:$0xff] }
  0xe2   :  { %860 = vmatpush.msrb.mxu1 %v4180_v29  ;;  %883 = vmatpush.msrb.mxu2 %v4181_v30  ;;  %v4216_v29 = vld [vmem:[#allocation81_spill] sm:$0xff]  ;;  %v4217_v30 = vld [vmem:[#allocation82_spill] sm:$0xff] }
  0xe3   :  { %906 = vmatpush.msrb.mxu3 %v4182_v31  ;;  %838 = vmatpush.msrb.mxu0 %v4183_v32  ;;  %v2811_v32 = vld [vmem:[#allocation6 + $0x300] sm:$0xff] }
  0xe4   :  { %861 = vmatpush.msrb.mxu1 %v4184_v33  ;;  %884 = vmatpush.msrb.mxu2 %v4185_v34  ;;  %v2814_v33 = vld [vmem:[#allocation6 + $0x308] sm:$0xff] }
  0xe5   :  { %907 = vmatpush.msrb.mxu3 %v4186_v35  ;;  %839 = vmatpush.msrb.mxu0 %v4187_v37  ;;  %v2823_v37 = vld [vmem:[#allocation6 + $0x310] sm:$0xff] }
  0xe6   :  { %862 = vmatpush.msrb.mxu1 %v4188_v38  ;;  %885 = vmatpush.msrb.mxu2 %v4189_v39  ;;  %v2826_v38 = vld [vmem:[#allocation6 + $0x318] sm:$0xff] }
  0xe7   :  { %908 = vmatpush.msrb.mxu3 %v4190_v40  ;;  %763 = vmatmul.f32.gmra.mxu0 %v2683_v36  ;;  %v429_v39 = vld [vmem:[#allocation9] ss:$8 sm:$0xf] }
  0xe8   :  { %786 = vmatmul.f32.gmra.mxu1 %v2683_v36  ;;  %809 = vmatmul.f32.gmra.mxu2 %v2683_v36  ;;  %v2697_v0 = vpop.f32.mrf.mxu0  ;;  %v2699_v2 = vpop.f32.mrf.mxu1  ;;  %v430_v40 = vld [vmem:[#allocation9] ss:$8 sm:$0xf0] }
  0xe9   :  { %832 = vmatmul.f32.gmra.mxu3 %v2683_v36  ;;  %840 = vmatpush.msrb.mxu0 %v4191_v41  ;;  %v687_v41 = vld [vmem:[#allocation9 + $0x1] ss:$8 sm:$0xf] }
  0xea   :  { %863 = vmatpush.msrb.mxu1 %v4192_v48  ;;  %886 = vmatpush.msrb.mxu2 %v4193_v49  ;;  %v688_v48 = vld [vmem:[#allocation9 + $0x1] ss:$8 sm:$0xf0] }
  0xeb   :  { %909 = vmatpush.msrb.mxu3 %v4194_v56  ;;  %841 = vmatpush.msrb.mxu0 %v4195_v3  ;;  %v2833_v49 = vld [vmem:[#allocation6 + $0x2c0] sm:$0xff]  ;;  %v2836_v56 = vld [vmem:[#allocation6 + $0x2c8] sm:$0xff] }
  0xec   :  { %864 = vmatpush.msrb.mxu1 %v4196_v4  ;;  %887 = vmatpush.msrb.mxu2 %v4197_v5  ;;  %v2841_v4 = vor.u32 %v430_v40, %v429_v39  ;;  %v2913_v39 = vld [vmem:[#allocation6 + $0x1c0] sm:$0xff] }
  0xed   :  { %910 = vmatpush.msrb.mxu3 %v4198_v6  ;;  %842 = vmatpush.msrb.mxu0 %v4199_v7  ;;  %v2845_v6 = vld [vmem:[#allocation6 + $0x2d0] sm:$0xff]  ;;  %v2851_v7 = vld [vmem:[#allocation6 + $0x280] sm:$0xff]  ;;  %4223 = vst [vmem:[#allocation86_spill] sm:$0xff] %v2913_v39 }
  0xee   :  { %865 = vmatpush.msrb.mxu1 %v4200_v8  ;;  %888 = vmatpush.msrb.mxu2 %v4201_v9  ;;  %v2854_v8 = vld [vmem:[#allocation6 + $0x288] sm:$0xff] }
  0xef   :  { %911 = vmatpush.msrb.mxu3 %v4202_v10  ;;  %843 = vmatpush.msrb.mxu0 %v4203_v11  ;;  %v2715_v17 = vpop.f32.mrf.mxu2  ;;  %v2717_v18 = vpop.f32.mrf.mxu3  ;;  %v2866_v11 = vld [vmem:[#allocation6 + $0x290] sm:$0xff] }
  0xf0   :  { %866 = vmatpush.msrb.mxu1 %v4204_v12  ;;  %889 = vmatpush.msrb.mxu2 %v4205_v13  ;;  %v2869_v12 = vld [vmem:[#allocation6 + $0x298] sm:$0xff] }
  0xf1   :  { %912 = vmatpush.msrb.mxu3 %v4206_v14  ;;  %844 = vmatpush.msrb.mxu0 %v4207_v15  ;;  %v2875_v14 = vld [vmem:[#allocation6 + $0x240] sm:$0xff]  ;;  %v2878_v15 = vld [vmem:[#allocation6 + $0x248] sm:$0xff] }
  0xf2   :  { %867 = vmatpush.msrb.mxu1 %v4208_v16  ;;  %890 = vmatpush.msrb.mxu2 %v4209_v20  ;;  %v3912_v20 = vperm.slane %v2841_v4, 0 }
  0xf3   :  { %913 = vmatpush.msrb.mxu3 %v4210_v21  ;;  %845 = vmatpush.msrb.mxu0 %v4211_v22 }
  0xf4   :  { %868 = vmatpush.msrb.mxu1 %v4212_v23  ;;  %891 = vmatpush.msrb.mxu2 %v4213_v24  ;;  %v2725_v25 = vpop.f32.mrf.mxu0  ;;  %v2883_v23 = vld [vmem:[#allocation6 + $0x250] sm:$0xff]  ;;  %v2886_v24 = vld [vmem:[#allocation6 + $0x258] sm:$0xff] }
  0xf5   :  { %914 = vmatpush.msrb.mxu3 %v4137_v1  ;;  %v2727_v26 = vpop.f32.mrf.mxu1  ;;  %846 = vmatpush.msrb.mxu0 %v4214_v27 }
  0xf6   :  { %869 = vmatpush.msrb.mxu1 %v4215_v28  ;;  %892 = vmatpush.msrb.mxu2 %v4216_v29  ;;  %v2889_v29 = vld [vmem:[#allocation6 + $0x200] sm:$0xff] }
  0xf7   :  { %915 = vmatpush.msrb.mxu3 %v4217_v30  ;;  %847 = vmatpush.msrb.mxu0 %v4142_v52  ;;  %v2892_v30 = vld [vmem:[#allocation6 + $0x208] sm:$0xff] }
  0xf8   :  { %870 = vmatpush.msrb.mxu1 %v4143_v46  ;;  %893 = vmatpush.msrb.mxu2 %v4144_v47  ;;  %v2768_v46 = vld [vmem:[#allocation6 + $0x3c8] sm:$0xff]  ;;  %v2771_v47 = vld [vmem:[#allocation6 + $0x3d0] sm:$0xff]  ;;  %4220 = vst [vmem:[#allocation83_spill] sm:$0xff] %v2892_v30 }
  0xf9   :  { %916 = vmatpush.msrb.mxu3 %v4145_v58  ;;  %848 = vmatpush.msrb.mxu0 %v4146_v42  ;;  %v4218_v42 = vld [vmem:[#allocation93_spill] sm:$0xff] }
  0xfa   :  { %871 = vmatpush.msrb.mxu1 %v4147_v43  ;;  %894 = vmatpush.msrb.mxu2 %v2407_v59  ;;  %v2790_v59 = vld [vmem:[#allocation6 + $0x398] sm:$0xff] }
  0xfb   :  { %917 = vmatpush.msrb.mxu3 %v4148_v45  ;;  %849 = vmatpush.msrb.mxu0 %v4149_v44  ;;  %v2743_v1 = vpop.f32.mrf.mxu2  ;;  %v2765_v45 = vld [vmem:[#allocation6 + $0x3c0] sm:$0xff]  ;;  %v2804_v58 = vld [vmem:[#allocation6 + $0x358] sm:$0xff] }
  0xfc   :  { %872 = vmatpush.msrb.mxu1 %v4150_v50  ;;  %v2745_v52 = vpop.f32.mrf.mxu3  ;;  %895 = vmatpush.msrb.mxu2 %v4151_v51  ;;  %v2774_v50 = vld [vmem:[#allocation6 + $0x3d8] sm:$0xff]  ;;  %v2777_v51 = vld [vmem:[#allocation6 + $0x380] sm:$0xff] }
  0xfd   :  { %918 = vmatpush.msrb.mxu3 %v2421_v53  ;;  %850 = vmatpush.msrb.mxu0 %v2425_v54  ;;  %v2780_v53 = vld [vmem:[#allocation6 + $0x388] sm:$0xff] }
  0xfe   :  { %873 = vmatpush.msrb.mxu1 %v2427_v55  ;;  %896 = vmatpush.msrb.mxu2 %v4218_v42  ;;  %v2753_v43 = vpop.f32.mrf.mxu0 }
  0xff   :  { %919 = vmatpush.msrb.mxu3 %v2433_v57  ;;  %v2755_v44 = vpop.f32.mrf.mxu1  ;;  %851 = vmatpush.msrb.mxu0 %v2441_v61  ;;  %v2787_v57 = vld [vmem:[#allocation6 + $0x390] sm:$0xff]  ;;  %v2795_v61 = vld [vmem:[#allocation6 + $0x340] sm:$0xff] }
 0x100   :  { %874 = vmatpush.msrb.mxu1 %v2443_v62  ;;  %897 = vmatpush.msrb.mxu2 %v2445_v60  ;;  %v2793_v60 = vld [vmem:[#allocation8] sm:$0xff]  ;;  %v2798_v62 = vld [vmem:[#allocation6 + $0x348] sm:$0xff] }
 0x101   :  { %920 = vmatpush.msrb.mxu3 %v2447_v63  ;;  %852 = vmatmul.f32.vlgmr.msrb.gmra.mxu0 %v2661_v19  ;;  %v2801_v63 = vld [vmem:[#allocation6 + $0x350] sm:$0xff]  ;;  %v2818_v34 = vperm.slane %v2793_v60, 0  ;;  %v2821_v35 = vperm.slane %v2793_v60, 1  ;;  %v2864_v10 = vperm.slane %v2793_v60, 2  ;;  %v2873_v13 = vperm.slane %v2793_v60, 3 }
 0x102   :  { %875 = vmatmul.f32.vlgmr.msrb.gmra.mxu1 %v2661_v19  ;;  %898 = vmatmul.f32.vlgmr.msrb.gmra.mxu2 %v2661_v19 }
 0x103   :  { %921 = vmatmul.f32.vlgmr.msrb.gmra.mxu3 %v2661_v19  ;;  %1002 = vmatpush.msra.mxu0 %v2765_v45  ;;  %4219 = vst [vmem:[#allocation78_spill] sm:$0xff] %v2821_v35  ;;  %v247_v3 = vadd.f32 %v2697_v0, %v2818_v34  ;;  %v270_v5 = vadd.f32 %v2699_v2, %v2821_v35 }
 0x104   :  { %1025 = vmatpush.msra.mxu1 %v2768_v46  ;;  %1048 = vmatpush.msra.mxu2 %v2771_v47  ;;  %v2861_v2 = vor.u32 %v688_v48, %v687_v41  ;;  %v2901_v48 = vadd.f32 %v2715_v17, %v2864_v10 }
 0x105   :  { %1071 = vmatpush.msra.mxu3 %v2774_v50  ;;  %1003 = vmatpush.msra.mxu0 %v2777_v51  ;;  %v2783_v54 = vpop.f32.mrf.mxu2  ;;  %v413_v16 = vmax.f32 %v247_v3, 0.0  ;;  %v414_v21 = vmax.f32 %v270_v5, 0.0  ;;  %v2903_v3 = vld [vmem:[#allocation6 + $0x210] sm:$0xff]  ;;  %v2906_v5 = vld [vmem:[#allocation6 + $0x218] sm:$0xff] }
 0x106   :  { %1026 = vmatpush.msra.mxu1 %v2780_v53  ;;  %v2785_v55 = vpop.f32.mrf.mxu3  ;;  %1049 = vmatpush.msra.mxu2 %v2787_v57  ;;  %4221 = vst [vmem:[#allocation84_spill] sm:$0xff] %v2903_v3 }
 0x107   :  { %1072 = vmatpush.msra.mxu3 %v2790_v59  ;;  %1004 = vmatpush.msra.mxu0 %v2795_v61  ;;  %4222 = vst [vmem:[#allocation85_spill] sm:$0xff] %v2906_v5  ;;  %v449_v22 = vmul.f32 %v3912_v20, %v413_v16  ;;  %v4230_v16 = vperm.slane %v2861_v2, 0  ;;  %v415_v20 = vmax.f32 %v2901_v48, 0.0  ;;  %v2956_v48 = vld [vmem:[#allocation6 + $0x148] sm:$0xff] }
 0x108   :  { %1027 = vmatpush.msra.mxu1 %v2798_v62  ;;  %1050 = vmatpush.msra.mxu2 %v2801_v63  ;;  %v2807_v19 = vpop.f32.mrf.mxu0  ;;  %4235 = vst [vmem:[#allocation18_spill] sm:$0xff] %v2956_v48 }
 0x109   :  { %1073 = vmatpush.msra.mxu3 %v2804_v58  ;;  %v2809_v31 = vpop.f32.mrf.mxu1  ;;  %1005 = vmatpush.msra.mxu0 %v2811_v32 }
 0x10a   :  { %1028 = vmatpush.msra.mxu1 %v2814_v33  ;;  %1051 = vmatpush.msra.mxu2 %v2823_v37 }
 0x10b   :  { %1074 = vmatpush.msra.mxu3 %v2826_v38  ;;  %855 = vmatmul.f32.gmra.mxu0 %v2683_v36 }
 0x10c   :  { %878 = vmatmul.f32.gmra.mxu1 %v2683_v36  ;;  %901 = vmatmul.f32.gmra.mxu2 %v2683_v36 }
 0x10d   :  { %924 = vmatmul.f32.gmra.mxu3 %v2683_v36  ;;  %1006 = vmatpush.msra.mxu0 %v2833_v49  ;;  %v2848_v36 = vld [vmem:[#allocation6 + $0x2d8] sm:$0xff] }
 0x10e   :  { %1029 = vmatpush.msra.mxu1 %v2836_v56  ;;  %1052 = vmatpush.msra.mxu2 %v2845_v6 }
 0x10f   :  { %1075 = vmatpush.msra.mxu3 %v2848_v36  ;;  %1007 = vmatpush.msra.mxu0 %v2851_v7  ;;  %v2857_v0 = vpop.f32.mrf.mxu2 }
 0x110   :  { %1030 = vmatpush.msra.mxu1 %v2854_v8  ;;  %v2859_v9 = vpop.f32.mrf.mxu3  ;;  %1053 = vmatpush.msra.mxu2 %v2866_v11 }
 0x111   :  { %1076 = vmatpush.msra.mxu3 %v2869_v12  ;;  %1008 = vmatpush.msra.mxu0 %v2875_v14 }
 0x112   :  { %1031 = vmatpush.msra.mxu1 %v2878_v15  ;;  %1054 = vmatpush.msra.mxu2 %v2883_v23  ;;  %v503_v27 = vpop.f32.mrf.mxu0 }
 0x113   :  { %1077 = vmatpush.msra.mxu3 %v2886_v24  ;;  %v526_v28 = vpop.f32.mrf.mxu1  ;;  %1009 = vmatpush.msra.mxu0 %v2889_v29  ;;  %v504_v42 = vadd.f32 %v503_v27, %v2818_v34  ;;  %v2911_v27 = vadd.f32 %v2717_v18, %v2873_v13  ;;  %v2926_v18 = vld [vmem:[#allocation6 + $0x1d8] sm:$0xff] }
 0x114   :  { %1032 = vmatpush.msra.mxu1 %v2892_v30  ;;  %v527_v40 = vadd.f32 %v526_v28, %v2821_v35  ;;  %1055 = vmatpush.msra.mxu2 %v2903_v3  ;;  %v2916_v28 = vld [vmem:[#allocation6 + $0x1c8] sm:$0xff]  ;;  %v4225_v3 = vperm.slane %v2841_v4, 1  ;;  %v2923_v30 = vld [vmem:[#allocation6 + $0x1d0] sm:$0xff]  ;;  %4227 = vst [vmem:[#allocation89_spill] sm:$0xff] %v2926_v18 }
 0x115   :  { %1078 = vmatpush.msra.mxu3 %v2906_v5  ;;  %1010 = vmatpush.msra.mxu0 %v2913_v39  ;;  %4224 = vst [vmem:[#allocation87_spill] sm:$0xff] %v2916_v28  ;;  %v670_v17 = vmax.f32 %v504_v42, 0.0  ;;  %v250_v39 = vadd.f32 %v2725_v25, %v2818_v34  ;;  %v2934_v42 = vld [vmem:[#allocation6 + $0x188] sm:$0xff] }
 0x116   :  { %1033 = vmatpush.msra.mxu1 %v2916_v28  ;;  %v671_v41 = vmax.f32 %v527_v40, 0.0  ;;  %v450_v5 = vmul.f32 %v4225_v3, %v414_v21  ;;  %4226 = vst [vmem:[#allocation88_spill] sm:$0xff] %v2923_v30  ;;  %1056 = vmatpush.msra.mxu2 %v2923_v30  ;;  %v2931_v28 = vld [vmem:[#allocation6 + $0x180] sm:$0xff]  ;;  %v4231_v40 = vperm.slane %v2861_v2, 1  ;;  %v2944_v30 = vld [vmem:[#allocation6 + $0x190] sm:$0xff] }
 0x117   :  { %1079 = vmatpush.msra.mxu3 %v2926_v18  ;;  %4228 = vst [vmem:[#allocation90_spill] sm:$0xff] %v2931_v28  ;;  %1011 = vmatpush.msra.mxu0 %v2931_v28  ;;  %v707_v21 = vmul.f32 %v4230_v16, %v670_v17  ;;  %v2947_v28 = vld [vmem:[#allocation6 + $0x198] sm:$0xff]  ;;  %v273_v17 = vadd.f32 %v2727_v26, %v2821_v35 }
 0x118   :  { %4229 = vst [vmem:[#allocation91_spill] sm:$0xff] %v2934_v42  ;;  %1034 = vmatpush.msra.mxu1 %v2934_v42  ;;  %v708_v3 = vmul.f32 %v4231_v40, %v671_v41  ;;  %1057 = vmatpush.msra.mxu2 %v2944_v30  ;;  %v416_v42 = vmax.f32 %v2911_v27, 0.0  ;;  %v2953_v41 = vld [vmem:[#allocation6 + $0x140] sm:$0xff]  ;;  %v2966_v27 = vld [vmem:[#allocation6 + $0x158] sm:$0xff] }
 0x119   :  { %4232 = vst [vmem:[#allocation92_spill] sm:$0xff] %v2944_v30  ;;  %1080 = vmatpush.msra.mxu3 %v2947_v28  ;;  %1012 = vmatpush.msra.mxu0 %v2953_v41  ;;  %v2959_v16 = vadd.f32 %v707_v21, %v449_v22  ;;  %v549_v25 = vpop.f32.mrf.mxu2  ;;  %v2973_v21 = vld [vmem:[#allocation6 + $0x100] sm:$0xff]  ;;  %v2997_v30 = vld [vmem:[#allocation6 + $0xd0] sm:$0xff] }
 0x11a   :  { %4233 = vst [vmem:[#allocation16_spill] sm:$0xff] %v2947_v28  ;;  %1035 = vmatpush.msra.mxu1 %v2956_v48  ;;  %v2961_v40 = vadd.f32 %v708_v3, %v450_v5  ;;  %v572_v18 = vpop.f32.mrf.mxu3  ;;  %v2963_v28 = vld [vmem:[#allocation6 + $0x150] sm:$0xff]  ;;  %v550_v26 = vadd.f32 %v549_v25, %v2864_v10  ;;  %v421_v5 = vmax.f32 %v250_v39, 0.0  ;;  %v2976_v3 = vld [vmem:[#allocation6 + $0x108] sm:$0xff]  ;;  %v2982_v25 = vld [vmem:[#allocation6 + $0x118] sm:$0xff] }
 0x11b   :  { %4234 = vst [vmem:[#allocation17_spill] sm:$0xff] %v2953_v41  ;;  %1058 = vmatpush.msra.mxu2 %v2963_v28  ;;  %1081 = vmatpush.msra.mxu3 %v2966_v27  ;;  %v573_v48 = vadd.f32 %v572_v18, %v2873_v13 }
 0x11c   :  { %4236 = vst [vmem:[#allocation19_spill] sm:$0xff] %v2959_v16  ;;  %1013 = vmatpush.msra.mxu0 %v2973_v21  ;;  %1036 = vmatpush.msra.mxu1 %v2976_v3  ;;  %v672_v18 = vmax.f32 %v550_v26, 0.0  ;;  %v506_v22 = vpop.f32.mrf.mxu0  ;;  %v2987_v16 = vld [vmem:[#allocation6 + $0xc0] sm:$0xff] }
 0x11d   :  { %4237 = vst [vmem:[#allocation20_spill] sm:$0xff] %v2961_v40  ;;  %1082 = vmatpush.msra.mxu3 %v2982_v25  ;;  %v673_v41 = vmax.f32 %v573_v48, 0.0  ;;  %v529_v39 = vpop.f32.mrf.mxu1  ;;  %v4247_v48 = vperm.slane %v2841_v4, 3 }
 0x11e   :  { %4238 = vst [vmem:[#allocation21_spill] sm:$0xff] %v2963_v28  ;;  %v2979_v28 = vld [vmem:[#allocation6 + $0x110] sm:$0xff]  ;;  %1014 = vmatpush.msra.mxu0 %v2987_v16 }
 0x11f   :  { %4239 = vst [vmem:[#allocation22_spill] sm:$0xff] %v2966_v27  ;;  %1059 = vmatpush.msra.mxu2 %v2979_v28  ;;  %v4244_v27 = vperm.slane %v2841_v4, 2  ;;  %v452_v26 = vmul.f32 %v4247_v48, %v416_v42  ;;  %v296_v42 = vadd.f32 %v2743_v1, %v2864_v10  ;;  %v3011_v48 = vld [vmem:[#allocation6 + $0x80] sm:$0xff] }
 0x120   :  { %4240 = vst [vmem:[#allocation23_spill] sm:$0xff] %v2973_v21  ;;  %v422_v21 = vmax.f32 %v273_v17, 0.0  ;;  %v4250_v17 = vperm.slane %v2861_v2, 2  ;;  %1015 = vmatpush.msra.mxu0 %v3011_v48 }
 0x121   :  { %4241 = vst [vmem:[#allocation24_spill] sm:$0xff] %v2976_v3  ;;  %v451_v40 = vmul.f32 %v4244_v27, %v415_v20  ;;  %v2990_v3 = vld [vmem:[#allocation6 + $0xc8] sm:$0xff]  ;;  %1060 = vmatpush.msra.mxu2 %v2997_v30  ;;  %v3000_v20 = vld [vmem:[#allocation6 + $0xd8] sm:$0xff] }
 0x122   :  { %4242 = vst [vmem:[#allocation25_spill] sm:$0xff] %v2979_v28  ;;  %1037 = vmatpush.msra.mxu1 %v2990_v3  ;;  %v507_v28 = vadd.f32 %v506_v22, %v2818_v34  ;;  %1083 = vmatpush.msra.mxu3 %v3000_v20  ;;  %v709_v27 = vmul.f32 %v4250_v17, %v672_v18  ;;  %v4252_v22 = vperm.slane %v2841_v4, 0  ;;  %v4255_v17 = vperm.slane %v2841_v4, 1 }
 0x123   :  { %4243 = vst [vmem:[#allocation26_spill] sm:$0xff] %v2982_v25  ;;  %v530_v25 = vadd.f32 %v529_v39, %v2821_v35  ;;  %v319_v18 = vadd.f32 %v2745_v52, %v2873_v13  ;;  %v3034_v52 = vld [vmem:[#allocation6 + $0x48] sm:$0xff] }
 0x124   :  { %4245 = vst [vmem:[#allocation27_spill] sm:$0xff] %v2987_v16  ;;  %v457_v39 = vmul.f32 %v4252_v22, %v421_v5  ;;  %v3022_v5 = vld [vmem:[#allocation6 + $0x98] sm:$0xff]  ;;  %v3025_v1 = vadd.f32 %v709_v27, %v451_v40  ;;  %v458_v22 = vmul.f32 %v4255_v17, %v422_v21  ;;  %v3041_v27 = vld [vmem:[#allocation6 + $0x50] sm:$0xff]  ;;  %v3047_v21 = vld [vmem:[#allocation3 + $0x30] sm:$0xff] }
 0x125   :  { %4246 = vst [vmem:[#allocation28_spill] sm:$0xff] %v2990_v3  ;;  %v4251_v3 = vperm.slane %v2861_v2, 3  ;;  %v679_v35 = vmax.f32 %v530_v25, 0.0  ;;  %1084 = vmatpush.msra.mxu3 %v3022_v5  ;;  %v4258_v25 = vperm.slane %v2861_v2, 0  ;;  %v3049_v17 = vld [vmem:[#allocation6] sm:$0xff] }
 0x126   :  { %4248 = vst [vmem:[#allocation29_spill] sm:$0xff] %v2997_v30  ;;  %v3014_v30 = vld [vmem:[#allocation6 + $0x88] sm:$0xff] }
 0x127   :  { %4249 = vst [vmem:[#allocation30_spill] sm:$0xff] %v3000_v20  ;;  %v710_v16 = vmul.f32 %v4251_v3, %v673_v41  ;;  %1038 = vmatpush.msra.mxu1 %v3014_v30  ;;  %v678_v20 = vmax.f32 %v507_v28, 0.0  ;;  %v3019_v41 = vld [vmem:[#allocation6 + $0x90] sm:$0xff]  ;;  %v3031_v28 = vld [vmem:[#allocation6 + $0x40] sm:$0xff] }
 0x128   :  { %4253 = vst [vmem:[#allocation31_spill] sm:$0xff] %v3019_v41  ;;  %1061 = vmatpush.msra.mxu2 %v3019_v41  ;;  %1016 = vmatpush.msra.mxu0 %v3031_v28 }
 0x129   :  { %4254 = vst [vmem:[#allocation32_spill] sm:$0xff] %v3022_v5  ;;  %v3027_v3 = vadd.f32 %v710_v16, %v452_v26  ;;  %1039 = vmatpush.msra.mxu1 %v3034_v52  ;;  %v715_v41 = vmul.f32 %v4258_v25, %v678_v20  ;;  %v4259_v5 = vperm.slane %v2861_v2, 1  ;;  %v3044_v16 = vld [vmem:[#allocation6 + $0x58] sm:$0xff]  ;;  %v423_v26 = vmax.f32 %v296_v42, 0.0  ;;  %v575_v25 = vpop.f32.mrf.mxu3 }
 0x12a   :  { %4256 = vst [vmem:[#allocation33_spill] sm:$0xff] %v3031_v28  ;;  %1062 = vmatpush.msra.mxu2 %v3041_v27  ;;  %1085 = vmatpush.msra.mxu3 %v3044_v16  ;;  %v3059_v28 = vld [vmem:[#allocation6 + $0x10] sm:$0xff]  ;;  %v3062_v42 = vld [vmem:[#allocation6 + $0x18] sm:$0xff] }
 0x12b   :  { %4257 = vst [vmem:[#allocation34_spill] sm:$0xff] %v3034_v52  ;;  %v716_v40 = vmul.f32 %v4259_v5, %v679_v35  ;;  %1017 = vmatpush.msra.mxu0 %v3049_v17  ;;  %v3052_v52 = vld [vmem:[#allocation6 + $0x8] sm:$0xff]  ;;  %v3055_v35 = vadd.f32 %v715_v41, %v457_v39  ;;  %v552_v5 = vpop.f32.mrf.mxu2  ;;  %v4268_v41 = vperm.slane %v2841_v4, 2 }
 0x12c   :  { %4260 = vst [vmem:[#allocation35_spill] sm:$0xff] %v3041_v27  ;;  %1040 = vmatpush.msra.mxu1 %v3052_v52  ;;  %v424_v27 = vmax.f32 %v319_v18, 0.0  ;;  %1063 = vmatpush.msra.mxu2 %v3059_v28 }
 0x12d   :  { %4261 = vst [vmem:[#allocation36_spill] sm:$0xff] %v3044_v16  ;;  %v3057_v20 = vadd.f32 %v716_v40, %v458_v22  ;;  %1086 = vmatpush.msra.mxu3 %v3062_v42  ;;  %v576_v16 = vadd.f32 %v575_v25, %v2873_v13  ;;  %1018 = vmatmul.f32.vlgmr.msra.gmra.mxu0 %v3047_v21  ;;  %v3073_v40 = vld [vmem:[#allocation6 + $0x3e0] sm:$0xff]  ;;  %v4271_v25 = vperm.slane %v2841_v4, 3 }
 0x12e   :  { %4262 = vst [vmem:[#allocation37_spill] sm:$0xff] %v3049_v17  ;;  %v553_v17 = vadd.f32 %v552_v5, %v2864_v10  ;;  %1041 = vmatmul.f32.vlgmr.msra.gmra.mxu1 %v3047_v21  ;;  %1064 = vmatmul.f32.vlgmr.msra.gmra.mxu2 %v3047_v21  ;;  %v459_v22 = vmul.f32 %v4268_v41, %v423_v26  ;;  %v3076_v5 = vld [vmem:[#allocation6 + $0x3e8] sm:$0xff]  ;;  %v4275_v41 = vperm.slane %v2861_v2, 3 }
 0x12f   :  { %4263 = vst [vmem:[#allocation38_spill] sm:$0xff] %v3052_v52  ;;  %1087 = vmatmul.f32.vlgmr.msra.gmra.mxu3 %v3047_v21  ;;  %v681_v18 = vmax.f32 %v576_v16, 0.0  ;;  %1094 = vmatpush.msrb.mxu0 %v3073_v40  ;;  %v4274_v16 = vperm.slane %v2861_v2, 2  ;;  %v3225_v52 = vld [vmem:[#allocation6 + $0x1f0] sm:$0xff] }
 0x130   :  { %4264 = vst [vmem:[#allocation39_spill] sm:$0xff] %v3055_v35  ;;  %v680_v39 = vmax.f32 %v553_v17, 0.0  ;;  %1117 = vmatpush.msrb.mxu1 %v3076_v5  ;;  %v3084_v17 = vld [vmem:[#allocation6 + $0x3f8] sm:$0xff]  ;;  %v4310_v35 = vperm.slane %v2841_v4, 5 }
 0x131   :  { %4265 = vst [vmem:[#allocation40_spill] sm:$0xff] %v3057_v20  ;;  %1163 = vmatpush.msrb.mxu3 %v3084_v17  ;;  %v3091_v20 = vld [vmem:[#allocation6 + $0x3a0] sm:$0xff] }
 0x132   :  { %4266 = vst [vmem:[#allocation41_spill] sm:$0xff] %v3059_v28  ;;  %v3081_v28 = vld [vmem:[#allocation6 + $0x3f0] sm:$0xff]  ;;  %v717_v26 = vmul.f32 %v4274_v16, %v680_v39  ;;  %1095 = vmatpush.msrb.mxu0 %v3091_v20 }
 0x133   :  { %4267 = vst [vmem:[#allocation42_spill] sm:$0xff] %v3062_v42  ;;  %v460_v42 = vmul.f32 %v4271_v25, %v424_v27  ;;  %1140 = vmatpush.msrb.mxu2 %v3081_v28  ;;  %v3097_v27 = vld [vmem:[#allocation6 + $0x3b0] sm:$0xff]  ;;  %v3100_v25 = vld [vmem:[#allocation6 + $0x3b8] sm:$0xff] }
 0x134   :  { %4269 = vst [vmem:[#allocation43_spill] sm:$0xff] %v3073_v40  ;;  %v718_v40 = vmul.f32 %v4275_v41, %v681_v18  ;;  %1164 = vmatpush.msrb.mxu3 %v3100_v25  ;;  %v3103_v39 = vadd.f32 %v717_v26, %v459_v22  ;;  %v3107_v18 = vld [vmem:[#allocation6 + $0x360] sm:$0xff]  ;;  %v3110_v41 = vld [vmem:[#allocation6 + $0x368] sm:$0xff]  ;;  %v3128_v26 = vperm.slane %v2793_v60, 4 }
 0x135   :  { %4270 = vst [vmem:[#allocation44_spill] sm:$0xff] %v3076_v5  ;;  %v3094_v5 = vld [vmem:[#allocation6 + $0x3a8] sm:$0xff]  ;;  %1141 = vmatpush.msrb.mxu2 %v3097_v27  ;;  %1096 = vmatpush.msrb.mxu0 %v3107_v18 }
 0x136   :  { %4272 = vst [vmem:[#allocation45_spill] sm:$0xff] %v3081_v28  ;;  %1118 = vmatpush.msrb.mxu1 %v3094_v5  ;;  %v3105_v16 = vadd.f32 %v718_v40, %v460_v42  ;;  %v3119_v22 = vld [vmem:[#allocation3 + $0x38] sm:$0xff]  ;;  %v3121_v42 = vld [vmem:[#allocation6 + $0x320] sm:$0xff] }
 0x137   :  { %4273 = vst [vmem:[#allocation46_spill] sm:$0xff] %v3084_v17  ;;  %1097 = vmatpush.msrb.mxu0 %v3121_v42  ;;  %v3124_v40 = vld [vmem:[#allocation6 + $0x328] sm:$0xff]  ;;  %1044 = vmatmul.f32.gmra.mxu1 %v3119_v22  ;;  %v3185_v17 = vld [vmem:[#allocation6 + $0x270] sm:$0xff]  ;;  %v3191_v28 = vld [vmem:[#allocation6 + $0x220] sm:$0xff] }
 0x138   :  { %4276 = vst [vmem:[#allocation47_spill] sm:$0xff] %v3091_v20  ;;  %1119 = vmatpush.msrb.mxu1 %v3110_v41  ;;  %1021 = vmatmul.f32.gmra.mxu0 %v3119_v22 }
 0x139   :  { %4277 = vst [vmem:[#allocation48_spill] sm:$0xff] %v3094_v5  ;;  %v3113_v5 = vld [vmem:[#allocation6 + $0x370] sm:$0xff]  ;;  %1067 = vmatmul.f32.gmra.mxu2 %v3119_v22  ;;  %1090 = vmatmul.f32.gmra.mxu3 %v3119_v22 }
 0x13a   :  { %4278 = vst [vmem:[#allocation49_spill] sm:$0xff] %v3097_v27  ;;  %1142 = vmatpush.msrb.mxu2 %v3113_v5  ;;  %v3116_v27 = vld [vmem:[#allocation6 + $0x378] sm:$0xff]  ;;  %1120 = vmatpush.msrb.mxu1 %v3124_v40 }
 0x13b   :  { %4279 = vst [vmem:[#allocation50_spill] sm:$0xff] %v3100_v25  ;;  %1165 = vmatpush.msrb.mxu3 %v3116_v27 }
 0x13c   :  { %4280 = vst [vmem:[#allocation51_spill] sm:$0xff] %v3103_v39  ;;  %v3159_v39 = vld [vmem:[#allocation6 + $0x2a0] sm:$0xff] }
 0x13d   :  { %4281 = vst [vmem:[#allocation52_spill] sm:$0xff] %v3105_v16  ;;  %v3156_v16 = vld [vmem:[#allocation6 + $0x2f8] sm:$0xff] }
 0x13e   :  { %4282 = vst [vmem:[#allocation53_spill] sm:$0xff] %v3107_v18  ;;  %v3153_v18 = vld [vmem:[#allocation6 + $0x2f0] sm:$0xff] }
 0x13f   :  { %4283 = vst [vmem:[#allocation54_spill] sm:$0xff] %v3110_v41  ;;  %v3131_v41 = vperm.slane %v2793_v60, 5 }
 0x140   :  { %4284 = vst [vmem:[#allocation55_spill] sm:$0xff] %v3113_v5  ;;  %v3133_v5 = vld [vmem:[#allocation6 + $0x330] sm:$0xff] }
 0x141   :  { %4285 = vst [vmem:[#allocation56_spill] sm:$0xff] %v3116_v27  ;;  %1143 = vmatpush.msrb.mxu2 %v3133_v5  ;;  %v3136_v27 = vld [vmem:[#allocation6 + $0x338] sm:$0xff] }
 0x142   :  { %4286 = vst [vmem:[#allocation57_spill] sm:$0xff] %v3121_v42  ;;  %1166 = vmatpush.msrb.mxu3 %v3136_v27  ;;  %v3146_v42 = vld [vmem:[#allocation6 + $0x2e8] sm:$0xff] }
 0x143   :  { %4287 = vst [vmem:[#allocation58_spill] sm:$0xff] %v3124_v40  ;;  %v3143_v40 = vld [vmem:[#allocation6 + $0x2e0] sm:$0xff]  ;;  %1121 = vmatpush.msrb.mxu1 %v3146_v42  ;;  %1144 = vmatpush.msrb.mxu2 %v3153_v18 }
 0x144   :  { %4288 = vst [vmem:[#allocation59_spill] sm:$0xff] %v3131_v41  ;;  %1098 = vmatpush.msrb.mxu0 %v3143_v40  ;;  %1167 = vmatpush.msrb.mxu3 %v3156_v16 }
 0x145   :  { %4289 = vst [vmem:[#allocation60_spill] sm:$0xff] %v3133_v5  ;;  %v339_v5 = vadd.f32 %v2753_v43, %v3128_v26  ;;  %v3166_v43 = vperm.slane %v2793_v60, 6 }
 0x146   :  { %4290 = vst [vmem:[#allocation61_spill] sm:$0xff] %v3136_v27  ;;  %v362_v27 = vadd.f32 %v2755_v44, %v3131_v41  ;;  %1099 = vmatpush.msrb.mxu0 %v3159_v39  ;;  %v3168_v44 = vld [vmem:[#allocation6 + $0x2b0] sm:$0xff] }
 0x147   :  { %4291 = vst [vmem:[#allocation62_spill] sm:$0xff] %v3143_v40  ;;  %v3162_v40 = vld [vmem:[#allocation6 + $0x2a8] sm:$0xff]  ;;  %1145 = vmatpush.msrb.mxu2 %v3168_v44 }
 0x148   :  { %4292 = vst [vmem:[#allocation63_spill] sm:$0xff] %v3146_v42  ;;  %1122 = vmatpush.msrb.mxu1 %v3162_v40  ;;  %v3177_v42 = vld [vmem:[#allocation6 + $0x260] sm:$0xff]  ;;  %v418_v20 = vmax.f32 %v362_v27, 0.0 }
 0x149   :  { %4293 = vst [vmem:[#allocation64_spill] sm:$0xff] %v3153_v18  ;;  %v3171_v18 = vld [vmem:[#allocation6 + $0x2b8] sm:$0xff]  ;;  %1100 = vmatpush.msrb.mxu0 %v3177_v42  ;;  %1146 = vmatpush.msrb.mxu2 %v3185_v17 }
 0x14a   :  { %4294 = vst [vmem:[#allocation65_spill] sm:$0xff] %v3156_v16  ;;  %1168 = vmatpush.msrb.mxu3 %v3171_v18  ;;  %v3175_v16 = vperm.slane %v2793_v60, 7  ;;  %v3188_v60 = vld [vmem:[#allocation6 + $0x278] sm:$0xff] }
 0x14b   :  { %4295 = vst [vmem:[#allocation66_spill] sm:$0xff] %v3159_v39  ;;  %v3180_v39 = vld [vmem:[#allocation6 + $0x268] sm:$0xff]  ;;  %1101 = vmatpush.msrb.mxu0 %v3191_v28 }
 0x14c   :  { %4296 = vst [vmem:[#allocation67_spill] sm:$0xff] %v3162_v40  ;;  %1123 = vmatpush.msrb.mxu1 %v3180_v39  ;;  %v417_v40 = vmax.f32 %v339_v5, 0.0  ;;  %1169 = vmatpush.msrb.mxu3 %v3188_v60  ;;  %v3194_v5 = vld [vmem:[#allocation6 + $0x228] sm:$0xff] }
 0x14d   :  { %4297 = vst [vmem:[#allocation68_spill] sm:$0xff] %v3168_v44  ;;  %v3215_v44 = vld [vmem:[#allocation6 + $0x1e0] sm:$0xff] }
 0x14e   :  { %4298 = vst [vmem:[#allocation69_spill] sm:$0xff] %v3171_v18  ;;  %v595_v18 = vpop.f32.mrf.mxu0  ;;  %1124 = vmatpush.msrb.mxu1 %v3194_v5  ;;  %1102 = vmatpush.msrb.mxu0 %v3215_v44 }
 0x14f   :  { %4299 = vst [vmem:[#allocation70_spill] sm:$0xff] %v3177_v42  ;;  %v618_v42 = vpop.f32.mrf.mxu1  ;;  %v596_v27 = vadd.f32 %v595_v18, %v3128_v26  ;;  %v3213_v18 = vadd.f32 %v2785_v55, %v3175_v16  ;;  %v3228_v55 = vld [vmem:[#allocation6 + $0x1f8] sm:$0xff] }
 0x150   :  { %4300 = vst [vmem:[#allocation71_spill] sm:$0xff] %v3180_v39  ;;  %v619_v25 = vadd.f32 %v618_v42, %v3131_v41  ;;  %v3205_v39 = vld [vmem:[#allocation6 + $0x230] sm:$0xff]  ;;  %v3218_v42 = vld [vmem:[#allocation6 + $0x1e8] sm:$0xff] }
 0x151   :  { %4301 = vst [vmem:[#allocation72_spill] sm:$0xff] %v3185_v17  ;;  %1147 = vmatpush.msrb.mxu2 %v3205_v39  ;;  %1125 = vmatpush.msrb.mxu1 %v3218_v42 }
 0x152   :  { %4302 = vst [vmem:[#allocation73_spill] sm:$0xff] %v3188_v60  ;;  %v3203_v60 = vadd.f32 %v2783_v54, %v3166_v43  ;;  %v674_v54 = vmax.f32 %v596_v27, 0.0  ;;  %v675_v17 = vmax.f32 %v619_v25, 0.0  ;;  %v3236_v25 = vld [vmem:[#allocation6 + $0x1a8] sm:$0xff] }
 0x153   :  { %4303 = vst [vmem:[#allocation74_spill] sm:$0xff] %v3191_v28  ;;  %v3208_v28 = vld [vmem:[#allocation6 + $0x238] sm:$0xff]  ;;  %1148 = vmatpush.msrb.mxu2 %v3225_v52  ;;  %1126 = vmatpush.msrb.mxu1 %v3236_v25 }
 0x154   :  { %4304 = vst [vmem:[#allocation75_spill] sm:$0xff] %v3194_v5  ;;  %1170 = vmatpush.msrb.mxu3 %v3208_v28  ;;  %v419_v27 = vmax.f32 %v3203_v60, 0.0  ;;  %v3258_v60 = vld [vmem:[#allocation6 + $0x168] sm:$0xff] }
 0x155   :  { %4305 = vst [vmem:[#allocation76_spill] sm:$0xff] %v3205_v39  ;;  %v4309_v39 = vperm.slane %v2841_v4, 4  ;;  %1127 = vmatpush.msrb.mxu1 %v3258_v60 }
 0x156   :  { %4306 = vst [vmem:[#allocation77_spill] sm:$0xff] %v3208_v28  ;;  %v454_v28 = vmul.f32 %v4310_v35, %v418_v20  ;;  %1171 = vmatpush.msrb.mxu3 %v3228_v55  ;;  %v4315_v35 = vperm.slane %v2861_v2, 4 }
 0x157   :  { %4307 = vst [vmem:[#allocation79_spill] sm:$0xff] %v3215_v44  ;;  %v453_v5 = vmul.f32 %v4309_v39, %v417_v40  ;;  %v342_v44 = vadd.f32 %v2807_v19, %v3128_v26  ;;  %v4316_v39 = vperm.slane %v2861_v2, 5  ;;  %v641_v19 = vpop.f32.mrf.mxu2 }
 0x158   :  { %4308 = vst [vmem:[#allocation80_spill] sm:$0xff] %v3218_v42  ;;  %v3233_v42 = vld [vmem:[#allocation6 + $0x1a0] sm:$0xff]  ;;  %v711_v20 = vmul.f32 %v4315_v35, %v674_v54  ;;  %v365_v54 = vadd.f32 %v2809_v31, %v3131_v41  ;;  %v642_v31 = vadd.f32 %v641_v19, %v3166_v43  ;;  %v3284_v19 = vld [vmem:[#allocation6 + $0x138] sm:$0xff] }
 0x159   :  { %4311 = vst [vmem:[#allocation81_spill] sm:$0xff] %v3225_v52  ;;  %1103 = vmatpush.msrb.mxu0 %v3233_v42  ;;  %v712_v40 = vmul.f32 %v4316_v39, %v675_v17  ;;  %v3246_v52 = vld [vmem:[#allocation6 + $0x1b0] sm:$0xff]  ;;  %v3255_v17 = vld [vmem:[#allocation6 + $0x160] sm:$0xff] }
 0x15a   :  { %4312 = vst [vmem:[#allocation82_spill] sm:$0xff] %v3228_v55  ;;  %1149 = vmatpush.msrb.mxu2 %v3246_v52  ;;  %v3261_v35 = vadd.f32 %v711_v20, %v453_v5  ;;  %v664_v55 = vpop.f32.mrf.mxu3  ;;  %v3275_v20 = vld [vmem:[#allocation6 + $0x120] sm:$0xff]  ;;  %v598_v5 = vpop.f32.mrf.mxu0 }
 0x15b   :  { %4313 = vst [vmem:[#allocation93_spill] sm:$0xff] %v3233_v42  ;;  %v3249_v42 = vld [vmem:[#allocation6 + $0x1b8] sm:$0xff]  ;;  %1104 = vmatpush.msrb.mxu0 %v3255_v17  ;;  %v3263_v39 = vadd.f32 %v712_v40, %v454_v28  ;;  %v425_v28 = vmax.f32 %v342_v44, 0.0  ;;  %v3278_v40 = vld [vmem:[#allocation6 + $0x128] sm:$0xff]  ;;  %v621_v44 = vpop.f32.mrf.mxu1 }
 0x15c   :  { %4314 = vst [vmem:[#allocation94_spill] sm:$0xff] %v3236_v25  ;;  %1172 = vmatpush.msrb.mxu3 %v3249_v42  ;;  %v420_v25 = vmax.f32 %v3213_v18, 0.0  ;;  %v3268_v18 = vld [vmem:[#allocation6 + $0x178] sm:$0xff]  ;;  %1128 = vmatpush.msrb.mxu1 %v3278_v40 }
 0x15d   :  { %4317 = vst [vmem:[#allocation95_spill] sm:$0xff] %v3246_v52  ;;  %1105 = vmatpush.msrb.mxu0 %v3275_v20  ;;  %v3299_v52 = vld [vmem:[#allocation6 + $0xf0] sm:$0xff] }
 0x15e   :  { %4318 = vst [vmem:[#allocation96_spill] sm:$0xff] %v3249_v42  ;;  %v3265_v42 = vld [vmem:[#allocation6 + $0x170] sm:$0xff]  ;;  %1173 = vmatpush.msrb.mxu3 %v3268_v18 }
 0x15f   :  { %4319 = vst [vmem:[#allocation97_spill] sm:$0xff] %v3255_v17  ;;  %1150 = vmatpush.msrb.mxu2 %v3265_v42 }
 0x160   :  { %4320 = vst [vmem:[#allocation98_spill] sm:$0xff] %v3258_v60  ;;  %v665_v60 = vadd.f32 %v664_v55, %v3175_v16  ;;  %1174 = vmatpush.msrb.mxu3 %v3284_v19  ;;  %v676_v55 = vmax.f32 %v642_v31, 0.0 }
 0x161   :  { %4321 = vst [vmem:[#allocation99_spill] sm:$0xff] %v3261_v35  ;;  %v3289_v35 = vld [vmem:[#allocation6 + $0xe0] sm:$0xff] }
 0x162   :  { %4322 = vst [vmem:[#allocation100_spill] sm:$0xff] %v3263_v39  ;;  %v677_v17 = vmax.f32 %v665_v60, 0.0  ;;  %1106 = vmatpush.msrb.mxu0 %v3289_v35  ;;  %v4332_v60 = vperm.slane %v2841_v4, 7 }
 0x163   :  { %4323 = vst [vmem:[#allocation101_spill] sm:$0xff] %v3265_v42  ;;  %v3281_v42 = vld [vmem:[#allocation6 + $0x130] sm:$0xff] }
 0x164   :  { %4324 = vst [vmem:[#allocation102_spill] sm:$0xff] %v3268_v18  ;;  %1151 = vmatpush.msrb.mxu2 %v3281_v42  ;;  %v4329_v18 = vperm.slane %v2841_v4, 6  ;;  %v456_v31 = vmul.f32 %v4332_v60, %v420_v25  ;;  %v388_v25 = vadd.f32 %v2857_v0, %v3166_v43  ;;  %v3313_v60 = vld [vmem:[#allocation6 + $0xa0] sm:$0xff] }
 0x165   :  { %4325 = vst [vmem:[#allocation103_spill] sm:$0xff] %v3275_v20  ;;  %v426_v20 = vmax.f32 %v365_v54, 0.0  ;;  %v4335_v54 = vperm.slane %v2861_v2, 6  ;;  %1107 = vmatpush.msrb.mxu0 %v3313_v60 }
 0x166   :  { %4326 = vst [vmem:[#allocation104_spill] sm:$0xff] %v3278_v40  ;;  %v455_v39 = vmul.f32 %v4329_v18, %v419_v27  ;;  %v3292_v40 = vld [vmem:[#allocation6 + $0xe8] sm:$0xff]  ;;  %1152 = vmatpush.msrb.mxu2 %v3299_v52  ;;  %v3302_v27 = vld [vmem:[#allocation6 + $0xf8] sm:$0xff] }
 0x167   :  { %4327 = vst [vmem:[#allocation105_spill] sm:$0xff] %v3281_v42  ;;  %1129 = vmatpush.msrb.mxu1 %v3292_v40  ;;  %v599_v42 = vadd.f32 %v598_v5, %v3128_v26  ;;  %1175 = vmatpush.msrb.mxu3 %v3302_v27  ;;  %v713_v18 = vmul.f32 %v4335_v54, %v676_v55  ;;  %v4337_v5 = vperm.slane %v2841_v4, 4  ;;  %v4340_v54 = vperm.slane %v2841_v4, 5 }
 0x168   :  { %4328 = vst [vmem:[#allocation106_spill] sm:$0xff] %v3284_v19  ;;  %v622_v19 = vadd.f32 %v621_v44, %v3131_v41  ;;  %v411_v55 = vadd.f32 %v2859_v9, %v3175_v16  ;;  %v3336_v9 = vld [vmem:[#allocation6 + $0x68] sm:$0xff] }
 0x169   :  { %4330 = vst [vmem:[#allocation107_spill] sm:$0xff] %v3289_v35  ;;  %v461_v44 = vmul.f32 %v4337_v5, %v425_v28  ;;  %v3324_v28 = vld [vmem:[#allocation6 + $0xb8] sm:$0xff]  ;;  %v3327_v0 = vadd.f32 %v713_v18, %v455_v39  ;;  %v462_v5 = vmul.f32 %v4340_v54, %v426_v20  ;;  %v3343_v18 = vld [vmem:[#allocation6 + $0x70] sm:$0xff]  ;;  %v427_v20 = vmax.f32 %v388_v25, 0.0  ;;  %v3352_v54 = vld [vmem:[#allocation6 + $0x28] sm:$0xff] }
 0x16a   :  { %4331 = vst [vmem:[#allocation108_spill] sm:$0xff] %v3292_v40  ;;  %v4336_v40 = vperm.slane %v2861_v2, 7  ;;  %v683_v41 = vmax.f32 %v622_v19, 0.0  ;;  %1176 = vmatpush.msrb.mxu3 %v3324_v28  ;;  %v4342_v19 = vperm.slane %v2861_v2, 4  ;;  %v3362_v25 = vld [vmem:[#allocation6 + $0x38] sm:$0xff] }
 0x16b   :  { %4333 = vst [vmem:[#allocation109_spill] sm:$0xff] %v3299_v52  ;;  %v3316_v52 = vld [vmem:[#allocation6 + $0xa8] sm:$0xff] }
 0x16c   :  { %4334 = vst [vmem:[#allocation110_spill] sm:$0xff] %v3302_v27  ;;  %v714_v35 = vmul.f32 %v4336_v40, %v677_v17  ;;  %1130 = vmatpush.msrb.mxu1 %v3316_v52  ;;  %v682_v27 = vmax.f32 %v599_v42, 0.0  ;;  %v3321_v17 = vld [vmem:[#allocation6 + $0xb0] sm:$0xff]  ;;  %v3333_v42 = vld [vmem:[#allocation6 + $0x60] sm:$0xff] }
 0x16d   :  { %4338 = vst [vmem:[#allocation111_spill] sm:$0xff] %v3321_v17  ;;  %1153 = vmatpush.msrb.mxu2 %v3321_v17  ;;  %1108 = vmatpush.msrb.mxu0 %v3333_v42 }
 0x16e   :  { %4339 = vst [vmem:[#allocation112_spill] sm:$0xff] %v3324_v28  ;;  %v3329_v40 = vadd.f32 %v714_v35, %v456_v31  ;;  %1131 = vmatpush.msrb.mxu1 %v3336_v9  ;;  %v719_v17 = vmul.f32 %v4342_v19, %v682_v27  ;;  %v4343_v28 = vperm.slane %v2861_v2, 5  ;;  %v3346_v35 = vld [vmem:[#allocation6 + $0x78] sm:$0xff]  ;;  %v3349_v31 = vld [vmem:[#allocation6 + $0x20] sm:$0xff]  ;;  %v667_v19 = vpop.f32.mrf.mxu3 }
 0x16f   :  { %4341 = vst [vmem:[#allocation113_spill] sm:$0xff] %v3336_v9  ;;  %1154 = vmatpush.msrb.mxu2 %v3343_v18  ;;  %1177 = vmatpush.msrb.mxu3 %v3346_v35  ;;  %v3359_v9 = vld [vmem:[#allocation6 + $0x30] sm:$0xff] }
 0x170   :  { %v720_v39 = vmul.f32 %v4343_v28, %v683_v41  ;;  %4344 = vst [vmem:[#allocation114_spill] sm:$0xff] %v3343_v18  ;;  %1109 = vmatpush.msrb.mxu0 %v3349_v31  ;;  %1132 = vmatpush.msrb.mxu1 %v3352_v54  ;;  %v3355_v27 = vadd.f32 %v719_v17, %v461_v44  ;;  %v644_v28 = vpop.f32.mrf.mxu2  ;;  %v428_v18 = vmax.f32 %v411_v55, 0.0  ;;  %v4348_v17 = vperm.slane %v2841_v4, 6 }
 0x171   :  { %4345 = vst [vmem:[#allocation115_spill] sm:$0xff] %v3346_v35  ;;  %1155 = vmatpush.msrb.mxu2 %v3359_v9  ;;  %1178 = vmatpush.msrb.mxu3 %v3362_v25  ;;  %v668_v35 = vadd.f32 %v667_v19, %v3175_v16  ;;  %v4350_v19 = vperm.slane %v2861_v2, 6 }
 0x172   :  { %4346 = vst [vmem:[#allocation116_spill] sm:$0xff] %v3349_v31  ;;  %v3357_v41 = vadd.f32 %v720_v39, %v462_v5  ;;  %v645_v31 = vadd.f32 %v644_v28, %v3166_v43  ;;  %1110 = vmatmul.f32.vlgmr.msrb.gmra.mxu0 %v3047_v21  ;;  %1133 = vmatmul.f32.vlgmr.msrb.gmra.mxu1 %v3047_v21  ;;  %v4349_v39 = vperm.slane %v2841_v4, 7 }
 0x173   :  { %1156 = vmatmul.f32.vlgmr.msrb.gmra.mxu2 %v3047_v21  ;;  %1179 = vmatmul.f32.vlgmr.msrb.gmra.mxu3 %v3047_v21  ;;  %v685_v55 = vmax.f32 %v668_v35, 0.0  ;;  %v463_v5 = vmul.f32 %v4348_v17, %v427_v20  ;;  %v4351_v21 = vperm.slane %v2861_v2, 7 }
 0x174   :  { %4347 = vst [vmem:[#allocation117_spill] sm:$0xff] %v3357_v41  ;;  %v684_v44 = vmax.f32 %v645_v31, 0.0  ;;  %1260 = vmatpush.msra.mxu0 %v2765_v45  ;;  %1283 = vmatpush.msra.mxu1 %v2768_v46  ;;  %v464_v28 = vmul.f32 %v4349_v39, %v428_v18 }
 0x175   :  { %1306 = vmatpush.msra.mxu2 %v2771_v47  ;;  %1329 = vmatpush.msra.mxu3 %v2774_v50  ;;  %v722_v35 = vmul.f32 %v4351_v21, %v685_v55  ;;  %v945_v47 = vld [vmem:[#allocation9 + $0x2] ss:$8 sm:$0xf] }
 0x176   :  { %v721_v41 = vmul.f32 %v4350_v19, %v684_v44  ;;  %1261 = vmatpush.msra.mxu0 %v2777_v51  ;;  %1284 = vmatpush.msra.mxu1 %v2780_v53  ;;  %v946_v50 = vld [vmem:[#allocation9 + $0x2] ss:$8 sm:$0xf0]  ;;  %v761_v53 = vpop.f32.mrf.mxu0  ;;  %v830_v31 = vpop.f32.mrf.mxu3 }
 0x177   :  { %1307 = vmatpush.msra.mxu2 %v2787_v57  ;;  %1330 = vmatpush.msra.mxu3 %v2790_v59  ;;  %v3389_v46 = vadd.f32 %v722_v35, %v464_v28  ;;  %v3409_v51 = vor.u32 %v946_v50, %v945_v47  ;;  %v784_v57 = vpop.f32.mrf.mxu1  ;;  %v4354_v59 = vld [vmem:[#allocation83_spill] sm:$0xff]  ;;  %v4371_v44 = vld [vmem:[#allocation22_spill] sm:$0xff]  ;;  %v4373_v19 = vld [vmem:[#allocation24_spill] sm:$0xff] }
 0x178   :  { %v3387_v45 = vadd.f32 %v721_v41, %v463_v5  ;;  %1262 = vmatpush.msra.mxu0 %v2795_v61  ;;  %1285 = vmatpush.msra.mxu1 %v2798_v62  ;;  %v762_v61 = vadd.f32 %v761_v53, %v2818_v34  ;;  %v807_v20 = vpop.f32.mrf.mxu2  ;;  %v4370_v41 = vld [vmem:[#allocation21_spill] sm:$0xff]  ;;  %v831_v5 = vadd.f32 %v830_v31, %v2873_v13  ;;  %v4372_v28 = vld [vmem:[#allocation23_spill] sm:$0xff]  ;;  %v4375_v35 = vld [vmem:[#allocation26_spill] sm:$0xff] }
 0x179   :  { %4353 = vst [vmem:[#allocation119_spill] sm:$0xff] %v3389_v46  ;;  %1308 = vmatpush.msra.mxu2 %v2801_v63  ;;  %1331 = vmatpush.msra.mxu3 %v2804_v58  ;;  %v949_v62 = vperm.slane %v3409_v51, 0  ;;  %v4355_v63 = vld [vmem:[#allocation78_spill] sm:$0xff]  ;;  %v808_v55 = vadd.f32 %v807_v20, %v2864_v10  ;;  %v951_v17 = vperm.slane %v3409_v51, 2  ;;  %v952_v39 = vperm.slane %v3409_v51, 3  ;;  %v4374_v21 = vld [vmem:[#allocation25_spill] sm:$0xff] }
 0x17a   :  { %4352 = vst [vmem:[#allocation118_spill] sm:$0xff] %v3387_v45  ;;  %1263 = vmatpush.msra.mxu0 %v2811_v32  ;;  %1286 = vmatpush.msra.mxu1 %v2814_v33  ;;  %v785_v58 = vadd.f32 %v784_v57, %v4355_v63  ;;  %v950_v32 = vperm.slane %v3409_v51, 1  ;;  %v4356_v33 = vld [vmem:[#allocation84_spill] sm:$0xff]  ;;  %v931_v50 = vmax.f32 %v831_v5, 0.0 }
 0x17b   :  { %1309 = vmatpush.msra.mxu2 %v2823_v37  ;;  %1332 = vmatpush.msra.mxu3 %v2826_v38  ;;  %v4357_v37 = vld [vmem:[#allocation85_spill] sm:$0xff]  ;;  %v4358_v38 = vld [vmem:[#allocation86_spill] sm:$0xff]  ;;  %v930_v47 = vmax.f32 %v808_v55, 0.0 }
 0x17c   :  { %1113 = vmatmul.f32.gmra.mxu0 %v3119_v22  ;;  %1136 = vmatmul.f32.gmra.mxu1 %v3119_v22  ;;  %v929_v4 = vmax.f32 %v785_v58, 0.0 }
 0x17d   :  { %1159 = vmatmul.f32.gmra.mxu2 %v3119_v22  ;;  %1182 = vmatmul.f32.gmra.mxu3 %v3119_v22  ;;  %v4369_v22 = vld [vmem:[#allocation20_spill] sm:$0xff] }
 0x17e   :  { %1264 = vmatpush.msra.mxu0 %v2833_v49  ;;  %1287 = vmatpush.msra.mxu1 %v2836_v56  ;;  %v4359_v49 = vld [vmem:[#allocation87_spill] sm:$0xff]  ;;  %v928_v56 = vmax.f32 %v762_v61, 0.0  ;;  %v764_v53 = vpop.f32.mrf.mxu0  ;;  %v4377_v61 = vld [vmem:[#allocation28_spill] sm:$0xff] }
 0x17f   :  { %1310 = vmatpush.msra.mxu2 %v2845_v6  ;;  %1333 = vmatpush.msra.mxu3 %v2848_v36  ;;  %v4360_v6 = vld [vmem:[#allocation88_spill] sm:$0xff]  ;;  %v4361_v36 = vld [vmem:[#allocation89_spill] sm:$0xff]  ;;  %v787_v57 = vpop.f32.mrf.mxu1  ;;  %v765_v58 = vadd.f32 %v764_v53, %v2818_v34 }
 0x180   :  { %1265 = vmatpush.msra.mxu0 %v2851_v7  ;;  %1288 = vmatpush.msra.mxu1 %v2854_v8  ;;  %v4362_v7 = vld [vmem:[#allocation90_spill] sm:$0xff]  ;;  %v4363_v8 = vld [vmem:[#allocation91_spill] sm:$0xff]  ;;  %v965_v2 = vmul.f32 %v949_v62, %v928_v56  ;;  %v968_v56 = vmul.f32 %v952_v39, %v931_v50 }
 0x181   :  { %1311 = vmatpush.msra.mxu2 %v2866_v11  ;;  %1334 = vmatpush.msra.mxu3 %v2869_v12  ;;  %v966_v11 = vmul.f32 %v950_v32, %v929_v4  ;;  %v4364_v12 = vld [vmem:[#allocation92_spill] sm:$0xff]  ;;  %v936_v4 = vmax.f32 %v765_v58, 0.0  ;;  %v4396_v50 = vld [vmem:[#allocation46_spill] sm:$0xff]  ;;  %v4399_v58 = vld [vmem:[#allocation49_spill] sm:$0xff] }
 0x182   :  { %1266 = vmatpush.msra.mxu0 %v2875_v14  ;;  %1289 = vmatpush.msra.mxu1 %v2878_v15  ;;  %v4365_v14 = vld [vmem:[#allocation16_spill] sm:$0xff]  ;;  %v4366_v15 = vld [vmem:[#allocation17_spill] sm:$0xff] }
 0x183   :  { %1312 = vmatpush.msra.mxu2 %v2883_v23  ;;  %1335 = vmatpush.msra.mxu3 %v2886_v24  ;;  %v4367_v23 = vld [vmem:[#allocation18_spill] sm:$0xff]  ;;  %v4368_v24 = vld [vmem:[#allocation19_spill] sm:$0xff]  ;;  %v3439_v18 = vadd.f32 %v966_v11, %v4369_v22  ;;  %v4382_v11 = vld [vmem:[#allocation33_spill] sm:$0xff] }
 0x184   :  { %1267 = vmatpush.msra.mxu0 %v2889_v29  ;;  %1290 = vmatpush.msra.mxu1 %v4354_v59  ;;  %v3436_v29 = vadd.f32 %v965_v2, %v4368_v24  ;;  %v4376_v59 = vld [vmem:[#allocation27_spill] sm:$0xff]  ;;  %v3465_v2 = vadd.f32 %v968_v56, %v3027_v3  ;;  %v4387_v24 = vld [vmem:[#allocation37_spill] sm:$0xff]  ;;  %v4388_v22 = vld [vmem:[#allocation38_spill] sm:$0xff] }
 0x185   :  { %1313 = vmatpush.msra.mxu2 %v4356_v33  ;;  %1336 = vmatpush.msra.mxu3 %v4357_v37  ;;  %v788_v33 = vadd.f32 %v787_v57, %v4355_v63  ;;  %v4378_v37 = vld [vmem:[#allocation29_spill] sm:$0xff]  ;;  %v4390_v3 = vld [vmem:[#allocation40_spill] sm:$0xff] }
 0x186   :  { %1268 = vmatpush.msra.mxu0 %v4358_v38  ;;  %1291 = vmatpush.msra.mxu1 %v4359_v49  ;;  %v4379_v38 = vld [vmem:[#allocation30_spill] sm:$0xff]  ;;  %v967_v49 = vmul.f32 %v951_v17, %v930_v47  ;;  %v4395_v47 = vld [vmem:[#allocation45_spill] sm:$0xff] }
 0x187   :  { %1314 = vmatpush.msra.mxu2 %v4360_v6  ;;  %1337 = vmatpush.msra.mxu3 %v4361_v36  ;;  %v937_v6 = vmax.f32 %v788_v33, 0.0  ;;  %v4380_v36 = vld [vmem:[#allocation31_spill] sm:$0xff]  ;;  %v4400_v33 = vld [vmem:[#allocation50_spill] sm:$0xff] }
 0x188   :  { %1269 = vmatpush.msra.mxu0 %v4362_v7  ;;  %1292 = vmatpush.msra.mxu1 %v4363_v8  ;;  %v4381_v7 = vld [vmem:[#allocation32_spill] sm:$0xff]  ;;  %v3462_v8 = vadd.f32 %v967_v49, %v3025_v1  ;;  %v4389_v1 = vld [vmem:[#allocation39_spill] sm:$0xff] }
 0x189   :  { %1315 = vmatpush.msra.mxu2 %v4364_v12  ;;  %1338 = vmatpush.msra.mxu3 %v4365_v14  ;;  %v4383_v12 = vld [vmem:[#allocation34_spill] sm:$0xff]  ;;  %v973_v14 = vmul.f32 %v949_v62, %v936_v4  ;;  %v4391_v62 = vld [vmem:[#allocation41_spill] sm:$0xff]  ;;  %v4402_v49 = vld [vmem:[#allocation52_spill] sm:$0xff] }
 0x18a   :  { %1270 = vmatpush.msra.mxu0 %v4366_v15  ;;  %1293 = vmatpush.msra.mxu1 %v4367_v23  ;;  %v4384_v15 = vld [vmem:[#allocation35_spill] sm:$0xff]  ;;  %v3471_v23 = vld [vmem:[#allocation3 + $0x40] sm:$0xff] }
 0x18b   :  { %1316 = vmatpush.msra.mxu2 %v4370_v41  ;;  %1339 = vmatpush.msra.mxu3 %v4371_v44  ;;  %4386 = vst [vmem:[#allocation83_spill] sm:$0xff] %v3471_v23  ;;  %v3476_v20 = vadd.f32 %v973_v14, %v4389_v1  ;;  %v810_v41 = vpop.f32.mrf.mxu2  ;;  %v833_v44 = vpop.f32.mrf.mxu3  ;;  %v4403_v4 = vld [vmem:[#allocation53_spill] sm:$0xff]  ;;  %v4417_v1 = vld [vmem:[#allocation67_spill] sm:$0xff] }
 0x18c   :  { %1271 = vmatpush.msra.mxu0 %v4372_v28  ;;  %1294 = vmatpush.msra.mxu1 %v4373_v19  ;;  %v811_v55 = vadd.f32 %v810_v41, %v2864_v10  ;;  %v834_v5 = vadd.f32 %v833_v44, %v2873_v13  ;;  %v4411_v14 = vld [vmem:[#allocation61_spill] sm:$0xff]  ;;  %v4420_v44 = vld [vmem:[#allocation70_spill] sm:$0xff] }
 0x18d   :  { %1317 = vmatpush.msra.mxu2 %v4374_v21  ;;  %1340 = vmatpush.msra.mxu3 %v4375_v35  ;;  %v4393_v21 = vld [vmem:[#allocation43_spill] sm:$0xff]  ;;  %v4394_v35 = vld [vmem:[#allocation44_spill] sm:$0xff]  ;;  %v4419_v41 = vld [vmem:[#allocation69_spill] sm:$0xff] }
 0x18e   :  { %1272 = vmatpush.msra.mxu0 %v4376_v59  ;;  %1295 = vmatpush.msra.mxu1 %v4377_v61  ;;  %v938_v28 = vmax.f32 %v811_v55, 0.0  ;;  %v939_v19 = vmax.f32 %v834_v5, 0.0  ;;  %v4397_v59 = vld [vmem:[#allocation47_spill] sm:$0xff]  ;;  %v4398_v61 = vld [vmem:[#allocation48_spill] sm:$0xff]  ;;  %v4423_v55 = vld [vmem:[#allocation73_spill] sm:$0xff]  ;;  %v853_v5 = vpop.f32.mrf.mxu0 }
 0x18f   :  { %1318 = vmatpush.msra.mxu2 %v4378_v37  ;;  %1341 = vmatpush.msra.mxu3 %v4379_v38  ;;  %v4401_v37 = vld [vmem:[#allocation51_spill] sm:$0xff] }
 0x190   :  { %1273 = vmatpush.msra.mxu0 %v3011_v48  ;;  %1296 = vmatpush.msra.mxu1 %v3014_v30  ;;  %v974_v48 = vmul.f32 %v950_v32, %v937_v6  ;;  %v4385_v30 = vld [vmem:[#allocation36_spill] sm:$0xff]  ;;  %v4392_v32 = vld [vmem:[#allocation42_spill] sm:$0xff]  ;;  %v975_v53 = vmul.f32 %v951_v17, %v938_v28  ;;  %v976_v57 = vmul.f32 %v952_v39, %v939_v19  ;;  %v4405_v17 = vld [vmem:[#allocation55_spill] sm:$0xff]  ;;  %v876_v28 = vpop.f32.mrf.mxu1 }
 0x191   :  { %1319 = vmatpush.msra.mxu2 %v4380_v36  ;;  %1342 = vmatpush.msra.mxu3 %v4381_v7  ;;  %v4404_v6 = vld [vmem:[#allocation54_spill] sm:$0xff]  ;;  %v4406_v39 = vld [vmem:[#allocation56_spill] sm:$0xff]  ;;  %v4408_v7 = vld [vmem:[#allocation57_spill] sm:$0xff] }
 0x192   :  { %1274 = vmatpush.msra.mxu0 %v4382_v11  ;;  %1297 = vmatpush.msra.mxu1 %v4383_v12  ;;  %v3479_v31 = vadd.f32 %v974_v48, %v4390_v3  ;;  %v3498_v38 = vadd.f32 %v975_v53, %v4401_v37  ;;  %v3501_v56 = vadd.f32 %v976_v57, %v4402_v49  ;;  %v3507_v36 = vld [vmem:[#allocation3 + $0x48] sm:$0xff]  ;;  %v4410_v12 = vld [vmem:[#allocation60_spill] sm:$0xff]  ;;  %v4005_v57 = vperm.slane %v3409_v51, 5 }
 0x193   :  { %1320 = vmatpush.msra.mxu2 %v4384_v15  ;;  %1343 = vmatpush.msra.mxu3 %v4385_v30  ;;  %4407 = vst [vmem:[#allocation78_spill] sm:$0xff] %v3507_v36  ;;  %v4409_v11 = vld [vmem:[#allocation58_spill] sm:$0xff]  ;;  %v4413_v15 = vld [vmem:[#allocation63_spill] sm:$0xff]  ;;  %v4414_v30 = vld [vmem:[#allocation64_spill] sm:$0xff] }
 0x194   :  { %1275 = vmatpush.msra.mxu0 %v4387_v24  ;;  %1298 = vmatpush.msra.mxu1 %v4388_v22  ;;  %v4412_v48 = vld [vmem:[#allocation62_spill] sm:$0xff]  ;;  %v4415_v24 = vld [vmem:[#allocation65_spill] sm:$0xff]  ;;  %v4418_v3 = vld [vmem:[#allocation68_spill] sm:$0xff] }
 0x195   :  { %1321 = vmatpush.msra.mxu2 %v4391_v62  ;;  %1344 = vmatpush.msra.mxu3 %v4392_v32  ;;  %v4416_v22 = vld [vmem:[#allocation66_spill] sm:$0xff]  ;;  %v4421_v62 = vld [vmem:[#allocation71_spill] sm:$0xff]  ;;  %v4422_v32 = vld [vmem:[#allocation72_spill] sm:$0xff] }
 0x196   :  { %1276 = vmatmul.f32.vlgmr.msra.gmra.mxu0 %v3471_v23  ;;  %1299 = vmatmul.f32.vlgmr.msra.gmra.mxu1 %v3471_v23  ;;  %v4424_v19 = vld [vmem:[#allocation74_spill] sm:$0xff] }
 0x197   :  { %1322 = vmatmul.f32.vlgmr.msra.gmra.mxu2 %v3471_v23  ;;  %1345 = vmatmul.f32.vlgmr.msra.gmra.mxu3 %v3471_v23 }
 0x198   :  { %1352 = vmatpush.msrb.mxu0 %v4393_v21  ;;  %1375 = vmatpush.msrb.mxu1 %v4394_v35  ;;  %v4425_v21 = vld [vmem:[#allocation75_spill] sm:$0xff]  ;;  %v854_v35 = vadd.f32 %v853_v5, %v3128_v26 }
 0x199   :  { %1398 = vmatpush.msrb.mxu2 %v4395_v47  ;;  %1421 = vmatpush.msrb.mxu3 %v4396_v50  ;;  %v4006_v47 = vperm.slane %v3409_v51, 4  ;;  %v4426_v50 = vld [vmem:[#allocation59_spill] sm:$0xff] }
 0x19a   :  { %1353 = vmatpush.msrb.mxu0 %v4397_v59  ;;  %1376 = vmatpush.msrb.mxu1 %v4398_v61  ;;  %v877_v53 = vadd.f32 %v876_v28, %v4426_v50  ;;  %v4427_v59 = vld [vmem:[#allocation76_spill] sm:$0xff]  ;;  %v4428_v61 = vld [vmem:[#allocation77_spill] sm:$0xff]  ;;  %v932_v37 = vmax.f32 %v854_v35, 0.0  ;;  %v4003_v28 = vperm.slane %v3409_v51, 7 }
 0x19b   :  { %1399 = vmatpush.msrb.mxu2 %v4399_v58  ;;  %1422 = vmatpush.msrb.mxu3 %v4400_v33  ;;  %v4429_v58 = vld [vmem:[#allocation79_spill] sm:$0xff]  ;;  %v4430_v33 = vld [vmem:[#allocation80_spill] sm:$0xff]  ;;  %v4445_v35 = vld [vmem:[#allocation105_spill] sm:$0xff] }
 0x19c   :  { %1354 = vmatpush.msrb.mxu0 %v4403_v4  ;;  %1377 = vmatpush.msrb.mxu1 %v4404_v6  ;;  %v933_v49 = vmax.f32 %v877_v53, 0.0  ;;  %v4431_v4 = vld [vmem:[#allocation81_spill] sm:$0xff]  ;;  %v4432_v6 = vld [vmem:[#allocation82_spill] sm:$0xff] }
 0x19d   :  { %1400 = vmatpush.msrb.mxu2 %v4405_v17  ;;  %1423 = vmatpush.msrb.mxu3 %v4406_v39  ;;  %v4433_v17 = vld [vmem:[#allocation93_spill] sm:$0xff]  ;;  %v4434_v39 = vld [vmem:[#allocation94_spill] sm:$0xff] }
 0x19e   :  { %1355 = vmatpush.msrb.mxu0 %v4408_v7  ;;  %1378 = vmatpush.msrb.mxu1 %v4409_v11  ;;  %v969_v7 = vmul.f32 %v4006_v47, %v932_v37  ;;  %v970_v11 = vmul.f32 %v4005_v57, %v933_v49  ;;  %v4446_v53 = vld [vmem:[#allocation106_spill] sm:$0xff]  ;;  %v4449_v37 = vld [vmem:[#allocation109_spill] sm:$0xff] }
 0x19f   :  { %1401 = vmatpush.msrb.mxu2 %v4410_v12  ;;  %1424 = vmatpush.msrb.mxu3 %v4411_v14  ;;  %v4435_v12 = vld [vmem:[#allocation95_spill] sm:$0xff]  ;;  %v4436_v14 = vld [vmem:[#allocation96_spill] sm:$0xff]  ;;  %v4450_v49 = vld [vmem:[#allocation110_spill] sm:$0xff] }
 0x1a0   :  { %1279 = vmatmul.f32.gmra.mxu0 %v3507_v36  ;;  %1302 = vmatmul.f32.gmra.mxu1 %v3507_v36 }
 0x1a1   :  { %1325 = vmatmul.f32.gmra.mxu2 %v3507_v36  ;;  %1348 = vmatmul.f32.gmra.mxu3 %v3507_v36 }
 0x1a2   :  { %1356 = vmatpush.msrb.mxu0 %v4412_v48  ;;  %1379 = vmatpush.msrb.mxu1 %v4413_v15  ;;  %v4437_v48 = vld [vmem:[#allocation97_spill] sm:$0xff]  ;;  %v4438_v15 = vld [vmem:[#allocation98_spill] sm:$0xff] }
 0x1a3   :  { %1402 = vmatpush.msrb.mxu2 %v4414_v30  ;;  %1425 = vmatpush.msrb.mxu3 %v4415_v24  ;;  %v4439_v30 = vld [vmem:[#allocation99_spill] sm:$0xff] }
 0x1a4   :  { %1357 = vmatpush.msrb.mxu0 %v4416_v22  ;;  %1380 = vmatpush.msrb.mxu1 %v4417_v1  ;;  %v3552_v24 = vadd.f32 %v969_v7, %v4439_v30  ;;  %v4440_v22 = vld [vmem:[#allocation100_spill] sm:$0xff] }
 0x1a5   :  { %1403 = vmatpush.msrb.mxu2 %v4418_v3  ;;  %1426 = vmatpush.msrb.mxu3 %v4419_v41  ;;  %v3555_v1 = vadd.f32 %v970_v11, %v4440_v22  ;;  %v899_v3 = vpop.f32.mrf.mxu2  ;;  %v922_v41 = vpop.f32.mrf.mxu3 }
 0x1a6   :  { %1358 = vmatpush.msrb.mxu0 %v4420_v44  ;;  %1381 = vmatpush.msrb.mxu1 %v4421_v62  ;;  %v4441_v44 = vld [vmem:[#allocation101_spill] sm:$0xff]  ;;  %v4442_v62 = vld [vmem:[#allocation102_spill] sm:$0xff]  ;;  %v923_v5 = vadd.f32 %v922_v41, %v3175_v16 }
 0x1a7   :  { %1404 = vmatpush.msrb.mxu2 %v4422_v32  ;;  %1427 = vmatpush.msrb.mxu3 %v4423_v55  ;;  %v900_v32 = vadd.f32 %v899_v3, %v3166_v43  ;;  %v4004_v55 = vperm.slane %v3409_v51, 6 }
 0x1a8   :  { %1359 = vmatpush.msrb.mxu0 %v4424_v19  ;;  %1382 = vmatpush.msrb.mxu1 %v4425_v21  ;;  %v4443_v19 = vld [vmem:[#allocation103_spill] sm:$0xff]  ;;  %v4444_v21 = vld [vmem:[#allocation104_spill] sm:$0xff] }
 0x1a9   :  { %1405 = vmatpush.msrb.mxu2 %v4427_v59  ;;  %1428 = vmatpush.msrb.mxu3 %v4428_v61  ;;  %v934_v59 = vmax.f32 %v900_v32, 0.0  ;;  %v935_v61 = vmax.f32 %v923_v5, 0.0  ;;  %v1203_v32 = vld [vmem:[#allocation9 + $0x3] ss:$8 sm:$0xf] }
 0x1aa   :  { %1360 = vmatpush.msrb.mxu0 %v4429_v58  ;;  %1383 = vmatpush.msrb.mxu1 %v4430_v33  ;;  %v4447_v58 = vld [vmem:[#allocation107_spill] sm:$0xff]  ;;  %v4448_v33 = vld [vmem:[#allocation108_spill] sm:$0xff] }
 0x1ab   :  { %1406 = vmatpush.msrb.mxu2 %v4431_v4  ;;  %1429 = vmatpush.msrb.mxu3 %v4432_v6  ;;  %v971_v4 = vmul.f32 %v4004_v55, %v934_v59  ;;  %v972_v6 = vmul.f32 %v4003_v28, %v935_v61  ;;  %v1204_v5 = vld [vmem:[#allocation9 + $0x3] ss:$8 sm:$0xf0] }
 0x1ac   :  { %1361 = vmatpush.msrb.mxu0 %v4433_v17  ;;  %1384 = vmatpush.msrb.mxu1 %v4434_v39  ;;  %v4451_v17 = vld [vmem:[#allocation111_spill] sm:$0xff]  ;;  %v4452_v39 = vld [vmem:[#allocation112_spill] sm:$0xff] }
 0x1ad   :  { %1407 = vmatpush.msrb.mxu2 %v4435_v12  ;;  %1430 = vmatpush.msrb.mxu3 %v4436_v14  ;;  %v3580_v7 = vadd.f32 %v971_v4, %v3327_v0  ;;  %v3583_v11 = vadd.f32 %v972_v6, %v3329_v40  ;;  %v4455_v12 = vld [vmem:[#allocation113_spill] sm:$0xff]  ;;  %v4456_v14 = vld [vmem:[#allocation114_spill] sm:$0xff]  ;;  %v3603_v0 = vpop.f32.mrf.mxu1  ;;  %v3605_v40 = vpop.f32.mrf.mxu2 }
 0x1ae   :  { %1362 = vmatpush.msrb.mxu0 %v4437_v48  ;;  %1385 = vmatpush.msrb.mxu1 %v4438_v15  ;;  %v4457_v48 = vld [vmem:[#allocation115_spill] sm:$0xff] }
 0x1af   :  { %1408 = vmatpush.msrb.mxu2 %v4441_v44  ;;  %1431 = vmatpush.msrb.mxu3 %v4442_v62  ;;  %4453 = vst [vmem:[#allocation84_spill] sm:$0xff] %v3580_v7 }
 0x1b0   :  { %1363 = vmatpush.msrb.mxu0 %v4443_v19  ;;  %1386 = vmatpush.msrb.mxu1 %v4444_v21  ;;  %4454 = vst [vmem:[#allocation85_spill] sm:$0xff] %v3583_v11 }
 0x1b1   :  { %1409 = vmatpush.msrb.mxu2 %v4445_v35  ;;  %1432 = vmatpush.msrb.mxu3 %v4446_v53  ;;  %v3620_v53 = vor.u32 %v1204_v5, %v1203_v32 }
 0x1b2   :  { %1364 = vmatpush.msrb.mxu0 %v4447_v58  ;;  %1387 = vmatpush.msrb.mxu1 %v4448_v33  ;;  %v1461_v33 = vld [vmem:[#allocation9 + $0x4] ss:$8 sm:$0xf] }
 0x1b3   :  { %1410 = vmatpush.msrb.mxu2 %v4449_v37  ;;  %1433 = vmatpush.msrb.mxu3 %v4450_v49  ;;  %v1462_v37 = vld [vmem:[#allocation9 + $0x4] ss:$8 sm:$0xf0]  ;;  %v1207_v4 = vperm.slane %v3620_v53, 0 }
 0x1b4   :  { %1365 = vmatpush.msrb.mxu0 %v3313_v60  ;;  %1388 = vmatpush.msrb.mxu1 %v3316_v52  ;;  %v4458_v60 = vld [vmem:[#allocation116_spill] sm:$0xff]  ;;  %v3601_v52 = vpop.f32.mrf.mxu0 }
 0x1b5   :  { %1411 = vmatpush.msrb.mxu2 %v4451_v17  ;;  %1434 = vmatpush.msrb.mxu3 %v4452_v39  ;;  %v1208_v17 = vperm.slane %v3620_v53, 1  ;;  %v3629_v39 = vor.u32 %v1462_v37, %v1461_v33  ;;  %v1209_v37 = vperm.slane %v3620_v53, 2 }
 0x1b6   :  { %1366 = vmatpush.msrb.mxu0 %v3333_v42  ;;  %1389 = vmatpush.msrb.mxu1 %v4455_v12  ;;  %v3607_v42 = vpop.f32.mrf.mxu3 }
 0x1b7   :  { %1412 = vmatpush.msrb.mxu2 %v4456_v14  ;;  %1435 = vmatpush.msrb.mxu3 %v4457_v48  ;;  %v1466_v28 = vperm.slane %v3629_v39, 1 }
 0x1b8   :  { %1367 = vmatpush.msrb.mxu0 %v4458_v60  ;;  %1390 = vmatpush.msrb.mxu1 %v3352_v54  ;;  %v1042_v54 = vpop.f32.mrf.mxu1 }
 0x1b9   :  { %1413 = vmatpush.msrb.mxu2 %v3359_v9  ;;  %1436 = vmatpush.msrb.mxu3 %v3362_v25  ;;  %v1065_v25 = vpop.f32.mrf.mxu2  ;;  %v1043_v59 = vadd.f32 %v1042_v54, %v4355_v63 }
 0x1ba   :  { %1368 = vmatmul.f32.vlgmr.msrb.gmra.mxu0 %v3471_v23  ;;  %1391 = vmatmul.f32.vlgmr.msrb.gmra.mxu1 %v3471_v23  ;;  %v1066_v12 = vadd.f32 %v1065_v25, %v2864_v10 }
 0x1bb   :  { %1414 = vmatmul.f32.vlgmr.msrb.gmra.mxu2 %v3471_v23  ;;  %1437 = vmatmul.f32.vlgmr.msrb.gmra.mxu3 %v3471_v23  ;;  %v1187_v6 = vmax.f32 %v1043_v59, 0.0 }
 0x1bc   :  { %v1019_v9 = vpop.f32.mrf.mxu0  ;;  %v1188_v33 = vmax.f32 %v1066_v12, 0.0  ;;  %v1210_v12 = vperm.slane %v3620_v53, 3 }
 0x1bd   :  { %v1020_v35 = vadd.f32 %v1019_v9, %v2818_v34  ;;  %v1224_v9 = vmul.f32 %v1208_v17, %v1187_v6 }
 0x1be   :  { %v1088_v15 = vpop.f32.mrf.mxu3 }
 0x1bf   :  { %v1186_v49 = vmax.f32 %v1020_v35, 0.0  ;;  %v1465_v35 = vperm.slane %v3629_v39, 0  ;;  %v1089_v25 = vadd.f32 %v1088_v15, %v2873_v13 }
 0x1c0   :  { %v1045_v22 = vpop.f32.mrf.mxu1 }
 0x1c1   :  { %v1068_v3 = vpop.f32.mrf.mxu2  ;;  %v1223_v60 = vmul.f32 %v1207_v4, %v1186_v49  ;;  %v1046_v49 = vadd.f32 %v1045_v22, %v4355_v63  ;;  %v1189_v46 = vmax.f32 %v1089_v25, 0.0 }
 0x1c2   :  { %1371 = vmatmul.f32.gmra.mxu0 %v3507_v36  ;;  %1394 = vmatmul.f32.gmra.mxu1 %v3507_v36 }
 0x1c3   :  { %1417 = vmatmul.f32.gmra.mxu2 %v3507_v36  ;;  %1440 = vmatmul.f32.gmra.mxu3 %v3507_v36  ;;  %v1239_v47 = vadd.f32 %v1223_v60, %v3436_v29  ;;  %v1195_v11 = vmax.f32 %v1046_v49, 0.0 }
 0x1c4   :  { %v1022_v30 = vpop.f32.mrf.mxu0 }
 0x1c5   :  { %v1023_v55 = vadd.f32 %v1022_v30, %v2818_v34 }
 0x1c6   :  { %v3609_v41 = vpop.f32.mrf.mxu3 }
 0x1c7   :  { %v1194_v45 = vmax.f32 %v1023_v55, 0.0 }
 0x1ef   :  { %v3611_v44 = vpop.f32.mrf.mxu0  ;;  %v3613_v62 = vpop.f32.mrf.mxu1 }
 0x1f6   :  { %v3615_v19 = vpop.f32.mrf.mxu2  ;;  %v3617_v21 = vpop.f32.mrf.mxu3 }
 0x1f9   :  { %v3623_v61 = vpop.f32.mrf.mxu0  ;;  %v3625_v58 = vpop.f32.mrf.mxu1 }
 0x200   :  { %v3632_v14 = vpop.f32.mrf.mxu2  ;;  %v3634_v48 = vpop.f32.mrf.mxu3 }
 0x201   :  { %4459 = vst [vmem:[#allocation86_spill] sm:$0xff] %v3634_v48 }
 0x213   :  { %v1277_v54 = vpop.f32.mrf.mxu0  ;;  %v1300_v32 = vpop.f32.mrf.mxu1 }
 0x214   :  { %v1278_v5 = vadd.f32 %v1277_v54, %v2818_v34  ;;  %v1301_v59 = vadd.f32 %v1300_v32, %v4355_v63  ;;  %v1240_v54 = vadd.f32 %v1224_v9, %v3439_v18  ;;  %v1225_v32 = vmul.f32 %v1209_v37, %v1188_v33 }
 0x215   :  { %v1468_v18 = vperm.slane %v3629_v39, 3  ;;  %v1069_v9 = vadd.f32 %v1068_v3, %v2864_v10 }
 0x216   :  { %v1444_v6 = vmax.f32 %v1278_v5, 0.0  ;;  %v1445_v57 = vmax.f32 %v1301_v59, 0.0  ;;  %v1467_v5 = vperm.slane %v3629_v39, 2  ;;  %v1241_v49 = vadd.f32 %v1225_v32, %v3462_v8 }
 0x218   :  { %v1481_v23 = vmul.f32 %v1465_v35, %v1444_v6  ;;  %v1482_v36 = vmul.f32 %v1466_v28, %v1445_v57  ;;  %v1226_v57 = vmul.f32 %v1210_v12, %v1189_v46  ;;  %v1092_v6 = vadd.f32 %v3609_v41, %v2873_v13 }
 0x21a   :  { %v1497_v7 = vadd.f32 %v1481_v23, %v1239_v47  ;;  %v1498_v15 = vadd.f32 %v1482_v36, %v1240_v54  ;;  %v1323_v48 = vpop.f32.mrf.mxu2  ;;  %v1346_v30 = vpop.f32.mrf.mxu3  ;;  %v1231_v23 = vmul.f32 %v1207_v4, %v1194_v45  ;;  %v1232_v36 = vmul.f32 %v1208_v17, %v1195_v11 }
 0x21b   :  { %v1324_v22 = vadd.f32 %v1323_v48, %v2864_v10  ;;  %v1347_v29 = vadd.f32 %v1346_v30, %v2873_v13  ;;  %v1242_v3 = vadd.f32 %v1226_v57, %v3465_v2  ;;  %v1196_v30 = vmax.f32 %v1069_v9, 0.0 }
 0x21c   :  { %v1517_v60 = vadd.f32 %v1498_v15, %v1497_v7  ;;  %v1247_v45 = vadd.f32 %v1231_v23, %v3476_v20  ;;  %v1248_v11 = vadd.f32 %v1232_v36, %v3479_v31 }
 0x21d   :  { %v1446_v59 = vmax.f32 %v1324_v22, 0.0  ;;  %v1447_v33 = vmax.f32 %v1347_v29, 0.0  ;;  %v1280_v55 = vpop.f32.mrf.mxu0  ;;  %v1303_v25 = vpop.f32.mrf.mxu1 }
 0x21e   :  { %v1281_v47 = vadd.f32 %v1280_v55, %v2818_v34  ;;  %v1304_v48 = vadd.f32 %v1303_v25, %v4355_v63  ;;  %v1197_v63 = vmax.f32 %v1092_v6, 0.0  ;;  %v1212_v6 = vperm.slane %v3620_v53, 5 }
 0x21f   :  { %v1483_v54 = vmul.f32 %v1467_v5, %v1446_v59  ;;  %v1484_v7 = vmul.f32 %v1468_v18, %v1447_v33  ;;  %v1233_v33 = vmul.f32 %v1209_v37, %v1196_v30  ;;  %v857_v37 = vadd.f32 %v3601_v52, %v3128_v26 }
 0x220   :  { %v1452_v46 = vmax.f32 %v1281_v47, 0.0  ;;  %v1453_v15 = vmax.f32 %v1304_v48, 0.0  ;;  %v1234_v20 = vmul.f32 %v1210_v12, %v1197_v63  ;;  %v1135_v12 = vadd.f32 %v3613_v62, %v4426_v50 }
 0x221   :  { %v1499_v22 = vadd.f32 %v1483_v54, %v1241_v49  ;;  %v1500_v8 = vadd.f32 %v1484_v7, %v1242_v3  ;;  %v940_v49 = vmax.f32 %v857_v37, 0.0  ;;  %v1158_v52 = vadd.f32 %v3615_v19, %v3166_v43 }
 0x222   :  { %v1489_v34 = vmul.f32 %v1465_v35, %v1452_v46  ;;  %v1490_v4 = vmul.f32 %v1466_v28, %v1453_v15  ;;  %v1249_v28 = vadd.f32 %v1233_v33, %v3498_v38  ;;  %v1250_v23 = vadd.f32 %v1234_v20, %v3501_v56 }
 0x223   :  { %v1518_v17 = vadd.f32 %v1517_v60, %v1499_v22  ;;  %v880_v38 = vadd.f32 %v3603_v0, %v4426_v50  ;;  %v1211_v56 = vperm.slane %v3620_v53, 4  ;;  %v1181_v62 = vadd.f32 %v3617_v21, %v3175_v16 }
 0x224   :  { %v1505_v32 = vadd.f32 %v1489_v34, %v1247_v45  ;;  %v1506_v29 = vadd.f32 %v1490_v4, %v1248_v11  ;;  %v1326_v41 = vpop.f32.mrf.mxu2  ;;  %v1349_v59 = vpop.f32.mrf.mxu3  ;;  %v1115_v46 = vadd.f32 %v3623_v61, %v3128_v26  ;;  %v903_v0 = vadd.f32 %v3605_v40, %v3166_v43 }
 0x225   :  { %v3660_v55 = vadd.f32 %v1518_v17, %v1500_v8  ;;  %v1327_v2 = vadd.f32 %v1326_v41, %v2864_v10  ;;  %v1350_v57 = vadd.f32 %v1349_v59, %v2873_v13  ;;  %v1112_v10 = vadd.f32 %v3611_v44, %v3128_v26 }
 0x226   :  { %v1526_v9 = vadd.f32 %v1506_v29, %v1505_v32  ;;  %v4460_v44 = vperm.slane %v3409_v51, 4  ;;  %v941_v7 = vmax.f32 %v880_v38, 0.0  ;;  %v3690_v15 = vadd.f32 %v3607_v42, %v3175_v16 }
 0x227   :  { %v1454_v25 = vmax.f32 %v1327_v2, 0.0  ;;  %v1455_v31 = vmax.f32 %v1350_v57, 0.0  ;;  %v1213_v19 = vperm.slane %v3620_v53, 6  ;;  %v1469_v11 = vperm.slane %v3629_v39, 4 }
 0x228   :  { %v977_v54 = vmul.f32 %v4460_v44, %v940_v49  ;;  %v1470_v61 = vperm.slane %v3629_v39, 5  ;;  %v1192_v4 = vmax.f32 %v1158_v52, 0.0  ;;  %v1214_v40 = vperm.slane %v3620_v53, 7 }
 0x229   :  { %v1491_v35 = vmul.f32 %v1467_v5, %v1454_v25  ;;  %v1492_v60 = vmul.f32 %v1468_v18, %v1455_v31  ;;  %v1190_v5 = vmax.f32 %v1112_v10, 0.0  ;;  %v1191_v18 = vmax.f32 %v1135_v12, 0.0 }
 0x22a   :  { %v1138_v42 = vadd.f32 %v3625_v58, %v4426_v50  ;;  %v1193_v63 = vmax.f32 %v1181_v62, 0.0  ;;  %v1198_v17 = vmax.f32 %v1115_v46, 0.0  ;;  %v993_v29 = vadd.f32 %v977_v54, %v3355_v27 }
 0x22b   :  { %v1507_v36 = vadd.f32 %v1491_v35, %v1249_v28  ;;  %v1508_v48 = vadd.f32 %v1492_v60, %v1250_v23  ;;  %v1227_v3 = vmul.f32 %v1211_v56, %v1190_v5  ;;  %v1228_v34 = vmul.f32 %v1212_v6, %v1191_v18 }
 0x22c   :  { %v4461_v41 = vperm.slane %v3409_v51, 5  ;;  %v942_v33 = vmax.f32 %v903_v0, 0.0  ;;  %v943_v20 = vmax.f32 %v3690_v15, 0.0  ;;  %v1229_v31 = vmul.f32 %v1213_v19, %v1192_v4  ;;  %v4464_v15 = vld [vmem:[#allocation84_spill] sm:$0xff] }
 0x22d   :  { %v1527_v47 = vadd.f32 %v1526_v9, %v1507_v36  ;;  %v1243_v2 = vadd.f32 %v1227_v3, %v3552_v24  ;;  %v1244_v25 = vadd.f32 %v1228_v34, %v3555_v1  ;;  %v1199_v58 = vmax.f32 %v1138_v42, 0.0 }
 0x22e   :  { %v978_v59 = vmul.f32 %v4461_v41, %v941_v7  ;;  %v1230_v28 = vmul.f32 %v1214_v40, %v1193_v63  ;;  %v1235_v35 = vmul.f32 %v1211_v56, %v1198_v17  ;;  %v1161_v27 = vadd.f32 %v3632_v14, %v3166_v43  ;;  %v4462_v56 = vld [vmem:[#allocation86_spill] sm:$0xff] }
 0x22f   :  { %v3670_v13 = vadd.f32 %v1527_v47, %v1508_v48  ;;  %v1471_v47 = vperm.slane %v3629_v39, 6  ;;  %v1472_v1 = vperm.slane %v3629_v39, 7  ;;  %v1236_v5 = vmul.f32 %v1212_v6, %v1199_v58  ;;  %v4463_v39 = vld [vmem:[#allocation117_spill] sm:$0xff] }
 0x230   :  { %v1184_v18 = vadd.f32 %v4462_v56, %v3175_v16  ;;  %v1200_v54 = vmax.f32 %v1161_v27, 0.0  ;;  %v994_v0 = vadd.f32 %v978_v59, %v4463_v39  ;;  %v1245_v3 = vadd.f32 %v1229_v31, %v4464_v15 }
 0x231   :  { %v4467_v63 = vperm.slane %v3409_v51, 7  ;;  %v1536_v53 = vstv %s3762_s4  ;;  %s2026_s4 = smov [#allocation11]  }
 0x232   :  { %v1201_v4 = vmax.f32 %v1184_v18, 0.0  ;;  %s1711_s15 = sshll.u32 %s2026_s4, 4  ;;  %s1712_s15 = int_to_ptr.vmem [resolvable:$true] %s1711_s15 }
 0x233   :  { %v980_v17 = vmul.f32 %v4467_v63, %v943_v20 }
 0x237   :  { %v1369_v30 = vpop.f32.mrf.mxu0  ;;  %v1392_v22 = vpop.f32.mrf.mxu1 }
 0x238   :  { %v1370_v45 = vadd.f32 %v1369_v30, %v3128_v26  ;;  %v1393_v21 = vadd.f32 %v1392_v22, %v4426_v50 }
 0x23a   :  { %v1448_v8 = vmax.f32 %v1370_v45, 0.0  ;;  %v1449_v32 = vmax.f32 %v1393_v21, 0.0  ;;  %v4466_v21 = vld [vmem:[#allocation85_spill] sm:$0xff] }
 0x23b   :  { %v1246_v34 = vadd.f32 %v1230_v28, %v4466_v21 }
 0x23c   :  { %v1485_v57 = vmul.f32 %v1469_v11, %v1448_v8  ;;  %v1486_v9 = vmul.f32 %v1470_v61, %v1449_v32  ;;  %v1252_v8 = vadd.f32 %v1236_v5, %v994_v0  ;;  %v1237_v32 = vmul.f32 %v1213_v19, %v1200_v54 }
 0x23e   :  { %v1501_v60 = vadd.f32 %v1485_v57, %v1243_v2  ;;  %v1415_v23 = vpop.f32.mrf.mxu2  ;;  %v1438_v36 = vpop.f32.mrf.mxu3  ;;  %v1502_v49 = vadd.f32 %v1486_v9, %v1244_v25 }
 0x23f   :  { %v1416_v24 = vadd.f32 %v1415_v23, %v3166_v43  ;;  %v1439_v48 = vadd.f32 %v1438_v36, %v3175_v16  ;;  %v1372_v37 = vpop.f32.mrf.mxu0  ;;  %v1395_v10 = vpop.f32.mrf.mxu1 }
 0x240   :  { %v1520_v12 = vadd.f32 %v3660_v55, %v1501_v60  ;;  %v1373_v38 = vadd.f32 %v1372_v37, %v3128_v26  ;;  %v1396_v14 = vadd.f32 %v1395_v10, %v4426_v50  ;;  %v4465_v26 = vperm.slane %v3409_v51, 6 }
 0x241   :  { %v1450_v52 = vmax.f32 %v1416_v24, 0.0  ;;  %v1451_v44 = vmax.f32 %v1439_v48, 0.0  ;;  %v1251_v50 = vadd.f32 %v1235_v35, %v993_v29  ;;  %v1238_v51 = vmul.f32 %v1214_v40, %v1201_v4  ;;  %v4469_v35 = vld [vmem:[#allocation119_spill] sm:$0xff] }
 0x242   :  { %v1456_v7 = vmax.f32 %v1373_v38, 0.0  ;;  %v1457_v62 = vmax.f32 %v1396_v14, 0.0  ;;  %v1521_v46 = vadd.f32 %v1520_v12, %v1502_v49  ;;  %v979_v22 = vmul.f32 %v4465_v26, %v942_v33 }
 0x243   :  { %v1487_v55 = vmul.f32 %v1471_v47, %v1450_v52  ;;  %v1488_v30 = vmul.f32 %v1472_v1, %v1451_v44  ;;  %v996_v27 = vadd.f32 %v980_v17, %v4469_v35 }
 0x244   :  { %v1493_v6 = vmul.f32 %v1469_v11, %v1456_v7  ;;  %v1494_v45 = vmul.f32 %v1470_v61, %v1457_v62  ;;  %v4468_v11 = vld [vmem:[#allocation118_spill] sm:$0xff] }
 0x245   :  { %v1503_v42 = vadd.f32 %v1487_v55, %v1245_v3  ;;  %v1504_v33 = vadd.f32 %v1488_v30, %v1246_v34  ;;  %v995_v61 = vadd.f32 %v979_v22, %v4468_v11 }
 0x246   :  { %v1509_v41 = vadd.f32 %v1493_v6, %v1251_v50  ;;  %v1418_v59 = vpop.f32.mrf.mxu2  ;;  %v1441_v2 = vpop.f32.mrf.mxu3  ;;  %v1510_v25 = vadd.f32 %v1494_v45, %v1252_v8  ;;  %v2024_v50 = vmov 0.0   ;;  %v2025_v8 = vmov 0  }
 0x247   :  { %v1419_v57 = vadd.f32 %v1418_v59, %v3166_v43  ;;  %v1442_v9 = vadd.f32 %v1441_v2, %v3175_v16  ;;  %v1522_v29 = vadd.f32 %v1521_v46, %v1503_v42  ;;  %v1253_v60 = vadd.f32 %v1237_v32, %v995_v61  ;;  %1742 = vset.pattern.permute.xlu1 %v2025_v8 }
 0x248   :  { %v1529_v31 = vadd.f32 %v3670_v13, %v1509_v41  ;;  %v1254_v16 = vadd.f32 %v1238_v51, %v996_v27  ;;  %v1541_v13 = vlaneseq  ;;  %1743 = vset.pattern.permute.xlu0 %v2025_v8 }
 0x249   :  { %v1458_v20 = vmax.f32 %v1419_v57, 0.0  ;;  %v1459_v58 = vmax.f32 %v1442_v9, 0.0  ;;  %v1523_v19 = vadd.f32 %v1522_v29, %v1504_v33 }
 0x24a   :  { %v1530_v28 = vadd.f32 %v1529_v31, %v1510_v25  ;;  %v1542_v40 = vshrl.u32 %v1541_v13, 7  ;;  %v1562_v3 = vand.u32 127, %v1541_v13  ;;  %v1881_v13 = vld [vmem:[#allocation3 + $0x18] sm:$0xff] }
 0x24b   :  { %v1495_v43 = vmul.f32 %v1471_v47, %v1458_v20  ;;  %v1496_v23 = vmul.f32 %v1472_v1, %v1459_v58 }
 0x24c   :  { %v3736_v49 = vadd.s32 8, %v1542_v40  ;;  %v1565_v46 = vadd.s32 1, %v1542_v40  ;;  %v1563_v55 = vmul.u32 6, %v1542_v40  ;;  %v1573_v21 = vadd.s32 1, %v1562_v3 }
 0x24d   :  { %v1511_v36 = vadd.f32 %v1495_v43, %v1253_v60  ;;  %v1512_v24 = vadd.f32 %v1496_v23, %v1254_v16  ;;  %v1570_v34 = vmul.u32 6, %v1562_v3 }
 0x24e   :  { %vm1545_vm0 = vcmp.lt.s32.totalorder %v3736_v49, 12  ;;  %v1566_v30 = vmul.u32 6, %v1565_v46  ;;  %vm1564_vm1 = vcmp.ge.s32.totalorder %v1562_v3, %v1563_v55  ;;  %v1574_v4 = vmul.u32 6, %v1573_v21  ;;  %v4471_v46 = vld [vmem:[#allocation83_spill] sm:$0xff] }
 0x24f   :  { %v1531_v48 = vadd.f32 %v1530_v28, %v1511_v36  ;;  %vm1571_vm5 = vcmp.ge.s32.totalorder %v1542_v40, %v1570_v34  ;;  %vm1572_vm7 = vcmp.ge.s32.totalorder %v3736_v49, %v1570_v34 }
 0x250   :  { %vm1567_vm2 = vcmp.lt.s32.totalorder %v1562_v3, %v1566_v30  ;;  %vm1575_vm6 = vcmp.lt.s32.totalorder %v1542_v40, %v1574_v4  ;;  %vm1576_vm8 = vcmp.lt.s32.totalorder %v3736_v49, %v1574_v4  ;;  %v1886_v49 = vld [vmem:[#allocation3 + $0x20] sm:$0xff] }
 0x251   :  { %v1532_v37 = vadd.f32 %v1531_v48, %v1512_v24  ;;  %vm1568_vm3 = vmand %vm1564_vm1, %vm1567_vm2 }
 0x252   :  { %v3741_v6 = vsel %vm1568_vm3, 1.0, %v2024_v50  ;;  %vm1577_vm9 = vmand %vm1571_vm5, %vm1575_vm6 }
 0x253   :  { %1533 = vadd.xlane.f32.xlu0 %v1532_v37  ;;  %vm1578_vm10 = vmand %vm1572_vm7, %vm1576_vm8  ;;  %v1579_v42 = vsel %vm1577_vm9, 1.0, %v2024_v50  ;;  %v1880_v37 = vld [vmem:[#allocation3 + $0x8] sm:$0xff] }
 0x254   :  { %v1580_v63 = vsel %vm1578_vm10, 1.0, %v2024_v50 }
 0x25b   :  { %1524 = vadd.xlane.f32.xlu0 %v1523_v19 }
 0x2c6   :  { %v1534_v10 = vpop.xlane.xlu0 %1533 }
 0x2c7   :  { %v1538_v12 = vadd.f32 %v1536_v53, %v1534_v10  ;;  %v740_v10 = vadd.f32 %v1881_v13, %v1880_v37 }
 0x2c9   :  { %v1540_v38 = vmax.f32 %v1538_v12, 0.0  ;;  %v1883_v12 = vld [vmem:[#allocation3 + $0x38] sm:$0xff] }
 0x2cb   :  { %v1547_v5 = vsel %vm1545_vm0, %v1540_v38, -1e+30 }
 0x2ce   :  { %v1525_v47 = vpop.xlane.xlu0 %1524 }
 0x2cf   :  { %v1537_v1 = vadd.f32 %v1536_v53, %v1525_v47  ;;  %v1882_v53 = vld [vmem:[#allocation3 + $0x28] sm:$0xff]  ;;  %v1884_v47 = vld [vmem:[#allocation3] sm:$0xff] }
 0x2d0   :  { %v998_v40 = vadd.f32 %v1882_v53, %v740_v10 }
 0x2d1   :  { %v1539_v14 = vmax.f32 %v1537_v1, 0.0  ;;  %v1885_v1 = vld [vmem:[#allocation3 + $0x10] sm:$0xff] }
 0x2d2   :  { %v1256_v38 = vadd.f32 %v1883_v12, %v998_v40 }
 0x2d3   :  { %v1548_v56 = vmax.f32 %v1539_v14, %v1547_v5 }
 0x2d5   :  { %v1549_v18 = vrot.slane %v1548_v56, 4 }
 0x2d7   :  { %v1550_v52 = vmax.f32 %v1548_v56, %v1549_v18 }
 0x2d9   :  { %v1551_v44 = vrot.slane %v1550_v52, 2 }
 0x2db   :  { %v1552_v54 = vmax.f32 %v1550_v52, %v1551_v44  ;;  %v1887_v44 = vld [vmem:[#allocation3 + $0x30] sm:$0xff] }
 0x2dd   :  { %v1553_v7 = vrot.slane %v1552_v54, 1 }
 0x2df   :  { %v1554_v62 = vmax.f32 %v1552_v54, %v1553_v7 }
 0x2e1   :  { %v1555_v39 = vsub.f32 %v1539_v14, %v1554_v62  ;;  %v1556_v0 = vsub.f32 %v1547_v5, %v1554_v62  ;;  %v739_v14 = vadd.f32 %v1885_v1, %v1884_v47  ;;  %v4470_v5 = vld [vmem:[#allocation78_spill] sm:$0xff] }
 0x2e2   :  { %v1514_v56 = vadd.f32 %v4470_v5, %v1256_v38 }
 0x2e3   :  { %v1559_v15 = vmul.f32 1.442695, %v1556_v0  ;;  %v1557_v26 = vmul.f32 1.442695, %v1555_v39  ;;  %v997_v18 = vadd.f32 %v1886_v49, %v739_v14 }
 0x2e4   :  { %v1516_v52 = vmul.f32 0.2, %v1514_v56 }
 0x2e5   :  { %1744 = vpow2.f32 %v1559_v15  ;;  %v1255_v54 = vadd.f32 %v1887_v44, %v997_v18 }
 0x2e6   :  { %1746 = vpow2.f32 %v1557_v26 }
 0x2e7   :  { %v1513_v39 = vadd.f32 %v4471_v46, %v1255_v54 }
 0x2e9   :  { %v1515_v0 = vmul.f32 0.2, %v1513_v39 }
 0x2eb   :  { %v1745_v22 = vpop.eup %1744 }
 0x2ec   :  { %1599 = vmatpush.msra.mxu0 %v1745_v22  ;;  %v1747_v45 = vpop.eup %1746 }
 0x2ee   :  { %1600 = vmatpush.msra.mxu0 %v1747_v45 }
 0x2ef   :  { %1725 = vmatmul.msk.f32.vlgmr.msra.gmra.mxu0 %vm1581_vm4, %v3741_v6 }
 0x36c   :  { %v1602_v17 = vpop.f32.mrf.mxu0 }
 0x36d   :  { %1726 = vmatpush.msk.msra.mxu1 %vm1612_vm11, %v1602_v17  ;;  %1730 = vmatpush.msk.msra.mxu3 %vm1612_vm11, %v1602_v17 }
 0x36e   :  { %1727 = vmatmul.msk.f32.vlgmr.msra.gmra.mxu1 %vm1605_vm12, %v1579_v42  ;;  %1728 = vmatmul.msk.f32.vlgmr.msra.gmra.mxu3 %vm1605_vm12, %v1580_v63 }
 0x3eb   :  { %v1633_v32 = vpop.f32.mrf.mxu1 }
 0x3ec   :  { %1748 = vrcp.f32 %v1633_v32  ;;  %vm1646_vm15 = vweird.f32 %v1633_v32  ;;  %v1652_v19 = vand.u32 2147483648, %v1633_v32  ;;  %v1650_v27 = vand.u32 2147483647, %v1633_v32 }
 0x3ee   :  { %v1653_v23 = vor.u32 1.1754944e-38, %v1652_v19  ;;  %vm1651_vm6 = vcmp.eq.f32.partialorder %v1650_v27, 8.507059e+37 }
 0x3f1   :  { %v1636_v41 = vpop.f32.mrf.mxu3 }
 0x3f2   :  { %v1640_v59 = vsel %vm1545_vm0, %v1636_v41, 1.0  ;;  %v1749_v2 = vpop.eup %1748 }
 0x3f3   :  { %1750 = vrcp.f32 %v1640_v59  ;;  %v1642_v57 = vmul.f32 %v1749_v2, %v1633_v32  ;;  %v1667_v61 = vand.u32 2147483648, %v1640_v59  ;;  %v1665_v31 = vand.u32 2147483647, %v1640_v59 }
 0x3f4   :  { %vm1661_vm14 = vweird.f32 %v1640_v59  ;;  %vm1647_vm1 = vweird.f32 %v1749_v2 }
 0x3f5   :  { %v1643_v29 = vsub.f32 1.0, %v1642_v57  ;;  %v1668_v58 = vor.u32 1.1754944e-38, %v1667_v61  ;;  %vm1666_vm3 = vcmp.eq.f32.partialorder %v1665_v31, 8.507059e+37  ;;  %vm1648_vm5 = vmor %vm1646_vm15, %vm1647_vm1 }
 0x3f7   :  { %v1644_v51 = vmul.f32 %v1749_v2, %v1643_v29 }
 0x3f9   :  { %v1751_v9 = vpop.eup %1750  ;;  %v1645_v35 = vadd.f32 %v1749_v2, %v1644_v51 }
 0x3fa   :  { %v1657_v33 = vmul.f32 %v1751_v9, %v1640_v59  ;;  %vm1662_vm13 = vweird.f32 %v1751_v9 }
 0x3fb   :  { %vm1663_vm2 = vmor %vm1661_vm14, %vm1662_vm13  ;;  %v1649_v36 = vsel %vm1648_vm5, %v1749_v2, %v1645_v35 }
 0x3fc   :  { %v1658_v11 = vsub.f32 1.0, %v1657_v33  ;;  %v1654_v24 = vsel %vm1651_vm6, %v1653_v23, %v1649_v36 }
 0x3fd   :  { %v1655_v48 = vmul.f32 %v1747_v45, %v1654_v24 }
 0x3fe   :  { %v1659_v25 = vmul.f32 %v1751_v9, %v1658_v11 }
 0x400   :  { %v1660_v20 = vadd.f32 %v1751_v9, %v1659_v25 }
 0x402   :  { %v1664_v28 = vsel %vm1663_vm2, %v1751_v9, %v1660_v20 }
 0x403   :  { %v1669_v60 = vsel %vm1666_vm3, %v1668_v58, %v1664_v28 }
 0x404   :  { %v1670_v43 = vmul.f32 %v1745_v22, %v1669_v60 }
 0x406   :  { %v1672_v16 = vsel %vm1545_vm0, %v1670_v43, 0.0 }
 0x407   :  { %1680 = vperm.xlu1 %1742, %v1672_v16  }
 0x40f   :  { %1675 = vperm.xlu1 %1742, %v1655_v48  }
 0x479   :  { %v1681_v7 = vpop.permute.xlu1 %1680 }
 0x47a   :  { %v1684_v62 = vmul.f32 %v1681_v7, %v1516_v52 }
 0x47c   :  { %1699 = vmatpush.msra.mxu2 %v1684_v62 }
 0x481   :  { %v1676_v15 = vpop.permute.xlu1 %1675 }
 0x482   :  { %v1683_v3 = vmul.f32 %v1676_v15, %v1515_v0 }
 0x484   :  { %1700 = vmatpush.msra.mxu2 %v1683_v3 }
 0x485   :  { %1729 = vmatmul.msk.f32.vlgmr.msra.gmra.mxu2 %vm1581_vm4, %v3741_v6 }
 0x508   :  { %v1702_v55 = vpop.f32.mrf.mxu2 }
 0x509   :  { %1705 = vst [vmem:[#allocation11] sm:$0x3] %v1702_v55 }
 0x50a   :  { %1716 = dma.vmem_to_hbm [thread:$0]  %s1712_s15, 32, %s1714_s18, [#allocation5]  }
 0x50b   :  { %2014 = dma.done.wait [#allocation5], 32  }
 0x50c   :  { %2015 = vsyncadd [#allocation5], 4294967264 }
 0x50d   :  { %1721 = vsyncpa [#allocation4], 1 }
 0x50e   :  { %1722 = vsyncpa [#allocation7], 1 }
 0x50f   :  { %1723 = vsyncpa [#allocation10], 1 }
 0x510   :  { %1724 = vsyncpa [#allocation5], 1 }

</bundles_post_ra>
